<compile_context>
chip_gen: v5e
topology: v5e:2x2
jax: 0.10.0
libtpu: 0.0.40
codegen_flags: <defaults>
</compile_context>

<pallas_src>
import functools
import math

import jax
import jax.numpy as jnp
from jax.experimental import pallas as pl
from jax.experimental.pallas import tpu as pltpu


_VMEM_LIMIT = 32 * 1024 * 1024  # safe on v5e/v6e/v7x


def _layernorm(r, g, b, eps=1e-5):
    mu = jnp.mean(r, axis=-1, keepdims=True)
    rc = r - mu
    var = jnp.mean(rc * rc, axis=-1, keepdims=True)
    return rc * jax.lax.rsqrt(var + eps) * g + b


def _fused_forward_kernel(
        patches_ref, mask_ref, tok_ref, pos_ref, hsel_ref,
        wqkv_ref, bqkv_ref, wo_ref, bo_ref, ln1g_ref, ln1b_ref,
        w1_ref, b1_ref, w2_ref, b2_ref, ln2g_ref, ln2b_ref,
        dw1_ref, db1_ref, dw2_ref, db2_ref,
        out_ref, *, num_heads, num_layers):
    """Whole forward pass for one tile of `tn` patches, fully in VMEM."""
    S = patches_ref.shape[0]          # sequence length = original batch dim
    tn, E = pos_ref.shape             # patches in this tile, embed dim
    dh = E // num_heads
    scale = 1.0 / math.sqrt(dh)

    tok = tok_ref[...]                # (1, E)
    pos = pos_ref[...]                # (tn, E)
    hsel = hsel_ref[...]              # (E, E) block-diagonal head selector

    # ---- prologue: mask-token substitution + positional embedding ---------
    xs = [jnp.where(mask_ref[s] > 0.5, patches_ref[s], tok) + pos
          for s in range(S)]
    x = jnp.concatenate(xs, axis=0)   # (S*tn, E) f32, S-major rows

    for l in range(num_layers):
        # ---- multi-head self-attention over the S axis ---------------------
        qkv = jnp.dot(x.astype(jnp.bfloat16), wqkv_ref[l],
                      preferred_element_type=jnp.float32) + bqkv_ref[l]
        q = qkv[:, 0 * E:1 * E] * scale          # scale folded into q once
        k = qkv[:, 1 * E:2 * E]
        v = qkv[:, 2 * E:3 * E]
        qs = [q[s * tn:(s + 1) * tn] for s in range(S)]
        ks = [k[s * tn:(s + 1) * tn] for s in range(S)]
        vs = [v[s * tn:(s + 1) * tn] for s in range(S)]

        ctxs = []
        for i in range(S):
            # head scores, replicated across each head's dh lanes (one MXU dot
            # against the block-diagonal selector per (i, j) pair)
            sc = [jnp.dot(qs[i] * ks[j], hsel,
                          preferred_element_type=jnp.float32)
                  for j in range(S)]
            m = sc[0]
            for j in range(1, S):
                m = jnp.maximum(m, sc[j])
            e = [jnp.exp(sc[j] - m) for j in range(S)]
            den = e[0]
            for j in range(1, S):
                den = den + e[j]
            inv = pl.reciprocal(den, approx=True)          # EUP slot
            ctx = (e[0] * inv) * vs[0]
            for j in range(1, S):
                ctx = ctx + (e[j] * inv) * vs[j]           # (tn, E)
            ctxs.append(ctx)
        ctx = jnp.concatenate(ctxs, axis=0)                 # (S*tn, E)

        # single full-width out-projection (hoisted out of the head loop)
        attn = jnp.dot(ctx.astype(jnp.bfloat16), wo_ref[l],
                       preferred_element_type=jnp.float32) + bo_ref[l]
        x = _layernorm(x + attn, ln1g_ref[l], ln1b_ref[l])   # residual + LN1

        # ---- feed-forward: whole ff width in one step (no grid reduction) --
        h = jnp.dot(x.astype(jnp.bfloat16), w1_ref[l],
                    preferred_element_type=jnp.float32) + b1_ref[l]
        h = jnp.maximum(h, 0.0)                               # ReLU
        y = jnp.dot(h.astype(jnp.bfloat16), w2_ref[l],
                    preferred_element_type=jnp.float32) + b2_ref[l]
        x = _layernorm(x + y, ln2g_ref[l], ln2b_ref[l])       # residual + LN2

    # ---- decoder: lin1 + ReLU + lin2, fused into the same kernel -----------
    h = jnp.dot(x.astype(jnp.bfloat16), dw1_ref[...],
                preferred_element_type=jnp.float32) + db1_ref[...]
    h = jnp.maximum(h, 0.0)
    dec = jnp.dot(h.astype(jnp.bfloat16), dw2_ref[...],
                  preferred_element_type=jnp.float32) + db2_ref[...]
    for s in range(S):
        out_ref[s] = dec[s * tn:(s + 1) * tn]   # (tn, out_pad), lane-dense


# ------------------------------ wrapper / glue ------------------------------

def forward(params, patches, mask, *, num_heads, out_dim, n_row_blocks=1):
    """patches: (B, N, E) f32, mask: (B, N) bool (1 = visible, 0 = masked)."""
    B, N, E = patches.shape
    L = params["wqkv"].shape[0]
    ff = params["w1"].shape[2]
    out_pad = params["dec_w2"].shape[1]

    assert N % n_row_blocks == 0
    tn = N // n_row_blocks
    assert tn == N or tn % 8 == 0, "patch tile must be a multiple of 8"

    mask3 = mask.astype(jnp.float32)[:, :, None]            # (B, N, 1)

    # Block-diagonal head selector (constant): hsel[a, b] = 1 iff lanes a, b
    # belong to the same head.  Computed once outside the kernel.
    dh = E // num_heads
    lane = jnp.arange(E) // dh
    hsel = (lane[:, None] == lane[None, :]).astype(jnp.float32)   # (E, E)

    kernel = functools.partial(_fused_forward_kernel,
                               num_heads=num_heads, num_layers=L)

    def c2(i):
        return (0, 0)

    def c3(i):
        return (0, 0, 0)

    in_specs = [
        pl.BlockSpec((B, tn, E), lambda i: (0, i, 0)),       # patches
        pl.BlockSpec((B, tn, 1), lambda i: (0, i, 0)),       # mask3
        pl.BlockSpec((1, E), c2),                            # mask_token
        pl.BlockSpec((tn, E), lambda i: (i, 0)),             # pos embedding
        pl.BlockSpec((E, E), c2),                            # head selector
        pl.BlockSpec((L, E, 3 * E), c3),                     # wqkv (bf16)
        pl.BlockSpec((L, 1, 3 * E), c3),                     # bqkv
        pl.BlockSpec((L, E, E), c3),                         # wo   (bf16)
        pl.BlockSpec((L, 1, E), c3),                         # bo
        pl.BlockSpec((L, 1, E), c3),                         # ln1 gamma
        pl.BlockSpec((L, 1, E), c3),                         # ln1 beta
        pl.BlockSpec((L, E, ff), c3),                        # w1   (bf16)
        pl.BlockSpec((L, 1, ff), c3),                        # b1
        pl.BlockSpec((L, ff, E), c3),                        # w2   (bf16)
        pl.BlockSpec((L, 1, E), c3),                         # b2
        pl.BlockSpec((L, 1, E), c3),                         # ln2 gamma
        pl.BlockSpec((L, 1, E), c3),                         # ln2 beta
        pl.BlockSpec((E, E), c2),                            # dec_w1 (bf16)
        pl.BlockSpec((1, E), c2),                            # dec_b1
        pl.BlockSpec((E, out_pad), c2),                      # dec_w2 (bf16)
        pl.BlockSpec((1, out_pad), c2),                      # dec_b2
    ]

    out = pl.pallas_call(
        kernel,
        grid=(n_row_blocks,),
        in_specs=in_specs,
        out_specs=pl.BlockSpec((B, tn, out_pad), lambda i: (0, i, 0)),
        out_shape=jax.ShapeDtypeStruct((B, N, out_pad), jnp.float32),
        compiler_params=pltpu.CompilerParams(
            dimension_semantics=("parallel",),
            vmem_limit_bytes=_VMEM_LIMIT),
    )(patches, mask3, params["mask_token"], params["pos"], hsel,
      params["wqkv"], params["bqkv"], params["wo"], params["bo"],
      params["ln1_g"], params["ln1_b"],
      params["w1"], params["b1"], params["w2"], params["b2"],
      params["ln2_g"], params["ln2_b"],
      params["dec_w1"], params["dec_b1"], params["dec_w2"], params["dec_b2"])

    return out[:, :, :out_dim]


def init_params(key, E, H, L, N, ff, out_dim):
    keys = iter(jax.random.split(key, 16 + 8 * L))

    def w(shape, scale=0.02):
        # Stored pre-transposed as (in_features, out_features), bf16 for the
        # MXU path (f32 accumulation happens inside the kernel).
        return (scale * jax.random.normal(next(keys), shape,
                                          dtype=jnp.float32)).astype(jnp.bfloat16)

    out_pad = ((out_dim + 127) // 128) * 128       # lane-dense decoder output
    params = {
        "pos": jax.random.normal(next(keys), (N, E), dtype=jnp.float32),
        "mask_token": jax.random.normal(next(keys), (1, E), dtype=jnp.float32),
        "dec_w1": w((E, E)),
        "dec_b1": jnp.zeros((1, E), jnp.float32),
        "dec_w2": jnp.zeros((E, out_pad), jnp.bfloat16).at[:, :out_dim].set(
            w((E, out_dim))),
        "dec_b2": jnp.zeros((1, out_pad), jnp.float32),
        # stacked per-layer encoder weights (leading dim = layer)
        "wqkv": jnp.stack([w((E, 3 * E)) for _ in range(L)]),
        "bqkv": jnp.zeros((L, 1, 3 * E), jnp.float32),
        "wo": jnp.stack([w((E, E)) for _ in range(L)]),
        "bo": jnp.zeros((L, 1, E), jnp.float32),
        "ln1_g": jnp.ones((L, 1, E), jnp.float32),
        "ln1_b": jnp.zeros((L, 1, E), jnp.float32),
        "w1": jnp.stack([w((E, ff)) for _ in range(L)]),
        "b1": jnp.zeros((L, 1, ff), jnp.float32),
        "w2": jnp.stack([w((ff, E)) for _ in range(L)]),
        "b2": jnp.zeros((L, 1, E), jnp.float32),
        "ln2_g": jnp.ones((L, 1, E), jnp.float32),
        "ln2_b": jnp.zeros((L, 1, E), jnp.float32),
    }
    return params


def image_to_patches(image, patch_size):
    """JAX port of the reference helper (glue only). image: (B, C, H, W)."""
    B, C, Hh, Ww = image.shape
    nh, nw = Hh // patch_size, Ww // patch_size
    p = image.reshape(B, C, nh, patch_size, nw, patch_size)
    p = p.transpose(0, 2, 4, 1, 3, 5).reshape(B, nh * nw,
                                              C * patch_size * patch_size)
    return p


if __name__ == "__main__":
    B, N, E, H, L = 2, 16, 32, 4, 2
    patch_size = 4
    out_dim = patch_size * patch_size * 3          # 48
    dim_feedforward = 2048                         # PyTorch default

    key = jax.random.PRNGKey(0)
    kp, kx, km = jax.random.split(key, 3)
    params = init_params(kp, E, H, L, N, dim_feedforward, out_dim)

    patches = jax.random.normal(kx, (B, N, E), dtype=jnp.float32)
    mask = jax.random.uniform(km, (B, N)) > 0.5    # bool: 1 = visible

    fwd = jax.jit(functools.partial(forward, num_heads=H, out_dim=out_dim))
    out = jax.block_until_ready(fwd(params, patches, mask))

    assert out.shape == (B, N, out_dim), out.shape
    assert bool(jnp.all(jnp.isfinite(out)))
    print("KERNEL_OK")
</pallas_src>

<mosaic_0001>
module attributes {stable_mosaic.version = 11 : i64} {
  func.func @_fused_forward_kernel(%arg0: i32, %arg1: memref<2x16x32xf32, #tpu.memory_space<vmem>>, %arg2: memref<2x16x1xf32, #tpu.memory_space<vmem>>, %arg3: memref<1x32xf32, #tpu.memory_space<vmem>>, %arg4: memref<16x32xf32, #tpu.memory_space<vmem>>, %arg5: memref<32x32xf32, #tpu.memory_space<vmem>>, %arg6: memref<2x32x96xbf16, #tpu.memory_space<vmem>>, %arg7: memref<2x1x96xf32, #tpu.memory_space<vmem>>, %arg8: memref<2x32x32xbf16, #tpu.memory_space<vmem>>, %arg9: memref<2x1x32xf32, #tpu.memory_space<vmem>>, %arg10: memref<2x1x32xf32, #tpu.memory_space<vmem>>, %arg11: memref<2x1x32xf32, #tpu.memory_space<vmem>>, %arg12: memref<2x32x2048xbf16, #tpu.memory_space<vmem>>, %arg13: memref<2x1x2048xf32, #tpu.memory_space<vmem>>, %arg14: memref<2x2048x32xbf16, #tpu.memory_space<vmem>>, %arg15: memref<2x1x32xf32, #tpu.memory_space<vmem>>, %arg16: memref<2x1x32xf32, #tpu.memory_space<vmem>>, %arg17: memref<2x1x32xf32, #tpu.memory_space<vmem>>, %arg18: memref<32x32xbf16, #tpu.memory_space<vmem>>, %arg19: memref<1x32xf32, #tpu.memory_space<vmem>>, %arg20: memref<32x128xbf16, #tpu.memory_space<vmem>>, %arg21: memref<1x128xf32, #tpu.memory_space<vmem>>, %arg22: memref<2x16x128xf32, #tpu.memory_space<vmem>>) attributes {dimension_semantics = [#tpu.dimension_semantics<parallel>], iteration_bounds = array<i64: 1>, scalar_prefetch = 0 : i64, scratch_operands = 0 : i64, tpu.core_type = #tpu.core_type<tc>, window_params = [{transform_indices = @transform_0, window_bounds = array<i64: 2, 16, 32>}, {transform_indices = @transform_1, window_bounds = array<i64: 2, 16, 1>}, {pipeline_mode = #tpu.pipeline_mode<synchronous>, transform_indices = @transform_2, window_bounds = array<i64: 1, 32>}, {transform_indices = @transform_3, window_bounds = array<i64: 16, 32>}, {pipeline_mode = #tpu.pipeline_mode<synchronous>, transform_indices = @transform_4, window_bounds = array<i64: 32, 32>}, {pipeline_mode = #tpu.pipeline_mode<synchronous>, transform_indices = @transform_5, window_bounds = array<i64: 2, 32, 96>}, {pipeline_mode = #tpu.pipeline_mode<synchronous>, transform_indices = @transform_6, window_bounds = array<i64: 2, 1, 96>}, {pipeline_mode = #tpu.pipeline_mode<synchronous>, transform_indices = @transform_7, window_bounds = array<i64: 2, 32, 32>}, {pipeline_mode = #tpu.pipeline_mode<synchronous>, transform_indices = @transform_8, window_bounds = array<i64: 2, 1, 32>}, {pipeline_mode = #tpu.pipeline_mode<synchronous>, transform_indices = @transform_9, window_bounds = array<i64: 2, 1, 32>}, {pipeline_mode = #tpu.pipeline_mode<synchronous>, transform_indices = @transform_10, window_bounds = array<i64: 2, 1, 32>}, {pipeline_mode = #tpu.pipeline_mode<synchronous>, transform_indices = @transform_11, window_bounds = array<i64: 2, 32, 2048>}, {pipeline_mode = #tpu.pipeline_mode<synchronous>, transform_indices = @transform_12, window_bounds = array<i64: 2, 1, 2048>}, {pipeline_mode = #tpu.pipeline_mode<synchronous>, transform_indices = @transform_13, window_bounds = array<i64: 2, 2048, 32>}, {pipeline_mode = #tpu.pipeline_mode<synchronous>, transform_indices = @transform_14, window_bounds = array<i64: 2, 1, 32>}, {pipeline_mode = #tpu.pipeline_mode<synchronous>, transform_indices = @transform_15, window_bounds = array<i64: 2, 1, 32>}, {pipeline_mode = #tpu.pipeline_mode<synchronous>, transform_indices = @transform_16, window_bounds = array<i64: 2, 1, 32>}, {pipeline_mode = #tpu.pipeline_mode<synchronous>, transform_indices = @transform_17, window_bounds = array<i64: 32, 32>}, {pipeline_mode = #tpu.pipeline_mode<synchronous>, transform_indices = @transform_18, window_bounds = array<i64: 1, 32>}, {pipeline_mode = #tpu.pipeline_mode<synchronous>, transform_indices = @transform_19, window_bounds = array<i64: 32, 128>}, {pipeline_mode = #tpu.pipeline_mode<synchronous>, transform_indices = @transform_20, window_bounds = array<i64: 1, 128>}, {transform_indices = @transform_21, window_bounds = array<i64: 2, 16, 128>}]} {
    %c0 = arith.constant 0 : index
    %c0_0 = arith.constant 0 : index
    %0 = vector.load %arg3[%c0, %c0_0] : memref<1x32xf32, #tpu.memory_space<vmem>>, vector<1x32xf32>
    %c0_1 = arith.constant 0 : index
    %c0_2 = arith.constant 0 : index
    %1 = vector.load %arg4[%c0_1, %c0_2] : memref<16x32xf32, #tpu.memory_space<vmem>>, vector<16x32xf32>
    %c0_3 = arith.constant 0 : index
    %c0_4 = arith.constant 0 : index
    %2 = vector.load %arg5[%c0_3, %c0_4] : memref<32x32xf32, #tpu.memory_space<vmem>>, vector<32x32xf32>
    %c0_5 = arith.constant 0 : index
    %c0_6 = arith.constant 0 : index
    %c0_7 = arith.constant 0 : index
    %3 = vector.load %arg2[%c0_5, %c0_6, %c0_7] : memref<2x16x1xf32, #tpu.memory_space<vmem>>, vector<1x16x1xf32>
    %4 = vector.shape_cast %3 : vector<1x16x1xf32> to vector<16x1xf32>
    %cst = arith.constant 5.000000e-01 : f32
    %5 = vector.broadcast %cst : f32 to vector<16x1xf32>
    %6 = arith.cmpf ogt, %4, %5 : vector<16x1xf32>
    %c0_8 = arith.constant 0 : index
    %c0_9 = arith.constant 0 : index
    %c0_10 = arith.constant 0 : index
    %7 = vector.load %arg1[%c0_8, %c0_9, %c0_10] : memref<2x16x32xf32, #tpu.memory_space<vmem>>, vector<1x16x32xf32>
    %8 = vector.shape_cast %7 : vector<1x16x32xf32> to vector<16x32xf32>
    %9 = vector.shape_cast %6 : vector<16x1xi1> to vector<16x1xi1>
    %10 = vector.broadcast %9 : vector<16x1xi1> to vector<16x32xi1>
    %11 = vector.shape_cast %0 : vector<1x32xf32> to vector<1x32xf32>
    %12 = vector.broadcast %11 : vector<1x32xf32> to vector<16x32xf32>
    %13 = arith.select %10, %8, %12 : vector<16x32xi1>, vector<16x32xf32>
    %14 = arith.addf %13, %1 : vector<16x32xf32>
    %c1 = arith.constant 1 : index
    %c0_11 = arith.constant 0 : index
    %c0_12 = arith.constant 0 : index
    %15 = vector.load %arg2[%c1, %c0_11, %c0_12] : memref<2x16x1xf32, #tpu.memory_space<vmem>>, vector<1x16x1xf32>
    %16 = vector.shape_cast %15 : vector<1x16x1xf32> to vector<16x1xf32>
    %cst_13 = arith.constant 5.000000e-01 : f32
    %17 = vector.broadcast %cst_13 : f32 to vector<16x1xf32>
    %18 = arith.cmpf ogt, %16, %17 : vector<16x1xf32>
    %c1_14 = arith.constant 1 : index
    %c0_15 = arith.constant 0 : index
    %c0_16 = arith.constant 0 : index
    %19 = vector.load %arg1[%c1_14, %c0_15, %c0_16] : memref<2x16x32xf32, #tpu.memory_space<vmem>>, vector<1x16x32xf32>
    %20 = vector.shape_cast %19 : vector<1x16x32xf32> to vector<16x32xf32>
    %21 = vector.shape_cast %18 : vector<16x1xi1> to vector<16x1xi1>
    %22 = vector.broadcast %21 : vector<16x1xi1> to vector<16x32xi1>
    %23 = vector.shape_cast %0 : vector<1x32xf32> to vector<1x32xf32>
    %24 = vector.broadcast %23 : vector<1x32xf32> to vector<16x32xf32>
    %25 = arith.select %22, %20, %24 : vector<16x32xi1>, vector<16x32xf32>
    %26 = arith.addf %25, %1 : vector<16x32xf32>
    %27 = tpu.concatenate %14, %26 in 0 : vector<16x32xf32>, vector<16x32xf32> -> vector<32x32xf32>
    %28 = arith.truncf %27 : vector<32x32xf32> to vector<32x32xbf16>
    %c0_17 = arith.constant 0 : index
    %c0_18 = arith.constant 0 : index
    %c0_19 = arith.constant 0 : index
    %29 = vector.load %arg6[%c0_17, %c0_18, %c0_19] : memref<2x32x96xbf16, #tpu.memory_space<vmem>>, vector<1x32x96xbf16>
    %30 = vector.shape_cast %29 : vector<1x32x96xbf16> to vector<32x96xbf16>
    %cst_20 = arith.constant dense<0.000000e+00> : vector<32x96xf32>
    %31 = tpu.matmul %28, %30, %cst_20 {dimension_numbers = #tpu.dot_dimension_numbers<[1], [0], [0], [1], [0, 0, 1, 1], [], []>} : vector<32x32xbf16>, vector<32x96xbf16>, vector<32x96xf32> -> vector<32x96xf32>
    %c0_21 = arith.constant 0 : index
    %c0_22 = arith.constant 0 : index
    %c0_23 = arith.constant 0 : index
    %32 = vector.load %arg7[%c0_21, %c0_22, %c0_23] : memref<2x1x96xf32, #tpu.memory_space<vmem>>, vector<1x1x96xf32>
    %33 = vector.shape_cast %32 : vector<1x1x96xf32> to vector<1x96xf32>
    %34 = vector.broadcast %33 : vector<1x96xf32> to vector<32x96xf32>
    %35 = arith.addf %31, %34 : vector<32x96xf32>
    %36 = vector.extract_strided_slice %35 {offsets = [0, 0], sizes = [32, 32], strides = [1, 1]} : vector<32x96xf32> to vector<32x32xf32>
    %cst_24 = arith.constant 0.353553385 : f32
    %37 = vector.broadcast %cst_24 : f32 to vector<32x32xf32>
    %38 = arith.mulf %36, %37 : vector<32x32xf32>
    %39 = vector.extract_strided_slice %35 {offsets = [0, 32], sizes = [32, 32], strides = [1, 1]} : vector<32x96xf32> to vector<32x32xf32>
    %40 = vector.extract_strided_slice %35 {offsets = [0, 64], sizes = [32, 32], strides = [1, 1]} : vector<32x96xf32> to vector<32x32xf32>
    %41 = vector.extract_strided_slice %38 {offsets = [0, 0], sizes = [16, 32], strides = [1, 1]} : vector<32x32xf32> to vector<16x32xf32>
    %42 = vector.extract_strided_slice %38 {offsets = [16, 0], sizes = [16, 32], strides = [1, 1]} : vector<32x32xf32> to vector<16x32xf32>
    %43 = vector.extract_strided_slice %39 {offsets = [0, 0], sizes = [16, 32], strides = [1, 1]} : vector<32x32xf32> to vector<16x32xf32>
    %44 = vector.extract_strided_slice %39 {offsets = [16, 0], sizes = [16, 32], strides = [1, 1]} : vector<32x32xf32> to vector<16x32xf32>
    %45 = vector.extract_strided_slice %40 {offsets = [0, 0], sizes = [16, 32], strides = [1, 1]} : vector<32x32xf32> to vector<16x32xf32>
    %46 = vector.extract_strided_slice %40 {offsets = [16, 0], sizes = [16, 32], strides = [1, 1]} : vector<32x32xf32> to vector<16x32xf32>
    %47 = arith.mulf %41, %43 : vector<16x32xf32>
    %cst_25 = arith.constant dense<0.000000e+00> : vector<16x32xf32>
    %48 = tpu.matmul %47, %2, %cst_25 {dimension_numbers = #tpu.dot_dimension_numbers<[1], [0], [0], [1], [0, 0, 1, 1], [], []>} : vector<16x32xf32>, vector<32x32xf32>, vector<16x32xf32> -> vector<16x32xf32>
    %49 = arith.mulf %41, %44 : vector<16x32xf32>
    %cst_26 = arith.constant dense<0.000000e+00> : vector<16x32xf32>
    %50 = tpu.matmul %49, %2, %cst_26 {dimension_numbers = #tpu.dot_dimension_numbers<[1], [0], [0], [1], [0, 0, 1, 1], [], []>} : vector<16x32xf32>, vector<32x32xf32>, vector<16x32xf32> -> vector<16x32xf32>
    %51 = arith.maximumf %48, %50 : vector<16x32xf32>
    %52 = arith.subf %48, %51 : vector<16x32xf32>
    %53 = math.exp %52 : vector<16x32xf32>
    %54 = arith.subf %50, %51 : vector<16x32xf32>
    %55 = math.exp %54 : vector<16x32xf32>
    %56 = arith.addf %53, %55 : vector<16x32xf32>
    %57 = tpu.reciprocal %56 {approx = true} : vector<16x32xf32> -> vector<16x32xf32>
    %58 = arith.mulf %53, %57 : vector<16x32xf32>
    %59 = arith.mulf %58, %45 : vector<16x32xf32>
    %60 = arith.mulf %55, %57 : vector<16x32xf32>
    %61 = arith.mulf %60, %46 : vector<16x32xf32>
    %62 = arith.addf %59, %61 : vector<16x32xf32>
    %63 = arith.mulf %42, %43 : vector<16x32xf32>
    %cst_27 = arith.constant dense<0.000000e+00> : vector<16x32xf32>
    %64 = tpu.matmul %63, %2, %cst_27 {dimension_numbers = #tpu.dot_dimension_numbers<[1], [0], [0], [1], [0, 0, 1, 1], [], []>} : vector<16x32xf32>, vector<32x32xf32>, vector<16x32xf32> -> vector<16x32xf32>
    %65 = arith.mulf %42, %44 : vector<16x32xf32>
    %cst_28 = arith.constant dense<0.000000e+00> : vector<16x32xf32>
    %66 = tpu.matmul %65, %2, %cst_28 {dimension_numbers = #tpu.dot_dimension_numbers<[1], [0], [0], [1], [0, 0, 1, 1], [], []>} : vector<16x32xf32>, vector<32x32xf32>, vector<16x32xf32> -> vector<16x32xf32>
    %67 = arith.maximumf %64, %66 : vector<16x32xf32>
    %68 = arith.subf %64, %67 : vector<16x32xf32>
    %69 = math.exp %68 : vector<16x32xf32>
    %70 = arith.subf %66, %67 : vector<16x32xf32>
    %71 = math.exp %70 : vector<16x32xf32>
    %72 = arith.addf %69, %71 : vector<16x32xf32>
    %73 = tpu.reciprocal %72 {approx = true} : vector<16x32xf32> -> vector<16x32xf32>
    %74 = arith.mulf %69, %73 : vector<16x32xf32>
    %75 = arith.mulf %74, %45 : vector<16x32xf32>
    %76 = arith.mulf %71, %73 : vector<16x32xf32>
    %77 = arith.mulf %76, %46 : vector<16x32xf32>
    %78 = arith.addf %75, %77 : vector<16x32xf32>
    %79 = tpu.concatenate %62, %78 in 0 : vector<16x32xf32>, vector<16x32xf32> -> vector<32x32xf32>
    %80 = arith.truncf %79 : vector<32x32xf32> to vector<32x32xbf16>
    %c0_29 = arith.constant 0 : index
    %c0_30 = arith.constant 0 : index
    %c0_31 = arith.constant 0 : index
    %81 = vector.load %arg8[%c0_29, %c0_30, %c0_31] : memref<2x32x32xbf16, #tpu.memory_space<vmem>>, vector<1x32x32xbf16>
    %82 = vector.shape_cast %81 : vector<1x32x32xbf16> to vector<32x32xbf16>
    %cst_32 = arith.constant dense<0.000000e+00> : vector<32x32xf32>
    %83 = tpu.matmul %80, %82, %cst_32 {dimension_numbers = #tpu.dot_dimension_numbers<[1], [0], [0], [1], [0, 0, 1, 1], [], []>} : vector<32x32xbf16>, vector<32x32xbf16>, vector<32x32xf32> -> vector<32x32xf32>
    %c0_33 = arith.constant 0 : index
    %c0_34 = arith.constant 0 : index
    %c0_35 = arith.constant 0 : index
    %84 = vector.load %arg9[%c0_33, %c0_34, %c0_35] : memref<2x1x32xf32, #tpu.memory_space<vmem>>, vector<1x1x32xf32>
    %85 = vector.shape_cast %84 : vector<1x1x32xf32> to vector<1x32xf32>
    %86 = vector.broadcast %85 : vector<1x32xf32> to vector<32x32xf32>
    %87 = arith.addf %83, %86 : vector<32x32xf32>
    %88 = arith.addf %27, %87 : vector<32x32xf32>
    %c0_36 = arith.constant 0 : index
    %c0_37 = arith.constant 0 : index
    %c0_38 = arith.constant 0 : index
    %89 = vector.load %arg10[%c0_36, %c0_37, %c0_38] : memref<2x1x32xf32, #tpu.memory_space<vmem>>, vector<1x1x32xf32>
    %90 = vector.shape_cast %89 : vector<1x1x32xf32> to vector<1x32xf32>
    %c0_39 = arith.constant 0 : index
    %c0_40 = arith.constant 0 : index
    %c0_41 = arith.constant 0 : index
    %91 = vector.load %arg11[%c0_39, %c0_40, %c0_41] : memref<2x1x32xf32, #tpu.memory_space<vmem>>, vector<1x1x32xf32>
    %92 = vector.shape_cast %91 : vector<1x1x32xf32> to vector<1x32xf32>
    %cst_42 = arith.constant dense<0.000000e+00> : vector<32xf32>
    %93 = vector.multi_reduction <add>, %88, %cst_42 [1] : vector<32x32xf32> to vector<32xf32>
    %94 = vector.shape_cast %93 : vector<32xf32> to vector<32x1xf32>
    %cst_43 = arith.constant 3.200000e+01 : f32
    %95 = vector.broadcast %cst_43 : f32 to vector<32x1xf32>
    %96 = arith.divf %94, %95 : vector<32x1xf32>
    %97 = vector.broadcast %96 : vector<32x1xf32> to vector<32x32xf32>
    %98 = arith.subf %88, %97 : vector<32x32xf32>
    %99 = arith.mulf %98, %98 : vector<32x32xf32>
    %cst_44 = arith.constant dense<0.000000e+00> : vector<32xf32>
    %100 = vector.multi_reduction <add>, %99, %cst_44 [1] : vector<32x32xf32> to vector<32xf32>
    %101 = vector.shape_cast %100 : vector<32xf32> to vector<32x1xf32>
    %cst_45 = arith.constant 3.200000e+01 : f32
    %102 = vector.broadcast %cst_45 : f32 to vector<32x1xf32>
    %103 = arith.divf %101, %102 : vector<32x1xf32>
    %cst_46 = arith.constant 9.99999974E-6 : f32
    %104 = vector.broadcast %cst_46 : f32 to vector<32x1xf32>
    %105 = arith.addf %103, %104 : vector<32x1xf32>
    %106 = math.rsqrt %105 : vector<32x1xf32>
    %107 = vector.broadcast %106 : vector<32x1xf32> to vector<32x32xf32>
    %108 = arith.mulf %98, %107 : vector<32x32xf32>
    %109 = vector.broadcast %90 : vector<1x32xf32> to vector<32x32xf32>
    %110 = arith.mulf %108, %109 : vector<32x32xf32>
    %111 = vector.broadcast %92 : vector<1x32xf32> to vector<32x32xf32>
    %112 = arith.addf %110, %111 : vector<32x32xf32>
    %113 = arith.truncf %112 : vector<32x32xf32> to vector<32x32xbf16>
    %c0_47 = arith.constant 0 : index
    %c0_48 = arith.constant 0 : index
    %c0_49 = arith.constant 0 : index
    %114 = vector.load %arg12[%c0_47, %c0_48, %c0_49] : memref<2x32x2048xbf16, #tpu.memory_space<vmem>>, vector<1x32x2048xbf16>
    %115 = vector.shape_cast %114 : vector<1x32x2048xbf16> to vector<32x2048xbf16>
    %cst_50 = arith.constant dense<0.000000e+00> : vector<32x2048xf32>
    %116 = tpu.matmul %113, %115, %cst_50 {dimension_numbers = #tpu.dot_dimension_numbers<[1], [0], [0], [1], [0, 0, 1, 1], [], []>} : vector<32x32xbf16>, vector<32x2048xbf16>, vector<32x2048xf32> -> vector<32x2048xf32>
    %c0_51 = arith.constant 0 : index
    %c0_52 = arith.constant 0 : index
    %c0_53 = arith.constant 0 : index
    %117 = vector.load %arg13[%c0_51, %c0_52, %c0_53] : memref<2x1x2048xf32, #tpu.memory_space<vmem>>, vector<1x1x2048xf32>
    %118 = vector.shape_cast %117 : vector<1x1x2048xf32> to vector<1x2048xf32>
    %119 = vector.broadcast %118 : vector<1x2048xf32> to vector<32x2048xf32>
    %120 = arith.addf %116, %119 : vector<32x2048xf32>
    %cst_54 = arith.constant 0.000000e+00 : f32
    %121 = vector.broadcast %cst_54 : f32 to vector<32x2048xf32>
    %122 = arith.maximumf %120, %121 : vector<32x2048xf32>
    %123 = arith.truncf %122 : vector<32x2048xf32> to vector<32x2048xbf16>
    %c0_55 = arith.constant 0 : index
    %c0_56 = arith.constant 0 : index
    %c0_57 = arith.constant 0 : index
    %124 = vector.load %arg14[%c0_55, %c0_56, %c0_57] : memref<2x2048x32xbf16, #tpu.memory_space<vmem>>, vector<1x2048x32xbf16>
    %125 = vector.shape_cast %124 : vector<1x2048x32xbf16> to vector<2048x32xbf16>
    %cst_58 = arith.constant dense<0.000000e+00> : vector<32x32xf32>
    %126 = tpu.matmul %123, %125, %cst_58 {dimension_numbers = #tpu.dot_dimension_numbers<[1], [0], [0], [1], [0, 0, 1, 1], [], []>} : vector<32x2048xbf16>, vector<2048x32xbf16>, vector<32x32xf32> -> vector<32x32xf32>
    %c0_59 = arith.constant 0 : index
    %c0_60 = arith.constant 0 : index
    %c0_61 = arith.constant 0 : index
    %127 = vector.load %arg15[%c0_59, %c0_60, %c0_61] : memref<2x1x32xf32, #tpu.memory_space<vmem>>, vector<1x1x32xf32>
    %128 = vector.shape_cast %127 : vector<1x1x32xf32> to vector<1x32xf32>
    %129 = vector.broadcast %128 : vector<1x32xf32> to vector<32x32xf32>
    %130 = arith.addf %126, %129 : vector<32x32xf32>
    %131 = arith.addf %112, %130 : vector<32x32xf32>
    %c0_62 = arith.constant 0 : index
    %c0_63 = arith.constant 0 : index
    %c0_64 = arith.constant 0 : index
    %132 = vector.load %arg16[%c0_62, %c0_63, %c0_64] : memref<2x1x32xf32, #tpu.memory_space<vmem>>, vector<1x1x32xf32>
    %133 = vector.shape_cast %132 : vector<1x1x32xf32> to vector<1x32xf32>
    %c0_65 = arith.constant 0 : index
    %c0_66 = arith.constant 0 : index
    %c0_67 = arith.constant 0 : index
    %134 = vector.load %arg17[%c0_65, %c0_66, %c0_67] : memref<2x1x32xf32, #tpu.memory_space<vmem>>, vector<1x1x32xf32>
    %135 = vector.shape_cast %134 : vector<1x1x32xf32> to vector<1x32xf32>
    %cst_68 = arith.constant dense<0.000000e+00> : vector<32xf32>
    %136 = vector.multi_reduction <add>, %131, %cst_68 [1] : vector<32x32xf32> to vector<32xf32>
    %137 = vector.shape_cast %136 : vector<32xf32> to vector<32x1xf32>
    %cst_69 = arith.constant 3.200000e+01 : f32
    %138 = vector.broadcast %cst_69 : f32 to vector<32x1xf32>
    %139 = arith.divf %137, %138 : vector<32x1xf32>
    %140 = vector.broadcast %139 : vector<32x1xf32> to vector<32x32xf32>
    %141 = arith.subf %131, %140 : vector<32x32xf32>
    %142 = arith.mulf %141, %141 : vector<32x32xf32>
    %cst_70 = arith.constant dense<0.000000e+00> : vector<32xf32>
    %143 = vector.multi_reduction <add>, %142, %cst_70 [1] : vector<32x32xf32> to vector<32xf32>
    %144 = vector.shape_cast %143 : vector<32xf32> to vector<32x1xf32>
    %cst_71 = arith.constant 3.200000e+01 : f32
    %145 = vector.broadcast %cst_71 : f32 to vector<32x1xf32>
    %146 = arith.divf %144, %145 : vector<32x1xf32>
    %cst_72 = arith.constant 9.99999974E-6 : f32
    %147 = vector.broadcast %cst_72 : f32 to vector<32x1xf32>
    %148 = arith.addf %146, %147 : vector<32x1xf32>
    %149 = math.rsqrt %148 : vector<32x1xf32>
    %150 = vector.broadcast %149 : vector<32x1xf32> to vector<32x32xf32>
    %151 = arith.mulf %141, %150 : vector<32x32xf32>
    %152 = vector.broadcast %133 : vector<1x32xf32> to vector<32x32xf32>
    %153 = arith.mulf %151, %152 : vector<32x32xf32>
    %154 = vector.broadcast %135 : vector<1x32xf32> to vector<32x32xf32>
    %155 = arith.addf %153, %154 : vector<32x32xf32>
    %156 = arith.truncf %155 : vector<32x32xf32> to vector<32x32xbf16>
    %c1_73 = arith.constant 1 : index
    %c0_74 = arith.constant 0 : index
    %c0_75 = arith.constant 0 : index
    %157 = vector.load %arg6[%c1_73, %c0_74, %c0_75] : memref<2x32x96xbf16, #tpu.memory_space<vmem>>, vector<1x32x96xbf16>
    %158 = vector.shape_cast %157 : vector<1x32x96xbf16> to vector<32x96xbf16>
    %cst_76 = arith.constant dense<0.000000e+00> : vector<32x96xf32>
    %159 = tpu.matmul %156, %158, %cst_76 {dimension_numbers = #tpu.dot_dimension_numbers<[1], [0], [0], [1], [0, 0, 1, 1], [], []>} : vector<32x32xbf16>, vector<32x96xbf16>, vector<32x96xf32> -> vector<32x96xf32>
    %c1_77 = arith.constant 1 : index
    %c0_78 = arith.constant 0 : index
    %c0_79 = arith.constant 0 : index
    %160 = vector.load %arg7[%c1_77, %c0_78, %c0_79] : memref<2x1x96xf32, #tpu.memory_space<vmem>>, vector<1x1x96xf32>
    %161 = vector.shape_cast %160 : vector<1x1x96xf32> to vector<1x96xf32>
    %162 = vector.broadcast %161 : vector<1x96xf32> to vector<32x96xf32>
    %163 = arith.addf %159, %162 : vector<32x96xf32>
    %164 = vector.extract_strided_slice %163 {offsets = [0, 0], sizes = [32, 32], strides = [1, 1]} : vector<32x96xf32> to vector<32x32xf32>
    %cst_80 = arith.constant 0.353553385 : f32
    %165 = vector.broadcast %cst_80 : f32 to vector<32x32xf32>
    %166 = arith.mulf %164, %165 : vector<32x32xf32>
    %167 = vector.extract_strided_slice %163 {offsets = [0, 32], sizes = [32, 32], strides = [1, 1]} : vector<32x96xf32> to vector<32x32xf32>
    %168 = vector.extract_strided_slice %163 {offsets = [0, 64], sizes = [32, 32], strides = [1, 1]} : vector<32x96xf32> to vector<32x32xf32>
    %169 = vector.extract_strided_slice %166 {offsets = [0, 0], sizes = [16, 32], strides = [1, 1]} : vector<32x32xf32> to vector<16x32xf32>
    %170 = vector.extract_strided_slice %166 {offsets = [16, 0], sizes = [16, 32], strides = [1, 1]} : vector<32x32xf32> to vector<16x32xf32>
    %171 = vector.extract_strided_slice %167 {offsets = [0, 0], sizes = [16, 32], strides = [1, 1]} : vector<32x32xf32> to vector<16x32xf32>
    %172 = vector.extract_strided_slice %167 {offsets = [16, 0], sizes = [16, 32], strides = [1, 1]} : vector<32x32xf32> to vector<16x32xf32>
    %173 = vector.extract_strided_slice %168 {offsets = [0, 0], sizes = [16, 32], strides = [1, 1]} : vector<32x32xf32> to vector<16x32xf32>
    %174 = vector.extract_strided_slice %168 {offsets = [16, 0], sizes = [16, 32], strides = [1, 1]} : vector<32x32xf32> to vector<16x32xf32>
    %175 = arith.mulf %169, %171 : vector<16x32xf32>
    %cst_81 = arith.constant dense<0.000000e+00> : vector<16x32xf32>
    %176 = tpu.matmul %175, %2, %cst_81 {dimension_numbers = #tpu.dot_dimension_numbers<[1], [0], [0], [1], [0, 0, 1, 1], [], []>} : vector<16x32xf32>, vector<32x32xf32>, vector<16x32xf32> -> vector<16x32xf32>
    %177 = arith.mulf %169, %172 : vector<16x32xf32>
    %cst_82 = arith.constant dense<0.000000e+00> : vector<16x32xf32>
    %178 = tpu.matmul %177, %2, %cst_82 {dimension_numbers = #tpu.dot_dimension_numbers<[1], [0], [0], [1], [0, 0, 1, 1], [], []>} : vector<16x32xf32>, vector<32x32xf32>, vector<16x32xf32> -> vector<16x32xf32>
    %179 = arith.maximumf %176, %178 : vector<16x32xf32>
    %180 = arith.subf %176, %179 : vector<16x32xf32>
    %181 = math.exp %180 : vector<16x32xf32>
    %182 = arith.subf %178, %179 : vector<16x32xf32>
    %183 = math.exp %182 : vector<16x32xf32>
    %184 = arith.addf %181, %183 : vector<16x32xf32>
    %185 = tpu.reciprocal %184 {approx = true} : vector<16x32xf32> -> vector<16x32xf32>
    %186 = arith.mulf %181, %185 : vector<16x32xf32>
    %187 = arith.mulf %186, %173 : vector<16x32xf32>
    %188 = arith.mulf %183, %185 : vector<16x32xf32>
    %189 = arith.mulf %188, %174 : vector<16x32xf32>
    %190 = arith.addf %187, %189 : vector<16x32xf32>
    %191 = arith.mulf %170, %171 : vector<16x32xf32>
    %cst_83 = arith.constant dense<0.000000e+00> : vector<16x32xf32>
    %192 = tpu.matmul %191, %2, %cst_83 {dimension_numbers = #tpu.dot_dimension_numbers<[1], [0], [0], [1], [0, 0, 1, 1], [], []>} : vector<16x32xf32>, vector<32x32xf32>, vector<16x32xf32> -> vector<16x32xf32>
    %193 = arith.mulf %170, %172 : vector<16x32xf32>
    %cst_84 = arith.constant dense<0.000000e+00> : vector<16x32xf32>
    %194 = tpu.matmul %193, %2, %cst_84 {dimension_numbers = #tpu.dot_dimension_numbers<[1], [0], [0], [1], [0, 0, 1, 1], [], []>} : vector<16x32xf32>, vector<32x32xf32>, vector<16x32xf32> -> vector<16x32xf32>
    %195 = arith.maximumf %192, %194 : vector<16x32xf32>
    %196 = arith.subf %192, %195 : vector<16x32xf32>
    %197 = math.exp %196 : vector<16x32xf32>
    %198 = arith.subf %194, %195 : vector<16x32xf32>
    %199 = math.exp %198 : vector<16x32xf32>
    %200 = arith.addf %197, %199 : vector<16x32xf32>
    %201 = tpu.reciprocal %200 {approx = true} : vector<16x32xf32> -> vector<16x32xf32>
    %202 = arith.mulf %197, %201 : vector<16x32xf32>
    %203 = arith.mulf %202, %173 : vector<16x32xf32>
    %204 = arith.mulf %199, %201 : vector<16x32xf32>
    %205 = arith.mulf %204, %174 : vector<16x32xf32>
    %206 = arith.addf %203, %205 : vector<16x32xf32>
    %207 = tpu.concatenate %190, %206 in 0 : vector<16x32xf32>, vector<16x32xf32> -> vector<32x32xf32>
    %208 = arith.truncf %207 : vector<32x32xf32> to vector<32x32xbf16>
    %c1_85 = arith.constant 1 : index
    %c0_86 = arith.constant 0 : index
    %c0_87 = arith.constant 0 : index
    %209 = vector.load %arg8[%c1_85, %c0_86, %c0_87] : memref<2x32x32xbf16, #tpu.memory_space<vmem>>, vector<1x32x32xbf16>
    %210 = vector.shape_cast %209 : vector<1x32x32xbf16> to vector<32x32xbf16>
    %cst_88 = arith.constant dense<0.000000e+00> : vector<32x32xf32>
    %211 = tpu.matmul %208, %210, %cst_88 {dimension_numbers = #tpu.dot_dimension_numbers<[1], [0], [0], [1], [0, 0, 1, 1], [], []>} : vector<32x32xbf16>, vector<32x32xbf16>, vector<32x32xf32> -> vector<32x32xf32>
    %c1_89 = arith.constant 1 : index
    %c0_90 = arith.constant 0 : index
    %c0_91 = arith.constant 0 : index
    %212 = vector.load %arg9[%c1_89, %c0_90, %c0_91] : memref<2x1x32xf32, #tpu.memory_space<vmem>>, vector<1x1x32xf32>
    %213 = vector.shape_cast %212 : vector<1x1x32xf32> to vector<1x32xf32>
    %214 = vector.broadcast %213 : vector<1x32xf32> to vector<32x32xf32>
    %215 = arith.addf %211, %214 : vector<32x32xf32>
    %216 = arith.addf %155, %215 : vector<32x32xf32>
    %c1_92 = arith.constant 1 : index
    %c0_93 = arith.constant 0 : index
    %c0_94 = arith.constant 0 : index
    %217 = vector.load %arg10[%c1_92, %c0_93, %c0_94] : memref<2x1x32xf32, #tpu.memory_space<vmem>>, vector<1x1x32xf32>
    %218 = vector.shape_cast %217 : vector<1x1x32xf32> to vector<1x32xf32>
    %c1_95 = arith.constant 1 : index
    %c0_96 = arith.constant 0 : index
    %c0_97 = arith.constant 0 : index
    %219 = vector.load %arg11[%c1_95, %c0_96, %c0_97] : memref<2x1x32xf32, #tpu.memory_space<vmem>>, vector<1x1x32xf32>
    %220 = vector.shape_cast %219 : vector<1x1x32xf32> to vector<1x32xf32>
    %cst_98 = arith.constant dense<0.000000e+00> : vector<32xf32>
    %221 = vector.multi_reduction <add>, %216, %cst_98 [1] : vector<32x32xf32> to vector<32xf32>
    %222 = vector.shape_cast %221 : vector<32xf32> to vector<32x1xf32>
    %cst_99 = arith.constant 3.200000e+01 : f32
    %223 = vector.broadcast %cst_99 : f32 to vector<32x1xf32>
    %224 = arith.divf %222, %223 : vector<32x1xf32>
    %225 = vector.broadcast %224 : vector<32x1xf32> to vector<32x32xf32>
    %226 = arith.subf %216, %225 : vector<32x32xf32>
    %227 = arith.mulf %226, %226 : vector<32x32xf32>
    %cst_100 = arith.constant dense<0.000000e+00> : vector<32xf32>
    %228 = vector.multi_reduction <add>, %227, %cst_100 [1] : vector<32x32xf32> to vector<32xf32>
    %229 = vector.shape_cast %228 : vector<32xf32> to vector<32x1xf32>
    %cst_101 = arith.constant 3.200000e+01 : f32
    %230 = vector.broadcast %cst_101 : f32 to vector<32x1xf32>
    %231 = arith.divf %229, %230 : vector<32x1xf32>
    %cst_102 = arith.constant 9.99999974E-6 : f32
    %232 = vector.broadcast %cst_102 : f32 to vector<32x1xf32>
    %233 = arith.addf %231, %232 : vector<32x1xf32>
    %234 = math.rsqrt %233 : vector<32x1xf32>
    %235 = vector.broadcast %234 : vector<32x1xf32> to vector<32x32xf32>
    %236 = arith.mulf %226, %235 : vector<32x32xf32>
    %237 = vector.broadcast %218 : vector<1x32xf32> to vector<32x32xf32>
    %238 = arith.mulf %236, %237 : vector<32x32xf32>
    %239 = vector.broadcast %220 : vector<1x32xf32> to vector<32x32xf32>
    %240 = arith.addf %238, %239 : vector<32x32xf32>
    %241 = arith.truncf %240 : vector<32x32xf32> to vector<32x32xbf16>
    %c1_103 = arith.constant 1 : index
    %c0_104 = arith.constant 0 : index
    %c0_105 = arith.constant 0 : index
    %242 = vector.load %arg12[%c1_103, %c0_104, %c0_105] : memref<2x32x2048xbf16, #tpu.memory_space<vmem>>, vector<1x32x2048xbf16>
    %243 = vector.shape_cast %242 : vector<1x32x2048xbf16> to vector<32x2048xbf16>
    %cst_106 = arith.constant dense<0.000000e+00> : vector<32x2048xf32>
    %244 = tpu.matmul %241, %243, %cst_106 {dimension_numbers = #tpu.dot_dimension_numbers<[1], [0], [0], [1], [0, 0, 1, 1], [], []>} : vector<32x32xbf16>, vector<32x2048xbf16>, vector<32x2048xf32> -> vector<32x2048xf32>
    %c1_107 = arith.constant 1 : index
    %c0_108 = arith.constant 0 : index
    %c0_109 = arith.constant 0 : index
    %245 = vector.load %arg13[%c1_107, %c0_108, %c0_109] : memref<2x1x2048xf32, #tpu.memory_space<vmem>>, vector<1x1x2048xf32>
    %246 = vector.shape_cast %245 : vector<1x1x2048xf32> to vector<1x2048xf32>
    %247 = vector.broadcast %246 : vector<1x2048xf32> to vector<32x2048xf32>
    %248 = arith.addf %244, %247 : vector<32x2048xf32>
    %cst_110 = arith.constant 0.000000e+00 : f32
    %249 = vector.broadcast %cst_110 : f32 to vector<32x2048xf32>
    %250 = arith.maximumf %248, %249 : vector<32x2048xf32>
    %251 = arith.truncf %250 : vector<32x2048xf32> to vector<32x2048xbf16>
    %c1_111 = arith.constant 1 : index
    %c0_112 = arith.constant 0 : index
    %c0_113 = arith.constant 0 : index
    %252 = vector.load %arg14[%c1_111, %c0_112, %c0_113] : memref<2x2048x32xbf16, #tpu.memory_space<vmem>>, vector<1x2048x32xbf16>
    %253 = vector.shape_cast %252 : vector<1x2048x32xbf16> to vector<2048x32xbf16>
    %cst_114 = arith.constant dense<0.000000e+00> : vector<32x32xf32>
    %254 = tpu.matmul %251, %253, %cst_114 {dimension_numbers = #tpu.dot_dimension_numbers<[1], [0], [0], [1], [0, 0, 1, 1], [], []>} : vector<32x2048xbf16>, vector<2048x32xbf16>, vector<32x32xf32> -> vector<32x32xf32>
    %c1_115 = arith.constant 1 : index
    %c0_116 = arith.constant 0 : index
    %c0_117 = arith.constant 0 : index
    %255 = vector.load %arg15[%c1_115, %c0_116, %c0_117] : memref<2x1x32xf32, #tpu.memory_space<vmem>>, vector<1x1x32xf32>
    %256 = vector.shape_cast %255 : vector<1x1x32xf32> to vector<1x32xf32>
    %257 = vector.broadcast %256 : vector<1x32xf32> to vector<32x32xf32>
    %258 = arith.addf %254, %257 : vector<32x32xf32>
    %259 = arith.addf %240, %258 : vector<32x32xf32>
    %c1_118 = arith.constant 1 : index
    %c0_119 = arith.constant 0 : index
    %c0_120 = arith.constant 0 : index
    %260 = vector.load %arg16[%c1_118, %c0_119, %c0_120] : memref<2x1x32xf32, #tpu.memory_space<vmem>>, vector<1x1x32xf32>
    %261 = vector.shape_cast %260 : vector<1x1x32xf32> to vector<1x32xf32>
    %c1_121 = arith.constant 1 : index
    %c0_122 = arith.constant 0 : index
    %c0_123 = arith.constant 0 : index
    %262 = vector.load %arg17[%c1_121, %c0_122, %c0_123] : memref<2x1x32xf32, #tpu.memory_space<vmem>>, vector<1x1x32xf32>
    %263 = vector.shape_cast %262 : vector<1x1x32xf32> to vector<1x32xf32>
    %cst_124 = arith.constant dense<0.000000e+00> : vector<32xf32>
    %264 = vector.multi_reduction <add>, %259, %cst_124 [1] : vector<32x32xf32> to vector<32xf32>
    %265 = vector.shape_cast %264 : vector<32xf32> to vector<32x1xf32>
    %cst_125 = arith.constant 3.200000e+01 : f32
    %266 = vector.broadcast %cst_125 : f32 to vector<32x1xf32>
    %267 = arith.divf %265, %266 : vector<32x1xf32>
    %268 = vector.broadcast %267 : vector<32x1xf32> to vector<32x32xf32>
    %269 = arith.subf %259, %268 : vector<32x32xf32>
    %270 = arith.mulf %269, %269 : vector<32x32xf32>
    %cst_126 = arith.constant dense<0.000000e+00> : vector<32xf32>
    %271 = vector.multi_reduction <add>, %270, %cst_126 [1] : vector<32x32xf32> to vector<32xf32>
    %272 = vector.shape_cast %271 : vector<32xf32> to vector<32x1xf32>
    %cst_127 = arith.constant 3.200000e+01 : f32
    %273 = vector.broadcast %cst_127 : f32 to vector<32x1xf32>
    %274 = arith.divf %272, %273 : vector<32x1xf32>
    %cst_128 = arith.constant 9.99999974E-6 : f32
    %275 = vector.broadcast %cst_128 : f32 to vector<32x1xf32>
    %276 = arith.addf %274, %275 : vector<32x1xf32>
    %277 = math.rsqrt %276 : vector<32x1xf32>
    %278 = vector.broadcast %277 : vector<32x1xf32> to vector<32x32xf32>
    %279 = arith.mulf %269, %278 : vector<32x32xf32>
    %280 = vector.broadcast %261 : vector<1x32xf32> to vector<32x32xf32>
    %281 = arith.mulf %279, %280 : vector<32x32xf32>
    %282 = vector.broadcast %263 : vector<1x32xf32> to vector<32x32xf32>
    %283 = arith.addf %281, %282 : vector<32x32xf32>
    %284 = arith.truncf %283 : vector<32x32xf32> to vector<32x32xbf16>
    %c0_129 = arith.constant 0 : index
    %c0_130 = arith.constant 0 : index
    %285 = vector.load %arg18[%c0_129, %c0_130] : memref<32x32xbf16, #tpu.memory_space<vmem>>, vector<32x32xbf16>
    %cst_131 = arith.constant dense<0.000000e+00> : vector<32x32xf32>
    %286 = tpu.matmul %284, %285, %cst_131 {dimension_numbers = #tpu.dot_dimension_numbers<[1], [0], [0], [1], [0, 0, 1, 1], [], []>} : vector<32x32xbf16>, vector<32x32xbf16>, vector<32x32xf32> -> vector<32x32xf32>
    %c0_132 = arith.constant 0 : index
    %c0_133 = arith.constant 0 : index
    %287 = vector.load %arg19[%c0_132, %c0_133] : memref<1x32xf32, #tpu.memory_space<vmem>>, vector<1x32xf32>
    %288 = vector.broadcast %287 : vector<1x32xf32> to vector<32x32xf32>
    %289 = arith.addf %286, %288 : vector<32x32xf32>
    %cst_134 = arith.constant 0.000000e+00 : f32
    %290 = vector.broadcast %cst_134 : f32 to vector<32x32xf32>
    %291 = arith.maximumf %289, %290 : vector<32x32xf32>
    %292 = arith.truncf %291 : vector<32x32xf32> to vector<32x32xbf16>
    %c0_135 = arith.constant 0 : index
    %c0_136 = arith.constant 0 : index
    %293 = vector.load %arg20[%c0_135, %c0_136] : memref<32x128xbf16, #tpu.memory_space<vmem>>, vector<32x128xbf16>
    %cst_137 = arith.constant dense<0.000000e+00> : vector<32x128xf32>
    %294 = tpu.matmul %292, %293, %cst_137 {dimension_numbers = #tpu.dot_dimension_numbers<[1], [0], [0], [1], [0, 0, 1, 1], [], []>} : vector<32x32xbf16>, vector<32x128xbf16>, vector<32x128xf32> -> vector<32x128xf32>
    %c0_138 = arith.constant 0 : index
    %c0_139 = arith.constant 0 : index
    %295 = vector.load %arg21[%c0_138, %c0_139] : memref<1x128xf32, #tpu.memory_space<vmem>>, vector<1x128xf32>
    %296 = vector.broadcast %295 : vector<1x128xf32> to vector<32x128xf32>
    %297 = arith.addf %294, %296 : vector<32x128xf32>
    %298 = vector.extract_strided_slice %297 {offsets = [0, 0], sizes = [16, 128], strides = [1, 1]} : vector<32x128xf32> to vector<16x128xf32>
    %c0_140 = arith.constant 0 : index
    %c0_141 = arith.constant 0 : index
    %c0_142 = arith.constant 0 : index
    %299 = vector.load %arg22[%c0_140, %c0_141, %c0_142] : memref<2x16x128xf32, #tpu.memory_space<vmem>>, vector<1x16x128xf32>
    %300 = vector.shape_cast %299 : vector<1x16x128xf32> to vector<16x128xf32>
    %301 = vector.shape_cast %298 : vector<16x128xf32> to vector<1x16x128xf32>
    tpu.vector_store %arg22[%c0_140, %c0_141, %c0_142], %301 {strides = array<i32>} : memref<2x16x128xf32, #tpu.memory_space<vmem>>, vector<1x16x128xf32>,
    %302 = vector.extract_strided_slice %297 {offsets = [16, 0], sizes = [16, 128], strides = [1, 1]} : vector<32x128xf32> to vector<16x128xf32>
    %c1_143 = arith.constant 1 : index
    %c0_144 = arith.constant 0 : index
    %c0_145 = arith.constant 0 : index
    %303 = vector.load %arg22[%c1_143, %c0_144, %c0_145] : memref<2x16x128xf32, #tpu.memory_space<vmem>>, vector<1x16x128xf32>
    %304 = vector.shape_cast %303 : vector<1x16x128xf32> to vector<16x128xf32>
    %305 = vector.shape_cast %302 : vector<16x128xf32> to vector<1x16x128xf32>
    tpu.vector_store %arg22[%c1_143, %c0_144, %c0_145], %305 {strides = array<i32>} : memref<2x16x128xf32, #tpu.memory_space<vmem>>, vector<1x16x128xf32>,
    return
  }
  func.func @transform_0(%arg0: i32) -> (i32, i32, i32) {
    %c0_i32 = arith.constant 0 : i32
    %c0_i32_0 = arith.constant 0 : i32
    %c0_i32_1 = arith.constant 0 : i32
    return %c0_i32, %arg0, %c0_i32_0 : i32, i32, i32
  }
  func.func @transform_1(%arg0: i32) -> (i32, i32, i32) {
    %c0_i32 = arith.constant 0 : i32
    %c0_i32_0 = arith.constant 0 : i32
    %c0_i32_1 = arith.constant 0 : i32
    return %c0_i32, %arg0, %c0_i32_0 : i32, i32, i32
  }
  func.func @transform_2(%arg0: i32) -> (i32, i32) {
    %c0_i32 = arith.constant 0 : i32
    %c0_i32_0 = arith.constant 0 : i32
    %c0_i32_1 = arith.constant 0 : i32
    return %c0_i32, %c0_i32_0 : i32, i32
  }
  func.func @transform_3(%arg0: i32) -> (i32, i32) {
    %c0_i32 = arith.constant 0 : i32
    %c0_i32_0 = arith.constant 0 : i32
    return %arg0, %c0_i32 : i32, i32
  }
  func.func @transform_4(%arg0: i32) -> (i32, i32) {
    %c0_i32 = arith.constant 0 : i32
    %c0_i32_0 = arith.constant 0 : i32
    %c0_i32_1 = arith.constant 0 : i32
    return %c0_i32, %c0_i32_0 : i32, i32
  }
  func.func @transform_5(%arg0: i32) -> (i32, i32, i32) {
    %c0_i32 = arith.constant 0 : i32
    %c0_i32_0 = arith.constant 0 : i32
    %c0_i32_1 = arith.constant 0 : i32
    %c0_i32_2 = arith.constant 0 : i32
    return %c0_i32, %c0_i32_0, %c0_i32_1 : i32, i32, i32
  }
  func.func @transform_6(%arg0: i32) -> (i32, i32, i32) {
    %c0_i32 = arith.constant 0 : i32
    %c0_i32_0 = arith.constant 0 : i32
    %c0_i32_1 = arith.constant 0 : i32
    %c0_i32_2 = arith.constant 0 : i32
    return %c0_i32, %c0_i32_0, %c0_i32_1 : i32, i32, i32
  }
  func.func @transform_7(%arg0: i32) -> (i32, i32, i32) {
    %c0_i32 = arith.constant 0 : i32
    %c0_i32_0 = arith.constant 0 : i32
    %c0_i32_1 = arith.constant 0 : i32
    %c0_i32_2 = arith.constant 0 : i32
    return %c0_i32, %c0_i32_0, %c0_i32_1 : i32, i32, i32
  }
  func.func @transform_8(%arg0: i32) -> (i32, i32, i32) {
    %c0_i32 = arith.constant 0 : i32
    %c0_i32_0 = arith.constant 0 : i32
    %c0_i32_1 = arith.constant 0 : i32
    %c0_i32_2 = arith.constant 0 : i32
    return %c0_i32, %c0_i32_0, %c0_i32_1 : i32, i32, i32
  }
  func.func @transform_9(%arg0: i32) -> (i32, i32, i32) {
    %c0_i32 = arith.constant 0 : i32
    %c0_i32_0 = arith.constant 0 : i32
    %c0_i32_1 = arith.constant 0 : i32
    %c0_i32_2 = arith.constant 0 : i32
    return %c0_i32, %c0_i32_0, %c0_i32_1 : i32, i32, i32
  }
  func.func @transform_10(%arg0: i32) -> (i32, i32, i32) {
    %c0_i32 = arith.constant 0 : i32
    %c0_i32_0 = arith.constant 0 : i32
    %c0_i32_1 = arith.constant 0 : i32
    %c0_i32_2 = arith.constant 0 : i32
    return %c0_i32, %c0_i32_0, %c0_i32_1 : i32, i32, i32
  }
  func.func @transform_11(%arg0: i32) -> (i32, i32, i32) {
    %c0_i32 = arith.constant 0 : i32
    %c0_i32_0 = arith.constant 0 : i32
    %c0_i32_1 = arith.constant 0 : i32
    %c0_i32_2 = arith.constant 0 : i32
    return %c0_i32, %c0_i32_0, %c0_i32_1 : i32, i32, i32
  }
  func.func @transform_12(%arg0: i32) -> (i32, i32, i32) {
    %c0_i32 = arith.constant 0 : i32
    %c0_i32_0 = arith.constant 0 : i32
    %c0_i32_1 = arith.constant 0 : i32
    %c0_i32_2 = arith.constant 0 : i32
    return %c0_i32, %c0_i32_0, %c0_i32_1 : i32, i32, i32
  }
  func.func @transform_13(%arg0: i32) -> (i32, i32, i32) {
    %c0_i32 = arith.constant 0 : i32
    %c0_i32_0 = arith.constant 0 : i32
    %c0_i32_1 = arith.constant 0 : i32
    %c0_i32_2 = arith.constant 0 : i32
    return %c0_i32, %c0_i32_0, %c0_i32_1 : i32, i32, i32
  }
  func.func @transform_14(%arg0: i32) -> (i32, i32, i32) {
    %c0_i32 = arith.constant 0 : i32
    %c0_i32_0 = arith.constant 0 : i32
    %c0_i32_1 = arith.constant 0 : i32
    %c0_i32_2 = arith.constant 0 : i32
    return %c0_i32, %c0_i32_0, %c0_i32_1 : i32, i32, i32
  }
  func.func @transform_15(%arg0: i32) -> (i32, i32, i32) {
    %c0_i32 = arith.constant 0 : i32
    %c0_i32_0 = arith.constant 0 : i32
    %c0_i32_1 = arith.constant 0 : i32
    %c0_i32_2 = arith.constant 0 : i32
    return %c0_i32, %c0_i32_0, %c0_i32_1 : i32, i32, i32
  }
  func.func @transform_16(%arg0: i32) -> (i32, i32, i32) {
    %c0_i32 = arith.constant 0 : i32
    %c0_i32_0 = arith.constant 0 : i32
    %c0_i32_1 = arith.constant 0 : i32
    %c0_i32_2 = arith.constant 0 : i32
    return %c0_i32, %c0_i32_0, %c0_i32_1 : i32, i32, i32
  }
  func.func @transform_17(%arg0: i32) -> (i32, i32) {
    %c0_i32 = arith.constant 0 : i32
    %c0_i32_0 = arith.constant 0 : i32
    %c0_i32_1 = arith.constant 0 : i32
    return %c0_i32, %c0_i32_0 : i32, i32
  }
  func.func @transform_18(%arg0: i32) -> (i32, i32) {
    %c0_i32 = arith.constant 0 : i32
    %c0_i32_0 = arith.constant 0 : i32
    %c0_i32_1 = arith.constant 0 : i32
    return %c0_i32, %c0_i32_0 : i32, i32
  }
  func.func @transform_19(%arg0: i32) -> (i32, i32) {
    %c0_i32 = arith.constant 0 : i32
    %c0_i32_0 = arith.constant 0 : i32
    %c0_i32_1 = arith.constant 0 : i32
    return %c0_i32, %c0_i32_0 : i32, i32
  }
  func.func @transform_20(%arg0: i32) -> (i32, i32) {
    %c0_i32 = arith.constant 0 : i32
    %c0_i32_0 = arith.constant 0 : i32
    %c0_i32_1 = arith.constant 0 : i32
    return %c0_i32, %c0_i32_0 : i32, i32
  }
  func.func @transform_21(%arg0: i32) -> (i32, i32, i32) {
    %c0_i32 = arith.constant 0 : i32
    %c0_i32_0 = arith.constant 0 : i32
    %c0_i32_1 = arith.constant 0 : i32
    return %c0_i32, %arg0, %c0_i32_0 : i32, i32, i32
  }
}

</mosaic_0001>

<bundles_post_ra>
// kernel: forward.1
= control target key start
LH: loop header
LB: loop body
LE: loop exit
PB: predicated region body
PF: predicated region fallthrough
CT: control target
= control target key end

     0   :  { %s9499_s0 = inlined_call_operand.vmem [shape: f32[2,16,32], index: 0, kind: input, shape index: {}]   ;;  %s9500_s1 = inlined_call_operand.vmem [shape: f32[2,16,1], index: 1, kind: input, shape index: {}]   ;;  %s9501_s2 = inlined_call_operand.vmem [shape: f32[1,32], index: 2, kind: input, shape index: {}]   ;;  %s9502_s3 = inlined_call_operand.vmem [shape: f32[16,32], index: 3, kind: input, shape index: {}]   ;;  %s9503_s4 = inlined_call_operand.vmem [shape: f32[32,32], index: 4, kind: input, shape index: {}]   ;;  %s9504_s5 = inlined_call_operand.vmem [shape: bf16[2,32,96], index: 5, kind: input, shape index: {}]   ;;  %s9505_s6 = inlined_call_operand.vmem [shape: f32[2,1,96], index: 6, kind: input, shape index: {}]   ;;  %s9506_s7 = inlined_call_operand.vmem [shape: bf16[2,32,32], index: 7, kind: input, shape index: {}]   ;;  %s9507_s8 = inlined_call_operand.vmem [shape: f32[2,1,32], index: 8, kind: input, shape index: {}]   ;;  %s9508_s9 = inlined_call_operand.vmem [shape: f32[2,1,32], index: 9, kind: input, shape index: {}]   ;;  %s9509_s10 = inlined_call_operand.vmem [shape: f32[2,1,32], index: 10, kind: input, shape index: {}]   ;;  %s9510_s11 = inlined_call_operand.vmem [shape: bf16[2,32,2048], index: 11, kind: input, shape index: {}]   ;;  %s9511_s12 = inlined_call_operand.vmem [shape: f32[2,1,2048], index: 12, kind: input, shape index: {}]   ;;  %s9512_s13 = inlined_call_operand.vmem [shape: bf16[2,2048,32], index: 13, kind: input, shape index: {}]   ;;  %s9513_s14 = inlined_call_operand.vmem [shape: f32[2,1,32], index: 14, kind: input, shape index: {}]   ;;  %s9514_s15 = inlined_call_operand.vmem [shape: f32[2,1,32], index: 15, kind: input, shape index: {}]   ;;  %s9515_s16 = inlined_call_operand.vmem [shape: f32[2,1,32], index: 16, kind: input, shape index: {}]   ;;  %s9516_s17 = inlined_call_operand.vmem [shape: bf16[32,32], index: 17, kind: input, shape index: {}]   ;;  %s9517_s18 = inlined_call_operand.vmem [shape: f32[1,32], index: 18, kind: input, shape index: {}]   ;;  %s9518_s19 = inlined_call_operand.vmem [shape: bf16[32,128], index: 19, kind: input, shape index: {}]   ;;  %s9519_s20 = inlined_call_operand.vmem [shape: f32[1,128], index: 20, kind: input, shape index: {}]   ;;  %s9520_s21 = inlined_call_operand.hbm [shape: f32[2,16,128], index: 21, kind: output, shape index: {}]  }
   0x1   :  { %9526 = sst [smem:[#allocation5_spill]] %s9499_s0 }
   0x2   :  { %9527 = sst [smem:[#allocation6_spill]] %s9500_s1 }
   0x3   :  { %9528 = sst [smem:[#allocation7_spill]] %s9501_s2 }
   0x4   :  { %9529 = sst [smem:[#allocation8_spill]] %s9502_s3 }
   0x5   :  { %9530 = sst [smem:[#allocation9_spill]] %s9503_s4 }
   0x6   :  { %9531 = sst [smem:[#allocation10_spill]] %s9504_s5 }
   0x7   :  { %s9532_s26 = sld [smem:[#allocation6_spill]]  ;;  %v7444_v3 = vmov 0  }
   0x8   :  { %7314 = vset.pattern.permute.xlu1 %v7444_v3  ;;  %7313 = vset.pattern.permute.xlu0 %v7444_v3 }
   0xd   :  { %v5243_v0 = vld [vmem:[%s9532_s26 + $0x10] sm:$0xff]  ;;  %v77_v1 = vld [vmem:[%s9532_s26] sm:$0xff]  ;;  %v5244_v2 = vld [vmem:[%s9532_s26 + $0x18] sm:$0xff] }
   0xe   :  { %vm103_vm0 = vcmp.gt.f32.partialorder %v5243_v0, 0.5  ;;  %vm79_vm1 = vcmp.gt.f32.partialorder %v77_v1, 0.5  ;;  %vm104_vm2 = vcmp.gt.f32.partialorder %v5244_v2, 0.5  ;;  %v78_v4 = vld [vmem:[%s9532_s26 + $0x8] sm:$0xff] }
   0xf   :  { %v108_v5 = vsel %vm103_vm0, 1, %v7444_v3  ;;  %v83_v6 = vsel %vm79_vm1, 1, %v7444_v3  ;;  %vm80_vm3 = vcmp.gt.f32.partialorder %v78_v4, 0.5  ;;  %v109_v7 = vsel %vm104_vm2, 1, %v7444_v3 }
  0x10   :  { %111 = vperm.xlu0 %7313, %v108_v5   ;;  %86 = vperm.xlu1 %7314, %v83_v6   ;;  %v84_v8 = vsel %vm80_vm3, 1, %v7444_v3 }
  0x11   :  { %26 = vsyncpa [#allocation3], 0  ;;  %s9533_s22 = sld [smem:[#allocation10_spill]]  ;;  %vm144_vm8 = vcmask 261120   ;;  %v7316_v34 = vld [vmem:[%s9505_s6] ss:$0 sm:$0xff] }
  0x12   :  { %s9534_s25 = sld [smem:[#allocation7_spill]]  ;;  %s7445_s23 = smov 96   ;;  %v6975_v3 = vld [vmem:[%s9506_s7 + $0x8] sm:$0xff]  ;;  %v6974_v6 = vld [vmem:[%s9506_s7] sm:$0xff] }
  0x13   :  { %s9535_s3 = sld [smem:[#allocation5_spill]]  ;;  %s7446_s1 = smov 64  }
  0x14   :  { %s9536_s24 = sld [smem:[#allocation8_spill]] }
  0x17   :  { %v6973_v9 = vld [vmem:[%s9533_s22 + $0x8] sm:$0xff]  ;;  %v6972_v10 = vld [vmem:[%s9533_s22] sm:$0xff] }
  0x18   :  { %114 = vperm.xlu0 %7313, %v109_v7   ;;  %89 = vperm.xlu1 %7314, %v84_v8   ;;  %v7315_v13 = vld [vmem:[%s9534_s25] ss:$0 sm:$0xff] }
  0x19   :  { %157 = vmatpush.bf16.msra.mxu0 %v6973_v9  ;;  %7304 = vmatpush.bf16.msra.mxu1 %v6973_v9  ;;  %v5245_v14 = vld [vmem:[%s9535_s3 + $0x10] sm:$0xff]  ;;  %v81_v15 = vld [vmem:[%s9535_s3] sm:$0xff]  ;;  %v5246_v16 = vld [vmem:[%s9535_s3 + $0x18] sm:$0xff] }
  0x1a   :  { %v82_v17 = vld [vmem:[%s9535_s3 + $0x8] sm:$0xff]  ;;  %v71_v18 = vld [vmem:[%s9536_s24] sm:$0xff]  ;;  %s9537_s3 = sld [smem:[#allocation9_spill]] }
  0x1b   :  { %v72_v22 = vld [vmem:[%s9536_s24 + $0x8] sm:$0xff] }
  0x1d   :  { %158 = vmatpush.bf16.msra.mxu0 %v6972_v10  ;;  %7305 = vmatpush.bf16.msra.mxu1 %v6972_v10 }
  0x20   :  { %v76_v32 = vld [vmem:[%s9537_s3 + $0x18] sm:$0xff]  ;;  %v75_v33 = vld [vmem:[%s9537_s3 + $0x10] sm:$0xff]  ;;  %v74_v35 = vld [vmem:[%s9537_s3 + $0x8] sm:$0xff] }
  0x21   :  { %241 = vmatpush.msra.mxu2 %v76_v32  ;;  %202 = vmatpush.msrb.mxu1 %v76_v32  ;;  %v73_v44 = vld [vmem:[%s9537_s3] sm:$0xff] }
  0x22   :  { %312 = vmatpush.msra.mxu3 %v76_v32 }
  0x23   :  { %242 = vmatpush.msra.mxu2 %v75_v33  ;;  %203 = vmatpush.msrb.mxu1 %v75_v33 }
  0x24   :  { %313 = vmatpush.msra.mxu3 %v75_v33 }
  0x25   :  { %243 = vmatpush.msra.mxu2 %v74_v35  ;;  %204 = vmatpush.msrb.mxu1 %v74_v35 }
  0x26   :  { %314 = vmatpush.msra.mxu3 %v74_v35 }
  0x27   :  { %244 = vmatpush.msra.mxu2 %v73_v44  ;;  %205 = vmatpush.msrb.mxu1 %v73_v44 }
  0x28   :  { %315 = vmatpush.msra.mxu3 %v73_v44 }
  0x29   :  { %416 = vmatpush.bf16.msrb.mxu2 %v6975_v3 }
  0x2d   :  { %417 = vmatpush.bf16.msrb.mxu2 %v6974_v6 }
  0x82   :  { %v112_v11 = vpop.permute.xlu0 %111  ;;  %v87_v12 = vpop.permute.xlu1 %86 }
  0x83   :  { %vm116_vm4 = vcmp.eq.s32.totalorder %v112_v11, 1  ;;  %vm91_vm5 = vcmp.eq.s32.totalorder %v87_v12, 1 }
  0x84   :  { %v118_v19 = vsel %vm116_vm4, %v5245_v14, %v7315_v13  ;;  %v96_v20 = vsel %vm91_vm5, %v81_v15, %v7315_v13 }
  0x85   :  { %v7600_v26 = vadd.f32 %v118_v19, %v71_v18  ;;  %v7602_v27 = vadd.f32 %v96_v20, %v71_v18 }
  0x8a   :  { %v115_v21 = vpop.permute.xlu0 %114  ;;  %v90_v23 = vpop.permute.xlu1 %89 }
  0x8b   :  { %vm117_vm6 = vcmp.eq.s32.totalorder %v115_v21, 1  ;;  %vm92_vm7 = vcmp.eq.s32.totalorder %v90_v23, 1 }
  0x8c   :  { %v119_v24 = vsel %vm117_vm6, %v5246_v16, %v7315_v13  ;;  %v97_v25 = vsel %vm92_vm7, %v82_v17, %v7315_v13 }
  0x8d   :  { %v7604_v28 = vadd.f32 %v119_v24, %v72_v22  ;;  %v7606_v29 = vadd.f32 %v97_v25, %v72_v22 }
  0x8f   :  { %v122_v30 = vpack.c.bf16 %v7606_v29, %v7602_v27  ;;  %v123_v31 = vpack.c.bf16 %v7604_v28, %v7600_v26 }
  0x91   :  { %5255 = vmatmul.msk.bf16.vlgmr.msra.gmra.mxu0 %vm144_vm8, %v122_v30  ;;  %5256 = vmatmul.msk.bf16.vlgmr.msra.gmra.mxu1 %vm144_vm8, %v123_v31 }
  0x92   :  { %343 = vmatpush.msra.mxu1 %v76_v32 }
  0x94   :  { %344 = vmatpush.msra.mxu1 %v75_v33 }
  0x96   :  { %345 = vmatpush.msra.mxu1 %v74_v35 }
  0x98   :  { %346 = vmatpush.msra.mxu1 %v73_v44 }
 0x10e   :  { %v160_v36 = vpop.f32.mrf.mxu0  ;;  %v165_v37 = vpop.f32.mrf.mxu1 }
 0x10f   :  { %v166_v38 = vadd.f32 %v7316_v34, %v165_v37  ;;  %v161_v43 = vadd.f32 %v7316_v34, %v160_v36 }
 0x111   :  { %215 = vrot.lane.b32.xlu2 %v166_v38, %s7445_s23  ;;  %v170_v45 = vmul.f32 0.35355338, %v161_v43  ;;  %v172_v48 = vmul.f32 0.35355338, %v166_v38 }
 0x116   :  { %v162_v39 = vpop.f32.mrf.mxu0  ;;  %v167_v40 = vpop.f32.mrf.mxu1 }
 0x117   :  { %v163_v41 = vadd.f32 %v7316_v34, %v162_v39  ;;  %v168_v42 = vadd.f32 %v7316_v34, %v167_v40 }
 0x119   :  { %217 = vrot.lane.b32.xlu0 %v168_v42, %s7445_s23  ;;  %178 = vrot.lane.b32.xlu1 %v163_v41, %s7445_s23  ;;  %v171_v52 = vmul.f32 0.35355338, %v163_v41  ;;  %v173_v53 = vmul.f32 0.35355338, %v168_v42 }
 0x11a   :  { %176 = vrot.lane.b32.xlu2 %v161_v43, %s7445_s23 }
 0x121   :  { %274 = vrot.lane.b32.xlu0 %v163_v41, %s7446_s1  ;;  %282 = vrot.lane.b32.xlu1 %v166_v38, %s7446_s1 }
 0x122   :  { %272 = vrot.lane.b32.xlu2 %v161_v43, %s7446_s1 }
 0x12a   :  { %284 = vrot.lane.b32.xlu2 %v168_v42, %s7446_s1 }
 0x16b   :  { %v216_v46 = vpop.permute.xlu2 %215 }
 0x16c   :  { %v221_v47 = vmul.f32 %v216_v46, %v170_v45  ;;  %v323_v59 = vmul.f32 %v216_v46, %v172_v48 }
 0x16e   :  { %5259 = vmatmul.msk.f32.vlgmr.msra.gmra.mxu2 %vm144_vm8, %v221_v47 }
 0x174   :  { %v177_v49 = vpop.permute.xlu2 %176 }
 0x175   :  { %v182_v50 = vmul.f32 %v177_v49, %v170_v45  ;;  %v292_v51 = vmul.f32 %v177_v49, %v172_v48 }
 0x177   :  { %5257 = vmatmul.msk.f32.vlgmr.msrb.gmra.mxu1 %vm144_vm8, %v182_v50  ;;  %5261 = vmatmul.msk.f32.vlgmr.msra.gmra.mxu3 %vm144_vm8, %v292_v51 }
 0x17c   :  { %v273_v34 = vpop.permute.xlu2 %272 }
 0x184   :  { %v285_v51 = vpop.permute.xlu2 %284 }
 0x18b   :  { %v218_v54 = vpop.permute.xlu0 %217  ;;  %v179_v55 = vpop.permute.xlu1 %178 }
 0x18c   :  { %v222_v56 = vmul.f32 %v218_v54, %v171_v52  ;;  %v183_v57 = vmul.f32 %v179_v55, %v171_v52  ;;  %v293_v58 = vmul.f32 %v179_v55, %v173_v53  ;;  %v324_v60 = vmul.f32 %v218_v54, %v173_v53 }
 0x18e   :  { %5258 = vmatmul.msk.f32.gmra.mxu1 %vm144_vm8, %v183_v57  ;;  %5260 = vmatmul.msk.f32.gmra.mxu2 %vm144_vm8, %v222_v56 }
 0x18f   :  { %5262 = vmatmul.msk.f32.gmra.mxu3 %vm144_vm8, %v293_v58 }
 0x193   :  { %v283_v44 = vpop.permute.xlu1 %282  ;;  %v275_v52 = vpop.permute.xlu0 %274 }
 0x196   :  { %5263 = vmatmul.msk.f32.vlgmr.msra.gmra.mxu1 %vm144_vm8, %v323_v59 }
 0x19e   :  { %5264 = vmatmul.msk.f32.gmra.mxu1 %vm144_vm8, %v324_v60 }
 0x1f1   :  { %v246_v62 = vpop.f32.mrf.mxu2 }
 0x1f4   :  { %v207_v61 = vpop.f32.mrf.mxu1 }
 0x1f5   :  { %v252_v63 = vmax.f32 %v207_v61, %v246_v62 }
 0x1f7   :  { %v254_v0 = vsub.f32 %v207_v61, %v252_v63  ;;  %v260_v1 = vsub.f32 %v246_v62, %v252_v63 }
 0x1f9   :  { %v256_v2 = vmul.f32 1.442695, %v254_v0  ;;  %v262_v4 = vmul.f32 1.442695, %v260_v1 }
 0x1fa   :  { %v317_v9 = vpop.f32.mrf.mxu3 }
 0x1fb   :  { %7332 = vpow2.f32 %v256_v2 }
 0x1fc   :  { %7334 = vpow2.f32 %v262_v4 }
 0x201   :  { %v7333_v11 = vpop.eup %7332 }
 0x202   :  { %v7335_v15 = vpop.eup %7334 }
 0x203   :  { %v266_v20 = vadd.f32 %v7335_v15, %v7333_v11 }
 0x20b   :  { %v210_v5 = vpop.f32.mrf.mxu1 }
 0x211   :  { %v249_v7 = vpop.f32.mrf.mxu2 }
 0x212   :  { %v253_v8 = vmax.f32 %v210_v5, %v249_v7  ;;  %v320_v22 = vpop.f32.mrf.mxu3 }
 0x213   :  { %v348_v10 = vpop.f32.mrf.mxu1 }
 0x214   :  { %v255_v12 = vsub.f32 %v210_v5, %v253_v8  ;;  %v261_v13 = vsub.f32 %v249_v7, %v253_v8  ;;  %v354_v14 = vmax.f32 %v317_v9, %v348_v10 }
 0x216   :  { %v258_v16 = vmul.f32 1.442695, %v255_v12  ;;  %v264_v17 = vmul.f32 1.442695, %v261_v13  ;;  %v356_v18 = vsub.f32 %v317_v9, %v354_v14  ;;  %v362_v19 = vsub.f32 %v348_v10, %v354_v14  ;;  %v7317_v9 = vld [vmem:[%s9507_s8] ss:$0 sm:$0xff] }
 0x218   :  { %7336 = vpow2.f32 %v258_v16  ;;  %v358_v21 = vmul.f32 1.442695, %v356_v18  ;;  %v364_v23 = vmul.f32 1.442695, %v362_v19 }
 0x219   :  { %7338 = vpow2.f32 %v264_v17 }
 0x21a   :  { %7340 = vrcp.f32 %v266_v20 }
 0x21b   :  { %v351_v24 = vpop.f32.mrf.mxu1  ;;  %7342 = vpow2.f32 %v358_v21 }
 0x21c   :  { %v355_v25 = vmax.f32 %v320_v22, %v351_v24  ;;  %7344 = vpow2.f32 %v364_v23 }
 0x21e   :  { %v7337_v30 = vpop.eup %7336  ;;  %v357_v31 = vsub.f32 %v320_v22, %v355_v25  ;;  %v363_v32 = vsub.f32 %v351_v24, %v355_v25  ;;  %v7447_v25 = vmov 32.0  }
 0x21f   :  { %v7339_v33 = vpop.eup %7338 }
 0x220   :  { %v267_v35 = vadd.f32 %v7339_v33, %v7337_v30  ;;  %v360_v36 = vmul.f32 1.442695, %v357_v31  ;;  %v366_v37 = vmul.f32 1.442695, %v363_v32  ;;  %v7341_v38 = vpop.eup %7340 }
 0x221   :  { %v7343_v39 = vpop.eup %7342  ;;  %v270_v41 = vmul.f32 %v7341_v38, %v7333_v11  ;;  %v280_v42 = vmul.f32 %v7341_v38, %v7335_v15 }
 0x222   :  { %7346 = vrcp.f32 %v267_v35  ;;  %v7345_v40 = vpop.eup %7344 }
 0x223   :  { %7348 = vpow2.f32 %v360_v36  ;;  %v368_v45 = vadd.f32 %v7345_v40, %v7343_v39  ;;  %v278_v49 = vmul.f32 %v273_v34, %v270_v41  ;;  %v288_v50 = vmul.f32 %v283_v44, %v280_v42 }
 0x224   :  { %7350 = vpow2.f32 %v366_v37 }
 0x225   :  { %7352 = vrcp.f32 %v368_v45  ;;  %v290_v57 = vadd.f32 %v288_v50, %v278_v49 }
 0x228   :  { %v7347_v43 = vpop.eup %7346 }
 0x229   :  { %v7349_v46 = vpop.eup %7348  ;;  %v281_v47 = vmul.f32 %v7347_v43, %v7339_v33  ;;  %v271_v48 = vmul.f32 %v7347_v43, %v7337_v30 }
 0x22a   :  { %v7351_v53 = vpop.eup %7350 }
 0x22b   :  { %v279_v54 = vmul.f32 %v275_v52, %v271_v48  ;;  %v289_v55 = vmul.f32 %v285_v51, %v281_v47  ;;  %v369_v56 = vadd.f32 %v7351_v53, %v7349_v46  ;;  %v7353_v60 = vpop.eup %7352 }
 0x22c   :  { %v376_v62 = vmul.f32 %v7353_v60, %v7345_v40  ;;  %v372_v63 = vmul.f32 %v7353_v60, %v7343_v39  ;;  %v5343_v60 = vld [vmem:[%s9510_s11 + $0xc0] sm:$0xf0] }
 0x22d   :  { %v291_v58 = vadd.f32 %v289_v55, %v279_v54  ;;  %7354 = vrcp.f32 %v369_v56  ;;  %v5351_v54 = vld [vmem:[%s9510_s11 + $0xc8] sm:$0xf0]  ;;  %v5341_v55 = vld [vmem:[%s9510_s11 + $0x80] sm:$0xf] }
 0x22e   :  { %v374_v4 = vmul.f32 %v372_v63, %v273_v34  ;;  %v378_v5 = vmul.f32 %v376_v62, %v283_v44  ;;  %7356 = vrcp.f32 %v7447_v25 }
 0x22f   :  { %v382_v59 = vpack.c.bf16 %v291_v58, %v290_v57  ;;  %v7000_v58 = vld [vmem:[%s9510_s11 + $0xbc] sm:$0xf0] }
 0x230   :  { %v380_v7 = vadd.f32 %v378_v5, %v374_v4  ;;  %v5342_v62 = vor.u32 %v7000_v58, %v5341_v55  ;;  %v6977_v4 = vld [vmem:[%s9510_s11 + $0xc] sm:$0xf]  ;;  %v7003_v55 = vld [vmem:[%s9510_s11 + $0xd4] sm:$0xf0] }
 0x231   :  { %5273 = vmatmul.msk.bf16.vlgmr.msrb.gmra.mxu2 %vm144_vm8, %v382_v59  ;;  %v6992_v59 = vld [vmem:[%s9510_s11 + $0x84] sm:$0xf]  ;;  %v5287_v5 = vld [vmem:[%s9510_s11 + $0x48] sm:$0xf0] }
 0x232   :  { %v5346_v63 = vor.u32 %v6992_v59, %v5343_v60  ;;  %786 = vmatpush.bf16.msrb.mxu3 %v5342_v62  ;;  %v5303_v59 = vld [vmem:[%s9510_s11 + $0x58] sm:$0xf0]  ;;  %v6978_v60 = vld [vmem:[%s9510_s11 + $0x14] sm:$0xf] }
 0x233   :  { %v7355_v61 = vpop.eup %7354 }
 0x234   :  { %v373_v0 = vmul.f32 %v7355_v61, %v7349_v46  ;;  %v377_v1 = vmul.f32 %v7355_v61, %v7351_v53  ;;  %v6993_v53 = vld [vmem:[%s9510_s11 + $0x8c] sm:$0xf]  ;;  %805 = vmatpush.bf16.msrb.mxu0 %v5346_v63 }
 0x235   :  { %v5354_v57 = vor.u32 %v6993_v53, %v5351_v54  ;;  %v5365_v54 = vld [vmem:[%s9510_s11 + $0x98] sm:$0xf] }
 0x236   :  { %v375_v2 = vmul.f32 %v373_v0, %v275_v52  ;;  %v379_v3 = vmul.f32 %v377_v1, %v285_v51  ;;  %v5349_v0 = vld [vmem:[%s9510_s11 + $0x88] sm:$0xf]  ;;  %v5366_v58 = vor.u32 %v7003_v55, %v5365_v54  ;;  %v6980_v55 = vld [vmem:[%s9510_s11 + $0x24] sm:$0xf] }
 0x237   :  { %v7001_v1 = vld [vmem:[%s9510_s11 + $0xc4] sm:$0xf0]  ;;  %843 = vmatpush.bf16.msra.mxu2 %v5354_v57 }
 0x238   :  { %v381_v6 = vadd.f32 %v379_v3, %v375_v2  ;;  %v5350_v2 = vor.u32 %v7001_v1, %v5349_v0  ;;  %v5295_v1 = vld [vmem:[%s9510_s11 + $0x50] sm:$0xf0] }
 0x23a   :  { %v383_v8 = vpack.c.bf16 %v381_v6, %v380_v7  ;;  %v5290_v6 = vor.u32 %v6977_v4, %v5287_v5  ;;  %v5277_v7 = vld [vmem:[%s9510_s11] sm:$0xf]  ;;  %824 = vmatpush.bf16.msrb.mxu1 %v5350_v2  ;;  %v5301_v2 = vld [vmem:[%s9510_s11 + $0x18] sm:$0xf]  ;;  %v5298_v5 = vor.u32 %v6978_v60, %v5295_v1  ;;  %v5399_v1 = vld [vmem:[%s9510_s11 + $0xf8] sm:$0xf0] }
 0x23c   :  { %844 = vmatpush.bf16.msra.mxu2 %v5290_v6 }
 0x241   :  { %5274 = vmatmul.msk.bf16.gmra.mxu2 %vm144_vm8, %v383_v8  ;;  %v6984_v8 = vld [vmem:[%s9510_s11 + $0x3c] sm:$0xf0] }
 0x2b4   :  { %v419_v10 = vpop.f32.mrf.mxu2 }
 0x2b5   :  { %v420_v11 = vadd.f32 %v7317_v9, %v419_v10  ;;  %v5278_v10 = vor.u32 %v6984_v8, %v5277_v7 }
 0x2b7   :  { %v429_v12 = vadd.f32 %v420_v11, %v7602_v27  ;;  %v5279_v11 = vld [vmem:[%s9510_s11 + $0x40] sm:$0xf0]  ;;  %787 = vmatpush.bf16.msrb.mxu3 %v5278_v10 }
 0x2b9   :  { %v435_v13 = vsel %vm144_vm8, %v429_v12, 0.0 }
 0x2ba   :  { %436 = vadd.xlane.f32.xlu0 %v435_v13  ;;  %v6985_v13 = vld [vmem:[%s9510_s11 + $0x44] sm:$0xf0] }
 0x2bc   :  { %v421_v14 = vpop.f32.mrf.mxu2 }
 0x2bd   :  { %v422_v15 = vadd.f32 %v7317_v9, %v421_v14 }
 0x2bf   :  { %v430_v16 = vadd.f32 %v422_v15, %v7606_v29  ;;  %v7357_v29 = vpop.eup %7356 }
 0x2c0   :  { %v448_v30 = vmul.f32 32.0, %v7357_v29  ;;  %vm452_vm9 = vweird.f32 %v7357_v29 }
 0x2c1   :  { %v438_v17 = vsel %vm144_vm8, %v430_v16, 0.0 }
 0x2c2   :  { %439 = vadd.xlane.f32.xlu1 %v438_v17  ;;  %v449_v31 = vsub.f32 1.0, %v448_v30 }
 0x2c4   :  { %v424_v18 = vpop.f32.mrf.mxu2  ;;  %v450_v32 = vmul.f32 %v7357_v29, %v449_v31 }
 0x2c5   :  { %v425_v19 = vadd.f32 %v7317_v9, %v424_v18 }
 0x2c6   :  { %v451_v33 = vadd.f32 %v7357_v29, %v450_v32  ;;  %v5357_v32 = vld [vmem:[%s9510_s11 + $0x90] sm:$0xf] }
 0x2c7   :  { %v431_v20 = vadd.f32 %v425_v19, %v7600_v26 }
 0x2c8   :  { %v7664_v34 = vsel %vm452_vm9, %v7357_v29, %v451_v33  ;;  %v7002_v33 = vld [vmem:[%s9510_s11 + $0xcc] sm:$0xf0] }
 0x2c9   :  { %v441_v21 = vsel %vm144_vm8, %v431_v20, 0.0 }
 0x2ca   :  { %442 = vadd.xlane.f32.xlu2 %v441_v21 }
 0x2cc   :  { %v426_v22 = vpop.f32.mrf.mxu2 }
 0x2cd   :  { %v427_v23 = vadd.f32 %v7317_v9, %v426_v22  ;;  %v6976_v9 = vld [vmem:[%s9510_s11 + $0x4] sm:$0xf] }
 0x2ce   :  { %v5282_v14 = vor.u32 %v6976_v9, %v5279_v11  ;;  %v7319_v9 = vld [vmem:[%s9509_s10] ss:$0 sm:$0xff] }
 0x2cf   :  { %v432_v27 = vadd.f32 %v427_v23, %v7604_v28 }
 0x2d0   :  { %806 = vmatpush.bf16.msrb.mxu0 %v5282_v14 }
 0x2d1   :  { %v444_v24 = vsel %vm144_vm8, %v432_v27, 0.0 }
 0x2d2   :  { %445 = vadd.xlane.f32.xlu2 %v444_v24 }
 0x32d   :  { %v437_v26 = vpop.xlane.xlu0 %436 }
 0x32e   :  { %v454_v35 = vmul.f32 %v7664_v34, %v437_v26 }
 0x330   :  { %v7667_v36 = vsub.f32 %v429_v12, %v454_v35  ;;  %v5285_v12 = vld [vmem:[%s9510_s11 + $0x8] sm:$0xf]  ;;  %v5358_v35 = vor.u32 %v7002_v33, %v5357_v32 }
 0x331   :  { %v5286_v15 = vor.u32 %v6985_v13, %v5285_v12 }
 0x332   :  { %v462_v28 = vmul.f32 %v7667_v36, %v7667_v36  ;;  %862 = vmatpush.bf16.msra.mxu3 %v5358_v35 }
 0x333   :  { %825 = vmatpush.bf16.msrb.mxu1 %v5286_v15 }
 0x334   :  { %v466_v37 = vsel %vm144_vm8, %v462_v28, 0.0  ;;  %v6995_v28 = vld [vmem:[%s9510_s11 + $0x9c] sm:$0xf] }
 0x335   :  { %v440_v38 = vpop.xlane.xlu1 %439  ;;  %467 = vadd.xlane.f32.xlu0 %v466_v37  ;;  %v5367_v37 = vld [vmem:[%s9510_s11 + $0xd8] sm:$0xf0] }
 0x336   :  { %v455_v39 = vmul.f32 %v7664_v34, %v440_v38  ;;  %v6994_v38 = vld [vmem:[%s9510_s11 + $0x94] sm:$0xf] }
 0x337   :  { %900 = vmatpush.bf16.msra.mxu1 %v5366_v58 }
 0x338   :  { %v7673_v40 = vsub.f32 %v430_v16, %v455_v39 }
 0x33a   :  { %v463_v41 = vmul.f32 %v7673_v40, %v7673_v40 }
 0x33c   :  { %v469_v42 = vsel %vm144_vm8, %v463_v41, 0.0  ;;  %v5370_v41 = vor.u32 %v6995_v28, %v5367_v37 }
 0x33d   :  { %v443_v43 = vpop.xlane.xlu2 %442  ;;  %470 = vadd.xlane.f32.xlu1 %v469_v42  ;;  %v5359_v42 = vld [vmem:[%s9510_s11 + $0xd0] sm:$0xf0] }
 0x33e   :  { %v456_v44 = vmul.f32 %v7664_v34, %v443_v43  ;;  %919 = vmatpush.bf16.msrb.mxu2 %v5370_v41 }
 0x340   :  { %v7679_v45 = vsub.f32 %v431_v20, %v456_v44 }
 0x342   :  { %v464_v46 = vmul.f32 %v7679_v45, %v7679_v45 }
 0x344   :  { %v472_v47 = vsel %vm144_vm8, %v464_v46, 0.0 }
 0x345   :  { %473 = vadd.xlane.f32.xlu2 %v472_v47  ;;  %v446_v48 = vpop.xlane.xlu2 %445  ;;  %v5362_v47 = vor.u32 %v6994_v38, %v5359_v42 }
 0x346   :  { %v457_v49 = vmul.f32 %v7664_v34, %v446_v48  ;;  %v5293_v48 = vld [vmem:[%s9510_s11 + $0x10] sm:$0xf] }
 0x347   :  { %881 = vmatpush.bf16.msra.mxu0 %v5362_v47  ;;  %v5381_v47 = vld [vmem:[%s9510_s11 + $0xa8] sm:$0xf] }
 0x348   :  { %v7685_v50 = vsub.f32 %v432_v27, %v457_v49  ;;  %v6986_v49 = vld [vmem:[%s9510_s11 + $0x4c] sm:$0xf0] }
 0x349   :  { %v5294_v53 = vor.u32 %v6986_v49, %v5293_v48  ;;  %v7005_v49 = vld [vmem:[%s9510_s11 + $0xe4] sm:$0xf0] }
 0x34a   :  { %v465_v51 = vmul.f32 %v7685_v50, %v7685_v50 }
 0x34b   :  { %863 = vmatpush.bf16.msra.mxu3 %v5294_v53  ;;  %882 = vmatpush.bf16.msra.mxu0 %v5298_v5  ;;  %v5382_v53 = vor.u32 %v7005_v49, %v5381_v47  ;;  %v7011_v47 = vld [vmem:[%s9512_s13 + $0x18] sm:$0xff]  ;;  %v7025_v49 = vld [vmem:[%s9512_s13 + $0x88] sm:$0xff] }
 0x34c   :  { %v475_v52 = vsel %vm144_vm8, %v465_v51, 0.0  ;;  %v7777_v51 = vld [vmem:[%s9508_s9] ss:$0 sm:$0xff] }
 0x34d   :  { %476 = vadd.xlane.f32.xlu0 %v475_v52 }
 0x3a8   :  { %v468_v56 = vpop.xlane.xlu0 %467 }
 0x3a9   :  { %v478_v61 = vmul.f32 %v468_v56, %v7664_v34  ;;  %v6979_v56 = vld [vmem:[%s9510_s11 + $0x1c] sm:$0xf] }
 0x3aa   :  { %v5306_v0 = vor.u32 %v6979_v56, %v5303_v59  ;;  %v5311_v56 = vld [vmem:[%s9510_s11 + $0x60] sm:$0xf0]  ;;  %v6989_v59 = vld [vmem:[%s9510_s11 + $0x64] sm:$0xf0] }
 0x3ab   :  { %v482_v3 = vadd.f32 1e-05, %v478_v61  ;;  %v5314_v58 = vor.u32 %v6980_v55, %v5311_v56  ;;  %v7009_v55 = vld [vmem:[%s9512_s13 + $0x8] sm:$0xff] }
 0x3ac   :  { %920 = vmatpush.bf16.msrb.mxu2 %v5306_v0  ;;  %v7033_v56 = vld [vmem:[%s9512_s13 + $0xc8] sm:$0xff] }
 0x3ad   :  { %7358 = vrsqrt.f32 %v482_v3  ;;  %vm492_vm11 = vweird.f32 %v482_v3 }
 0x3b0   :  { %v471_v16 = vpop.xlane.xlu1 %470 }
 0x3b1   :  { %v479_v17 = vmul.f32 %v471_v16, %v7664_v34 }
 0x3b3   :  { %v7359_v18 = vpop.eup %7358  ;;  %v483_v19 = vadd.f32 1e-05, %v479_v17 }
 0x3b4   :  { %v487_v20 = vmul.f32 %v7359_v18, %v482_v3  ;;  %vm493_vm10 = vweird.f32 %v7359_v18 }
 0x3b5   :  { %7360 = vrsqrt.f32 %v483_v19  ;;  %vm7759_vm12 = vmor %vm492_vm11, %vm493_vm10  ;;  %vm502_vm14 = vweird.f32 %v483_v19 }
 0x3b6   :  { %v488_v21 = vmul.f32 %v7359_v18, %v487_v20 }
 0x3b8   :  { %v489_v22 = vmul.f32 0.5, %v488_v21  ;;  %v474_v23 = vpop.xlane.xlu2 %473 }
 0x3b9   :  { %v480_v27 = vmul.f32 %v474_v23, %v7664_v34 }
 0x3ba   :  { %v490_v24 = vsub.f32 1.5, %v489_v22 }
 0x3bb   :  { %v7361_v25 = vpop.eup %7360  ;;  %v7741_v29 = vadd.f32 1e-05, %v480_v27  ;;  %v5373_v27 = vld [vmem:[%s9510_s11 + $0xa0] sm:$0xf] }
 0x3bc   :  { %v491_v30 = vmul.f32 %v7359_v18, %v490_v24  ;;  %v497_v31 = vmul.f32 %v7361_v25, %v483_v19  ;;  %vm503_vm13 = vweird.f32 %v7361_v25  ;;  %v7004_v24 = vld [vmem:[%s9510_s11 + $0xdc] sm:$0xf0] }
 0x3bd   :  { %7362 = vrsqrt.f32 %v7741_v29  ;;  %vm504_vm15 = vmor %vm502_vm14, %vm503_vm13  ;;  %vm512_vm1 = vweird.f32 %v7741_v29 }
 0x3be   :  { %v498_v26 = vmul.f32 %v7361_v25, %v497_v31  ;;  %v495_v43 = vsel %vm7759_vm12, %v7359_v18, %v491_v30  ;;  %v5383_v30 = vld [vmem:[%s9510_s11 + $0xe8] sm:$0xf0]  ;;  %v6996_v31 = vld [vmem:[%s9510_s11 + $0xa4] sm:$0xf] }
 0x3bf   :  { %v526_v62 = vmul.f32 %v495_v43, %v7667_v36  ;;  %v6987_v36 = vld [vmem:[%s9510_s11 + $0x54] sm:$0xf0] }
 0x3c0   :  { %v499_v44 = vmul.f32 0.5, %v498_v26  ;;  %v477_v46 = vpop.xlane.xlu0 %476  ;;  %v5302_v6 = vor.u32 %v6987_v36, %v5301_v2  ;;  %v5375_v26 = vld [vmem:[%s9510_s11 + $0xe0] sm:$0xf0]  ;;  %v6998_v2 = vld [vmem:[%s9510_s11 + $0xb4] sm:$0xf] }
 0x3c1   :  { %v481_v52 = vmul.f32 %v477_v46, %v7664_v34  ;;  %v533_v10 = vmul.f32 %v7777_v51, %v526_v62  ;;  %v5378_v28 = vor.u32 %v6996_v31, %v5375_v26  ;;  %v6988_v46 = vld [vmem:[%s9510_s11 + $0x5c] sm:$0xf0]  ;;  %v7006_v62 = vld [vmem:[%s9510_s11 + $0xec] sm:$0xf0]  ;;  %v7029_v31 = vld [vmem:[%s9512_s13 + $0xa8] sm:$0xff] }
 0x3c2   :  { %v500_v57 = vsub.f32 1.5, %v499_v44  ;;  %901 = vmatpush.bf16.msra.mxu1 %v5302_v6  ;;  %v5325_v36 = vld [vmem:[%s9510_s11 + $0x30] sm:$0xf]  ;;  %v7020_v26 = vld [vmem:[%s9512_s13 + $0x60] sm:$0xff] }
 0x3c3   :  { %v7363_v61 = vpop.eup %7362  ;;  %v485_v63 = vadd.f32 1e-05, %v481_v52  ;;  %v7813_v16 = vadd.f32 %v7319_v9, %v533_v10  ;;  %v5319_v52 = vld [vmem:[%s9510_s11 + $0x68] sm:$0xf0]  ;;  %v6990_v6 = vld [vmem:[%s9510_s11 + $0x6c] sm:$0xf0] }
 0x3c4   :  { %v501_v3 = vmul.f32 %v7361_v25, %v500_v57  ;;  %v507_v4 = vmul.f32 %v7363_v61, %v7741_v29  ;;  %vm513_vm0 = vweird.f32 %v7363_v61  ;;  %v6997_v29 = vld [vmem:[%s9510_s11 + $0xac] sm:$0xf]  ;;  %v5317_v57 = vld [vmem:[%s9510_s11 + $0x28] sm:$0xf]  ;;  %v6983_v10 = vld [vmem:[%s9510_s11 + $0x3c] sm:$0xf] }
 0x3c5   :  { %7364 = vrsqrt.f32 %v485_v63  ;;  %vm7822_vm2 = vmor %vm512_vm1, %vm513_vm0  ;;  %v5386_v33 = vor.u32 %v6997_v29, %v5383_v30  ;;  %vm522_vm4 = vweird.f32 %v485_v63  ;;  %v5318_v60 = vor.u32 %v6989_v59, %v5317_v57  ;;  %v7039_v29 = vld [vmem:[%s9512_s13 + $0xf8] sm:$0xff]  ;;  %v7021_v30 = vld [vmem:[%s9512_s13 + $0x68] sm:$0xff] }
 0x3c6   :  { %v505_v7 = vsel %vm504_vm15, %v7361_v25, %v501_v3  ;;  %v508_v8 = vmul.f32 %v7363_v61, %v507_v4  ;;  %v5374_v25 = vor.u32 %v7004_v24, %v5373_v27  ;;  %v5391_v3 = vld [vmem:[%s9510_s11 + $0xf0] sm:$0xf0]  ;;  %v7055_v57 = vld [vmem:[%s9512_s13 + $0x178] sm:$0xff]  ;;  %v7008_v59 = vld [vmem:[%s9512_s13] sm:$0xff] }
 0x3c7   :  { %v527_v11 = vmul.f32 %v505_v7, %v7673_v40  ;;  %v5394_v5 = vor.u32 %v6998_v2, %v5391_v3  ;;  %v5397_v7 = vld [vmem:[%s9510_s11 + $0xb8] sm:$0xf]  ;;  %v7022_v27 = vld [vmem:[%s9512_s13 + $0x70] sm:$0xff] }
 0x3c8   :  { %v509_v12 = vmul.f32 0.5, %v508_v8  ;;  %v5326_v8 = vor.u32 %v6990_v6, %v5325_v36  ;;  %v7030_v24 = vld [vmem:[%s9512_s13 + $0xb0] sm:$0xff]  ;;  %v7045_v36 = vld [vmem:[%s9512_s13 + $0x128] sm:$0xff] }
 0x3c9   :  { %v534_v13 = vmul.f32 %v7777_v51, %v527_v11  ;;  %v5335_v11 = vld [vmem:[%s9510_s11 + $0x78] sm:$0xf0]  ;;  %v7046_v2 = vld [vmem:[%s9512_s13 + $0x130] sm:$0xff]  ;;  %v7069_v6 = vld [vmem:[%s9512_s13 + $0x1e8] sm:$0xff] }
 0x3ca   :  { %v510_v14 = vsub.f32 1.5, %v509_v12  ;;  %v7070_v3 = vld [vmem:[%s9512_s13 + $0x1f0] sm:$0xff] }
 0x3cb   :  { %v7365_v15 = vpop.eup %7364  ;;  %v7815_v17 = vadd.f32 %v7319_v9, %v534_v13  ;;  %v5338_v13 = vor.u32 %v6983_v10, %v5335_v11  ;;  %v7059_v10 = vld [vmem:[%s9512_s13 + $0x198] sm:$0xff] }
 0x3cc   :  { %v511_v18 = vmul.f32 %v7363_v61, %v510_v14  ;;  %v517_v19 = vmul.f32 %v7365_v15, %v485_v63  ;;  %vm523_vm3 = vweird.f32 %v7365_v15  ;;  %v6999_v63 = vld [vmem:[%s9510_s11 + $0xbc] sm:$0xf]  ;;  %v6982_v14 = vld [vmem:[%s9510_s11 + $0x34] sm:$0xf] }
 0x3cd   :  { %v7819_v20 = vpack.c.bf16 %v7815_v17, %v7813_v16  ;;  %vm524_vm5 = vmor %vm522_vm4, %vm523_vm3  ;;  %v5402_v4 = vor.u32 %v6999_v63, %v5399_v1  ;;  %v7047_v63 = vld [vmem:[%s9512_s13 + $0x138] sm:$0xff]  ;;  %v7061_v1 = vld [vmem:[%s9512_s13 + $0x1a8] sm:$0xff] }
 0x3ce   :  { %v518_v40 = vmul.f32 %v7365_v15, %v517_v19  ;;  %v515_v22 = vsel %vm7822_vm2, %v7363_v61, %v511_v18  ;;  %v5389_v61 = vld [vmem:[%s9510_s11 + $0xb0] sm:$0xf]  ;;  %v5333_v18 = vld [vmem:[%s9510_s11 + $0x38] sm:$0xf] }
 0x3cf   :  { %5403 = vmatmul.msk.bf16.vlgmr.msrb.gmra.mxu3 %vm144_vm8, %v7819_v20  ;;  %5405 = vmatmul.msk.bf16.vlgmr.msrb.gmra.mxu0 %vm144_vm8, %v7819_v20  ;;  %v528_v35 = vmul.f32 %v515_v22, %v7679_v45  ;;  %v5390_v0 = vor.u32 %v7006_v62, %v5389_v61  ;;  %v7023_v22 = vld [vmem:[%s9512_s13 + $0x78] sm:$0xff]  ;;  %v7054_v61 = vld [vmem:[%s9512_s13 + $0x170] sm:$0xff] }
 0x3d0   :  { %v519_v23 = vmul.f32 0.5, %v518_v40  ;;  %5407 = vmatmul.msk.bf16.vlgmr.msrb.gmra.mxu1 %vm144_vm8, %v7819_v20  ;;  %5409 = vmatmul.msk.bf16.vlgmr.msra.gmra.mxu2 %vm144_vm8, %v7819_v20  ;;  %v6991_v40 = vld [vmem:[%s9510_s11 + $0x74] sm:$0xf0]  ;;  %v7062_v62 = vld [vmem:[%s9512_s13 + $0x1b0] sm:$0xff] }
 0x3d1   :  { %938 = vmatpush.bf16.msrb.mxu3 %v5374_v25  ;;  %995 = vmatpush.bf16.msra.mxu2 %v5386_v33  ;;  %v535_v39 = vmul.f32 %v7777_v51, %v528_v35  ;;  %v5334_v21 = vor.u32 %v6991_v40, %v5333_v18  ;;  %v7015_v25 = vld [vmem:[%s9512_s13 + $0x38] sm:$0xff]  ;;  %v7038_v33 = vld [vmem:[%s9512_s13 + $0xf0] sm:$0xff]  ;;  %v7028_v35 = vld [vmem:[%s9512_s13 + $0xa0] sm:$0xff] }
 0x3d2   :  { %v520_v32 = vsub.f32 1.5, %v519_v23  ;;  %957 = vmatpush.bf16.msrb.mxu0 %v5378_v28  ;;  %976 = vmatpush.bf16.msrb.mxu1 %v5382_v53  ;;  %v7031_v23 = vld [vmem:[%s9512_s13 + $0xb8] sm:$0xff]  ;;  %v7013_v28 = vld [vmem:[%s9512_s13 + $0x28] sm:$0xff]  ;;  %v7016_v53 = vld [vmem:[%s9512_s13 + $0x40] sm:$0xff] }
 0x3d3   :  { %v7858_v43 = vadd.f32 %v7319_v9, %v535_v39  ;;  %v7027_v39 = vld [vmem:[%s9512_s13 + $0x98] sm:$0xff]  ;;  %v7050_v18 = vld [vmem:[%s9512_s13 + $0x150] sm:$0xff] }
 0x3d4   :  { %v521_v37 = vmul.f32 %v7365_v15, %v520_v32  ;;  %v7014_v32 = vld [vmem:[%s9512_s13 + $0x30] sm:$0xff] }
 0x3d6   :  { %v525_v38 = vsel %vm524_vm5, %v7365_v15, %v521_v37  ;;  %958 = vmatpush.bf16.msrb.mxu0 %v5314_v58  ;;  %977 = vmatpush.bf16.msrb.mxu1 %v5318_v60  ;;  %v5327_v15 = vld [vmem:[%s9510_s11 + $0x70] sm:$0xf0]  ;;  %v7037_v37 = vld [vmem:[%s9512_s13 + $0xe8] sm:$0xff]  ;;  %v7063_v58 = vld [vmem:[%s9512_s13 + $0x1b8] sm:$0xff] }
 0x3d7   :  { %v529_v41 = vmul.f32 %v525_v38, %v7685_v50  ;;  %v5309_v50 = vld [vmem:[%s9510_s11 + $0x20] sm:$0xf]  ;;  %v5330_v19 = vor.u32 %v6982_v14, %v5327_v15  ;;  %v7019_v38 = vld [vmem:[%s9512_s13 + $0x58] sm:$0xff] }
 0x3d8   :  { %v5310_v48 = vor.u32 %v6988_v46, %v5309_v50  ;;  %v7018_v50 = vld [vmem:[%s9512_s13 + $0x50] sm:$0xff]  ;;  %v7032_v60 = vld [vmem:[%s9512_s13 + $0xc0] sm:$0xff] }
 0x3d9   :  { %v536_v42 = vmul.f32 %v7777_v51, %v529_v41  ;;  %v6981_v51 = vld [vmem:[%s9510_s11 + $0x2c] sm:$0xf]  ;;  %v7012_v41 = vld [vmem:[%s9512_s13 + $0x20] sm:$0xff]  ;;  %v7026_v46 = vld [vmem:[%s9512_s13 + $0x90] sm:$0xff] }
 0x3da   :  { %v5322_v54 = vor.u32 %v6981_v51, %v5319_v52  ;;  %939 = vmatpush.bf16.msrb.mxu3 %v5310_v48  ;;  %v7017_v48 = vld [vmem:[%s9512_s13 + $0x48] sm:$0xff]  ;;  %v7010_v51 = vld [vmem:[%s9512_s13 + $0x10] sm:$0xff] }
 0x3db   :  { %v7860_v44 = vadd.f32 %v7319_v9, %v536_v42  ;;  %v7007_v9 = vld [vmem:[%s9510_s11 + $0xf4] sm:$0xf0]  ;;  %v7036_v42 = vld [vmem:[%s9512_s13 + $0xe0] sm:$0xff]  ;;  %v7034_v52 = vld [vmem:[%s9512_s13 + $0xd0] sm:$0xff] }
 0x3dc   :  { %996 = vmatpush.bf16.msra.mxu2 %v5322_v54  ;;  %v5398_v12 = vor.u32 %v7007_v9, %v5397_v7  ;;  %v7024_v54 = vld [vmem:[%s9512_s13 + $0x80] sm:$0xff]  ;;  %v7051_v9 = vld [vmem:[%s9512_s13 + $0x158] sm:$0xff] }
 0x3dd   :  { %v7864_v45 = vpack.c.bf16 %v7860_v44, %v7858_v43  ;;  %v8141_v7 = vld [vmem:[%s9511_s12] sm:$0xff] }
 0x3de   :  { %v8156_v14 = vperm.slane %v8141_v7, 1  ;;  %v8159_v15 = vperm.slane %v8141_v7, 2 }
 0x3df   :  { %5404 = vmatmul.msk.bf16.gmra.mxu3 %vm144_vm8, %v7864_v45  ;;  %5406 = vmatmul.msk.bf16.gmra.mxu0 %vm144_vm8, %v7864_v45 }
 0x3e0   :  { %5408 = vmatmul.msk.bf16.gmra.mxu1 %vm144_vm8, %v7864_v45  ;;  %5410 = vmatmul.msk.bf16.gmra.mxu2 %vm144_vm8, %v7864_v45 }
 0x3ef   :  { %5411 = vmatmul.msk.bf16.vlgmr.msra.gmra.mxu3 %vm144_vm8, %v7819_v20  ;;  %5413 = vmatmul.msk.bf16.vlgmr.msra.gmra.mxu0 %vm144_vm8, %v7819_v20 }
 0x3f0   :  { %5415 = vmatmul.msk.bf16.vlgmr.msra.gmra.mxu1 %vm144_vm8, %v7819_v20  ;;  %5417 = vmatmul.msk.bf16.vlgmr.msrb.gmra.mxu2 %vm144_vm8, %v7819_v20 }
 0x3f1   :  { %1014 = vmatpush.bf16.msra.mxu3 %v5390_v0  ;;  %1071 = vmatpush.bf16.msrb.mxu2 %v5402_v4  ;;  %v7053_v0 = vld [vmem:[%s9512_s13 + $0x168] sm:$0xff]  ;;  %v7052_v4 = vld [vmem:[%s9512_s13 + $0x160] sm:$0xff] }
 0x3f2   :  { %1033 = vmatpush.bf16.msra.mxu0 %v5394_v5  ;;  %1052 = vmatpush.bf16.msra.mxu1 %v5398_v12  ;;  %v7060_v5 = vld [vmem:[%s9512_s13 + $0x1a0] sm:$0xff] }
 0x3f3   :  { %v7044_v12 = vld [vmem:[%s9512_s13 + $0x120] sm:$0xff] }
 0x3f5   :  { %1015 = vmatpush.bf16.msra.mxu3 %v5326_v8  ;;  %1072 = vmatpush.bf16.msrb.mxu2 %v5338_v13  ;;  %v7068_v13 = vld [vmem:[%s9512_s13 + $0x1e0] sm:$0xff] }
 0x3f6   :  { %1034 = vmatpush.bf16.msra.mxu0 %v5330_v19  ;;  %1053 = vmatpush.bf16.msra.mxu1 %v5334_v21  ;;  %v7058_v19 = vld [vmem:[%s9512_s13 + $0x190] sm:$0xff]  ;;  %v7043_v21 = vld [vmem:[%s9512_s13 + $0x118] sm:$0xff] }
 0x3ff   :  { %5412 = vmatmul.msk.bf16.gmra.mxu3 %vm144_vm8, %v7864_v45  ;;  %5414 = vmatmul.msk.bf16.gmra.mxu0 %vm144_vm8, %v7864_v45 }
 0x400   :  { %5416 = vmatmul.msk.bf16.gmra.mxu1 %vm144_vm8, %v7864_v45  ;;  %5418 = vmatmul.msk.bf16.gmra.mxu2 %vm144_vm8, %v7864_v45 }
 0x40f   :  { %5419 = vmatmul.msk.bf16.vlgmr.msrb.gmra.mxu3 %vm144_vm8, %v7819_v20  ;;  %5421 = vmatmul.msk.bf16.vlgmr.msrb.gmra.mxu0 %vm144_vm8, %v7819_v20 }
 0x410   :  { %5423 = vmatmul.msk.bf16.vlgmr.msrb.gmra.mxu1 %vm144_vm8, %v7819_v20  ;;  %5425 = vmatmul.msk.bf16.vlgmr.msra.gmra.mxu2 %vm144_vm8, %v7819_v20 }
 0x411   :  { %2227 = vmatpush.bf16.msrb.mxu0 %v7023_v22  ;;  %2246 = vmatpush.bf16.msrb.mxu1 %v7031_v23  ;;  %v7067_v22 = vld [vmem:[%s9512_s13 + $0x1d8] sm:$0xff] }
 0x412   :  { %2208 = vmatpush.bf16.msrb.mxu3 %v7015_v25  ;;  %2265 = vmatpush.bf16.msra.mxu2 %v7039_v29  ;;  %v7049_v29 = vld [vmem:[%s9512_s13 + $0x148] sm:$0xff] }
 0x415   :  { %2228 = vmatpush.bf16.msrb.mxu0 %v7022_v27  ;;  %2247 = vmatpush.bf16.msrb.mxu1 %v7030_v24 }
 0x416   :  { %2209 = vmatpush.bf16.msrb.mxu3 %v7014_v32  ;;  %2266 = vmatpush.bf16.msra.mxu2 %v7038_v33 }
 0x419   :  { %2229 = vmatpush.bf16.msrb.mxu0 %v7021_v30  ;;  %2248 = vmatpush.bf16.msrb.mxu1 %v7029_v31  ;;  %v7057_v30 = vld [vmem:[%s9512_s13 + $0x188] sm:$0xff]  ;;  %v8182_v31 = vperm.slane %v8141_v7, 0 }
 0x41a   :  { %2210 = vmatpush.bf16.msrb.mxu3 %v7013_v28  ;;  %2267 = vmatpush.bf16.msra.mxu2 %v7037_v37  ;;  %v7042_v28 = vld [vmem:[%s9512_s13 + $0x110] sm:$0xff] }
 0x41b   :  { %v7066_v37 = vld [vmem:[%s9512_s13 + $0x1d0] sm:$0xff] }
 0x41d   :  { %2230 = vmatpush.bf16.msrb.mxu0 %v7020_v26  ;;  %2249 = vmatpush.bf16.msrb.mxu1 %v7028_v35  ;;  %v8186_v26 = vperm.slane %v8141_v7, 3 }
 0x41e   :  { %2211 = vmatpush.bf16.msrb.mxu3 %v7012_v41  ;;  %2268 = vmatpush.bf16.msra.mxu2 %v7036_v42 }
 0x41f   :  { %5420 = vmatmul.msk.bf16.gmra.mxu3 %vm144_vm8, %v7864_v45  ;;  %5422 = vmatmul.msk.bf16.gmra.mxu0 %vm144_vm8, %v7864_v45 }
 0x420   :  { %5424 = vmatmul.msk.bf16.gmra.mxu1 %vm144_vm8, %v7864_v45  ;;  %5426 = vmatmul.msk.bf16.gmra.mxu2 %vm144_vm8, %v7864_v45 }
 0x421   :  { %2231 = vmatpush.bf16.msrb.mxu0 %v7019_v38  ;;  %2250 = vmatpush.bf16.msrb.mxu1 %v7027_v39 }
 0x422   :  { %2212 = vmatpush.bf16.msrb.mxu3 %v7011_v47 }
 0x425   :  { %2232 = vmatpush.bf16.msrb.mxu0 %v7018_v50  ;;  %2251 = vmatpush.bf16.msrb.mxu1 %v7026_v46  ;;  %v7048_v50 = vld [vmem:[%s9512_s13 + $0x140] sm:$0xff] }
 0x426   :  { %2213 = vmatpush.bf16.msrb.mxu3 %v7010_v51  ;;  %v7056_v46 = vld [vmem:[%s9512_s13 + $0x180] sm:$0xff] }
 0x429   :  { %2233 = vmatpush.bf16.msrb.mxu0 %v7017_v48  ;;  %2252 = vmatpush.bf16.msrb.mxu1 %v7025_v49 }
 0x42a   :  { %2214 = vmatpush.bf16.msrb.mxu3 %v7009_v55 }
 0x42d   :  { %2234 = vmatpush.bf16.msrb.mxu0 %v7016_v53  ;;  %2253 = vmatpush.bf16.msrb.mxu1 %v7024_v54  ;;  %v7065_v53 = vld [vmem:[%s9512_s13 + $0x1c8] sm:$0xff] }
 0x42e   :  { %2215 = vmatpush.bf16.msrb.mxu3 %v7008_v59  ;;  %v7095_v59 = vld [vmem:[%s9512_s13 + $0x2b8] sm:$0xff] }
 0x42f   :  { %5427 = vmatmul.msk.bf16.vlgmr.msra.gmra.mxu3 %vm144_vm8, %v7819_v20  ;;  %5429 = vmatmul.msk.bf16.vlgmr.msra.gmra.mxu0 %vm144_vm8, %v7819_v20 }
 0x430   :  { %5431 = vmatmul.msk.bf16.vlgmr.msra.gmra.mxu1 %vm144_vm8, %v7819_v20  ;;  %5433 = vmatmul.msk.bf16.vlgmr.msrb.gmra.mxu2 %vm144_vm8, %v7819_v20  ;;  %v7035_v20 = vld [vmem:[%s9512_s13 + $0xd8] sm:$0xff] }
 0x431   :  { %2269 = vmatpush.bf16.msra.mxu2 %v7035_v20  ;;  %2303 = vmatpush.bf16.msra.mxu0 %v7055_v57 }
 0x432   :  { %2322 = vmatpush.bf16.msra.mxu1 %v7063_v58  ;;  %2284 = vmatpush.bf16.msra.mxu3 %v7047_v63  ;;  %v7087_v58 = vld [vmem:[%s9512_s13 + $0x278] sm:$0xff] }
 0x435   :  { %2270 = vmatpush.bf16.msra.mxu2 %v7034_v52  ;;  %2304 = vmatpush.bf16.msra.mxu0 %v7054_v61  ;;  %v7041_v52 = vld [vmem:[%s9512_s13 + $0x108] sm:$0xff] }
 0x436   :  { %2323 = vmatpush.bf16.msra.mxu1 %v7062_v62  ;;  %2285 = vmatpush.bf16.msra.mxu3 %v7046_v2 }
 0x439   :  { %2271 = vmatpush.bf16.msra.mxu2 %v7033_v56  ;;  %2305 = vmatpush.bf16.msra.mxu0 %v7053_v0  ;;  %v7040_v0 = vld [vmem:[%s9512_s13 + $0x100] sm:$0xff] }
 0x43a   :  { %2324 = vmatpush.bf16.msra.mxu1 %v7061_v1  ;;  %2286 = vmatpush.bf16.msra.mxu3 %v7045_v36  ;;  %v7064_v1 = vld [vmem:[%s9512_s13 + $0x1c0] sm:$0xff] }
 0x43d   :  { %2272 = vmatpush.bf16.msra.mxu2 %v7032_v60  ;;  %2306 = vmatpush.bf16.msra.mxu0 %v7052_v4  ;;  %v7086_v4 = vld [vmem:[%s9512_s13 + $0x270] sm:$0xff] }
 0x43e   :  { %2325 = vmatpush.bf16.msra.mxu1 %v7060_v5  ;;  %2287 = vmatpush.bf16.msra.mxu3 %v7044_v12  ;;  %v7094_v5 = vld [vmem:[%s9512_s13 + $0x2b0] sm:$0xff] }
 0x43f   :  { %5428 = vmatmul.msk.bf16.gmra.mxu3 %vm144_vm8, %v7864_v45  ;;  %5430 = vmatmul.msk.bf16.gmra.mxu0 %vm144_vm8, %v7864_v45 }
 0x440   :  { %5432 = vmatmul.msk.bf16.gmra.mxu1 %vm144_vm8, %v7864_v45  ;;  %5434 = vmatmul.msk.bf16.gmra.mxu2 %vm144_vm8, %v7864_v45  ;;  %v7071_v45 = vld [vmem:[%s9512_s13 + $0x1f8] sm:$0xff] }
 0x441   :  { %2341 = vmatpush.bf16.msrb.mxu2 %v7071_v45  ;;  %2307 = vmatpush.bf16.msra.mxu0 %v7051_v9 }
 0x442   :  { %2326 = vmatpush.bf16.msra.mxu1 %v7059_v10  ;;  %2288 = vmatpush.bf16.msra.mxu3 %v7043_v21 }
 0x445   :  { %2342 = vmatpush.bf16.msrb.mxu2 %v7070_v3  ;;  %2308 = vmatpush.bf16.msra.mxu0 %v7050_v18  ;;  %v7093_v18 = vld [vmem:[%s9512_s13 + $0x2a8] sm:$0xff] }
 0x446   :  { %2327 = vmatpush.bf16.msra.mxu1 %v7058_v19  ;;  %2289 = vmatpush.bf16.msra.mxu3 %v7042_v28 }
 0x449   :  { %2343 = vmatpush.bf16.msrb.mxu2 %v7069_v6  ;;  %2309 = vmatpush.bf16.msra.mxu0 %v7049_v29  ;;  %v7079_v6 = vld [vmem:[%s9512_s13 + $0x238] sm:$0xff] }
 0x44a   :  { %2328 = vmatpush.bf16.msra.mxu1 %v7057_v30  ;;  %2290 = vmatpush.bf16.msra.mxu3 %v7041_v52  ;;  %v7077_v30 = vld [vmem:[%s9512_s13 + $0x228] sm:$0xff]  ;;  %v7100_v52 = vld [vmem:[%s9512_s13 + $0x2e0] sm:$0xff] }
 0x44c   :  { %v808_v8 = vpop.f32.mrf.mxu0 }
 0x44d   :  { %v827_v11 = vpop.f32.mrf.mxu1  ;;  %2344 = vmatpush.bf16.msrb.mxu2 %v7068_v13  ;;  %v809_v23 = vadd.f32 %v808_v8, %v8156_v14  ;;  %2310 = vmatpush.bf16.msra.mxu0 %v7048_v50  ;;  %v7103_v8 = vld [vmem:[%s9512_s13 + $0x2f8] sm:$0xff]  ;;  %v7085_v13 = vld [vmem:[%s9512_s13 + $0x268] sm:$0xff] }
 0x44e   :  { %v828_v24 = vadd.f32 %v827_v11, %v8159_v15  ;;  %2329 = vmatpush.bf16.msra.mxu1 %v7056_v46  ;;  %2291 = vmatpush.bf16.msra.mxu3 %v7040_v0  ;;  %v7083_v46 = vld [vmem:[%s9512_s13 + $0x258] sm:$0xff] }
 0x44f   :  { %v1085_v38 = vmax.f32 %v809_v23, 0.0  ;;  %v7102_v23 = vld [vmem:[%s9512_s13 + $0x2f0] sm:$0xff] }
 0x450   :  { %v1086_v41 = vmax.f32 %v828_v24, 0.0 }
 0x451   :  { %2345 = vmatpush.bf16.msrb.mxu2 %v7067_v22  ;;  %v7078_v22 = vld [vmem:[%s9512_s13 + $0x230] sm:$0xff] }
 0x452   :  { %v789_v40 = vpop.f32.mrf.mxu3 }
 0x453   :  { %v846_v27 = vpop.f32.mrf.mxu2  ;;  %v790_v47 = vadd.f32 %v789_v40, %v8182_v31 }
 0x454   :  { %v810_v25 = vpop.f32.mrf.mxu0  ;;  %v847_v48 = vadd.f32 %v846_v27, %v8186_v26 }
 0x455   :  { %v811_v32 = vadd.f32 %v810_v25, %v8156_v14  ;;  %v829_v33 = vpop.f32.mrf.mxu1  ;;  %2346 = vmatpush.bf16.msrb.mxu2 %v7066_v37  ;;  %v1084_v60 = vmax.f32 %v790_v47, 0.0  ;;  %v7091_v47 = vld [vmem:[%s9512_s13 + $0x298] sm:$0xff] }
 0x456   :  { %v830_v35 = vadd.f32 %v829_v33, %v8159_v15  ;;  %v1087_v63 = vmax.f32 %v847_v48, 0.0 }
 0x457   :  { %v1101_v39 = vmax.f32 %v811_v32, 0.0 }
 0x458   :  { %v1102_v42 = vmax.f32 %v830_v35, 0.0 }
 0x459   :  { %v1149_v20 = vpack.c.bf16 %v1101_v39, %v1085_v38  ;;  %2347 = vmatpush.bf16.msrb.mxu2 %v7065_v53  ;;  %v7101_v38 = vld [vmem:[%s9512_s13 + $0x2e8] sm:$0xff]  ;;  %v8280_v53 = vperm.slane %v8141_v7, 5 }
 0x45a   :  { %v1150_v49 = vpack.c.bf16 %v1102_v42, %v1086_v41  ;;  %v791_v51 = vpop.f32.mrf.mxu3 }
 0x45b   :  { %v792_v54 = vadd.f32 %v791_v51, %v8182_v31  ;;  %v848_v55 = vpop.f32.mrf.mxu2  ;;  %2235 = vmatmul.bf16.vlgmr.msrb.gmra.mxu0 %v1149_v20 }
 0x45c   :  { %v849_v56 = vadd.f32 %v848_v55, %v8186_v26  ;;  %2254 = vmatmul.bf16.vlgmr.msrb.gmra.mxu1 %v1150_v49  ;;  %v813_v57 = vpop.f32.mrf.mxu0  ;;  %2379 = vmatpush.bf16.msrb.mxu0 %v7087_v58  ;;  %v8283_v55 = vperm.slane %v8141_v7, 6  ;;  %v7090_v58 = vld [vmem:[%s9512_s13 + $0x290] sm:$0xff] }
 0x45d   :  { %v1100_v61 = vmax.f32 %v792_v54, 0.0  ;;  %v832_v62 = vpop.f32.mrf.mxu1  ;;  %2398 = vmatpush.bf16.msrb.mxu1 %v7095_v59  ;;  %2348 = vmatpush.bf16.msrb.mxu2 %v7064_v1  ;;  %v814_v9 = vadd.f32 %v813_v57, %v8156_v14  ;;  %v7082_v57 = vld [vmem:[%s9512_s13 + $0x250] sm:$0xff]  ;;  %v7081_v1 = vld [vmem:[%s9512_s13 + $0x248] sm:$0xff] }
 0x45e   :  { %v1103_v45 = vmax.f32 %v849_v56, 0.0  ;;  %v833_v11 = vadd.f32 %v832_v62, %v8159_v15 }
 0x45f   :  { %v1148_v2 = vpack.c.bf16 %v1100_v61, %v1084_v60  ;;  %v1117_v27 = vmax.f32 %v814_v9, 0.0  ;;  %v7075_v60 = vld [vmem:[%s9512_s13 + $0x218] sm:$0xff]  ;;  %v7098_v9 = vld [vmem:[%s9512_s13 + $0x2d0] sm:$0xff] }
 0x460   :  { %v1151_v3 = vpack.c.bf16 %v1103_v45, %v1087_v63  ;;  %2380 = vmatpush.bf16.msrb.mxu0 %v7086_v4  ;;  %v1118_v25 = vmax.f32 %v833_v11, 0.0  ;;  %v7099_v61 = vld [vmem:[%s9512_s13 + $0x2d8] sm:$0xff] }
 0x461   :  { %2216 = vmatmul.bf16.vlgmr.msrb.gmra.mxu3 %v1148_v2  ;;  %2399 = vmatpush.bf16.msrb.mxu1 %v7094_v5  ;;  %v7089_v2 = vld [vmem:[%s9512_s13 + $0x288] sm:$0xff] }
 0x462   :  { %2273 = vmatmul.bf16.vlgmr.msra.gmra.mxu2 %v1151_v3  ;;  %v794_v36 = vpop.f32.mrf.mxu3  ;;  %2360 = vmatpush.bf16.msrb.mxu3 %v7079_v6  ;;  %v8306_v3 = vperm.slane %v8141_v7, 4 }
 0x463   :  { %v851_v10 = vpop.f32.mrf.mxu2  ;;  %2417 = vmatpush.bf16.msra.mxu2 %v7103_v8  ;;  %v795_v32 = vadd.f32 %v794_v36, %v8182_v31  ;;  %v8310_v36 = vperm.slane %v8141_v7, 7  ;;  %v7074_v8 = vld [vmem:[%s9512_s13 + $0x210] sm:$0xff]  ;;  %v7080_v7 = vld [vmem:[%s9512_s13 + $0x240] sm:$0xff] }
 0x464   :  { %v815_v12 = vpop.f32.mrf.mxu0  ;;  %2381 = vmatpush.bf16.msrb.mxu0 %v7085_v13  ;;  %v852_v35 = vadd.f32 %v851_v10, %v8186_v26 }
 0x465   :  { %v816_v19 = vadd.f32 %v815_v12, %v8156_v14  ;;  %v834_v40 = vpop.f32.mrf.mxu1  ;;  %2400 = vmatpush.bf16.msrb.mxu1 %v7093_v18  ;;  %v7084_v14 = vld [vmem:[%s9512_s13 + $0x260] sm:$0xff]  ;;  %v1116_v20 = vmax.f32 %v795_v32, 0.0  ;;  %v7127_v32 = vld [vmem:[%s9512_s13 + $0x3b8] sm:$0xff] }
 0x466   :  { %v835_v21 = vadd.f32 %v834_v40, %v8159_v15  ;;  %2361 = vmatpush.bf16.msrb.mxu3 %v7078_v22  ;;  %v7092_v15 = vld [vmem:[%s9512_s13 + $0x2a0] sm:$0xff] }
 0x467   :  { %v1133_v24 = vmax.f32 %v816_v19, 0.0  ;;  %2418 = vmatpush.bf16.msra.mxu2 %v7102_v23  ;;  %v7088_v18 = vld [vmem:[%s9512_s13 + $0x280] sm:$0xff] }
 0x468   :  { %v1134_v29 = vmax.f32 %v835_v21, 0.0  ;;  %2382 = vmatpush.bf16.msrb.mxu0 %v7084_v14 }
 0x469   :  { %v1165_v33 = vpack.c.bf16 %v1133_v24, %v1117_v27  ;;  %2401 = vmatpush.bf16.msrb.mxu1 %v7092_v15  ;;  %v7073_v27 = vld [vmem:[%s9512_s13 + $0x208] sm:$0xff] }
 0x46a   :  { %v796_v28 = vpop.f32.mrf.mxu3  ;;  %v1166_v37 = vpack.c.bf16 %v1134_v29, %v1118_v25  ;;  %2362 = vmatpush.bf16.msrb.mxu3 %v7077_v30  ;;  %v7097_v24 = vld [vmem:[%s9512_s13 + $0x2c8] sm:$0xff]  ;;  %v7119_v30 = vld [vmem:[%s9512_s13 + $0x378] sm:$0xff] }
 0x46b   :  { %v797_v39 = vadd.f32 %v796_v28, %v8182_v31  ;;  %v853_v41 = vpop.f32.mrf.mxu2  ;;  %2240 = vmatmul.bf16.gmra.mxu0 %v1165_v33  ;;  %2419 = vmatpush.bf16.msra.mxu2 %v7101_v38  ;;  %v1119_v31 = vmax.f32 %v852_v35, 0.0 }
 0x46c   :  { %v854_v42 = vadd.f32 %v853_v41, %v8186_v26  ;;  %2259 = vmatmul.bf16.gmra.mxu1 %v1166_v37  ;;  %v884_v50 = vpop.f32.mrf.mxu0  ;;  %2383 = vmatpush.bf16.msrb.mxu0 %v7083_v46  ;;  %v7076_v26 = vld [vmem:[%s9512_s13 + $0x220] sm:$0xff]  ;;  %v7118_v46 = vld [vmem:[%s9512_s13 + $0x370] sm:$0xff] }
 0x46d   :  { %v1132_v48 = vmax.f32 %v797_v39, 0.0  ;;  %v903_v49 = vpop.f32.mrf.mxu1  ;;  %2402 = vmatpush.bf16.msrb.mxu1 %v7091_v47  ;;  %v885_v62 = vadd.f32 %v884_v50, %v8280_v53  ;;  %v7072_v39 = vld [vmem:[%s9512_s13 + $0x200] sm:$0xff]  ;;  %v7126_v47 = vld [vmem:[%s9512_s13 + $0x3b0] sm:$0xff] }
 0x46e   :  { %v1135_v51 = vmax.f32 %v854_v42, 0.0  ;;  %2363 = vmatpush.bf16.msrb.mxu3 %v7076_v26  ;;  %v904_v45 = vadd.f32 %v903_v49, %v8283_v55  ;;  %v7096_v41 = vld [vmem:[%s9512_s13 + $0x2c0] sm:$0xff]  ;;  %v7135_v49 = vld [vmem:[%s9512_s13 + $0x3f8] sm:$0xff] }
 0x46f   :  { %v1164_v54 = vpack.c.bf16 %v1132_v48, %v1116_v20  ;;  %2420 = vmatpush.bf16.msra.mxu2 %v7100_v52  ;;  %v1089_v10 = vmax.f32 %v885_v62, 0.0  ;;  %v7111_v48 = vld [vmem:[%s9512_s13 + $0x338] sm:$0xff] }
 0x470   :  { %v1167_v56 = vpack.c.bf16 %v1135_v51, %v1119_v31  ;;  %2384 = vmatpush.bf16.msrb.mxu0 %v7082_v57  ;;  %v1090_v12 = vmax.f32 %v904_v45, 0.0 }
 0x471   :  { %2221 = vmatmul.bf16.gmra.mxu3 %v1164_v54  ;;  %2403 = vmatpush.bf16.msrb.mxu1 %v7090_v58  ;;  %v7117_v54 = vld [vmem:[%s9512_s13 + $0x368] sm:$0xff] }
 0x472   :  { %2278 = vmatmul.bf16.gmra.mxu2 %v1167_v56  ;;  %v865_v59 = vpop.f32.mrf.mxu3  ;;  %2364 = vmatpush.bf16.msrb.mxu3 %v7075_v60  ;;  %v7125_v56 = vld [vmem:[%s9512_s13 + $0x3a8] sm:$0xff]  ;;  %v7110_v60 = vld [vmem:[%s9512_s13 + $0x330] sm:$0xff] }
 0x473   :  { %v922_v63 = vpop.f32.mrf.mxu2  ;;  %2421 = vmatpush.bf16.msra.mxu2 %v7099_v61  ;;  %v866_v19 = vadd.f32 %v865_v59, %v8306_v3  ;;  %v7134_v61 = vld [vmem:[%s9512_s13 + $0x3f0] sm:$0xff] }
 0x474   :  { %v886_v0 = vpop.f32.mrf.mxu0  ;;  %2385 = vmatpush.bf16.msrb.mxu0 %v7081_v1  ;;  %v923_v21 = vadd.f32 %v922_v63, %v8310_v36  ;;  %v7109_v1 = vld [vmem:[%s9512_s13 + $0x328] sm:$0xff] }
 0x475   :  { %v887_v4 = vadd.f32 %v886_v0, %v8280_v53  ;;  %v905_v5 = vpop.f32.mrf.mxu1  ;;  %2404 = vmatpush.bf16.msrb.mxu1 %v7089_v2  ;;  %v1088_v33 = vmax.f32 %v866_v19, 0.0 }
 0x476   :  { %v906_v6 = vadd.f32 %v905_v5, %v8283_v55  ;;  %2365 = vmatpush.bf16.msrb.mxu3 %v7074_v8  ;;  %v1091_v37 = vmax.f32 %v923_v21, 0.0 }
 0x477   :  { %v1105_v11 = vmax.f32 %v887_v4, 0.0  ;;  %2422 = vmatpush.bf16.msra.mxu2 %v7098_v9  ;;  %v7133_v9 = vld [vmem:[%s9512_s13 + $0x3e8] sm:$0xff] }
 0x478   :  { %v1106_v13 = vmax.f32 %v906_v6, 0.0  ;;  %2386 = vmatpush.bf16.msrb.mxu0 %v7080_v7 }
 0x479   :  { %v1153_v40 = vpack.c.bf16 %v1105_v11, %v1089_v10  ;;  %2405 = vmatpush.bf16.msrb.mxu1 %v7088_v18  ;;  %v7115_v18 = vld [vmem:[%s9512_s13 + $0x358] sm:$0xff] }
 0x47a   :  { %v1154_v22 = vpack.c.bf16 %v1106_v13, %v1090_v12  ;;  %v867_v23 = vpop.f32.mrf.mxu3  ;;  %2366 = vmatpush.bf16.msrb.mxu3 %v7073_v27  ;;  %v8394_v13 = vld [vmem:[%s9511_s12 + $0x8] sm:$0xff]  ;;  %v7132_v27 = vld [vmem:[%s9512_s13 + $0x3e0] sm:$0xff] }
 0x47b   :  { %v868_v25 = vadd.f32 %v867_v23, %v8306_v3  ;;  %v924_v29 = vpop.f32.mrf.mxu2  ;;  %2311 = vmatmul.bf16.vlgmr.msra.gmra.mxu0 %v1153_v40  ;;  %2423 = vmatpush.bf16.msra.mxu2 %v7097_v24  ;;  %v7108_v23 = vld [vmem:[%s9512_s13 + $0x320] sm:$0xff]  ;;  %v8409_v24 = vperm.slane %v8394_v13, 1 }
 0x47c   :  { %v925_v14 = vadd.f32 %v924_v29, %v8310_v36  ;;  %2330 = vmatmul.bf16.vlgmr.msra.gmra.mxu1 %v1154_v22  ;;  %v889_v15 = vpop.f32.mrf.mxu0  ;;  %2455 = vmatpush.bf16.msra.mxu0 %v7119_v30  ;;  %v8412_v29 = vperm.slane %v8394_v13, 2  ;;  %v7122_v30 = vld [vmem:[%s9512_s13 + $0x390] sm:$0xff] }
 0x47d   :  { %v1104_v35 = vmax.f32 %v868_v25, 0.0  ;;  %v908_v28 = vpop.f32.mrf.mxu1  ;;  %2474 = vmatpush.bf16.msra.mxu1 %v7127_v32  ;;  %v890_v31 = vadd.f32 %v889_v15, %v8280_v53  ;;  %v7114_v15 = vld [vmem:[%s9512_s13 + $0x350] sm:$0xff] }
 0x47e   :  { %v1107_v38 = vmax.f32 %v925_v14, 0.0  ;;  %2367 = vmatpush.bf16.msrb.mxu3 %v7072_v39  ;;  %v909_v26 = vadd.f32 %v908_v28, %v8283_v55 }
 0x47f   :  { %v1152_v42 = vpack.c.bf16 %v1104_v35, %v1088_v33  ;;  %2424 = vmatpush.bf16.msra.mxu2 %v7096_v41  ;;  %v1121_v62 = vmax.f32 %v890_v31, 0.0  ;;  %v7107_v33 = vld [vmem:[%s9512_s13 + $0x318] sm:$0xff]  ;;  %v7113_v41 = vld [vmem:[%s9512_s13 + $0x348] sm:$0xff]  ;;  %v7130_v31 = vld [vmem:[%s9512_s13 + $0x3d0] sm:$0xff] }
 0x480   :  { %v1155_v50 = vpack.c.bf16 %v1107_v38, %v1091_v37  ;;  %2456 = vmatpush.bf16.msra.mxu0 %v7118_v46  ;;  %v1122_v45 = vmax.f32 %v909_v26, 0.0  ;;  %v7131_v35 = vld [vmem:[%s9512_s13 + $0x3d8] sm:$0xff] }
 0x481   :  { %2292 = vmatmul.bf16.vlgmr.msra.gmra.mxu3 %v1152_v42  ;;  %2475 = vmatpush.bf16.msra.mxu1 %v7126_v47  ;;  %v7121_v42 = vld [vmem:[%s9512_s13 + $0x388] sm:$0xff] }
 0x482   :  { %2349 = vmatmul.bf16.vlgmr.msrb.gmra.mxu2 %v1155_v50  ;;  %v870_v20 = vpop.f32.mrf.mxu3  ;;  %2436 = vmatpush.bf16.msra.mxu3 %v7111_v48  ;;  %v8435_v50 = vperm.slane %v8394_v13, 0 }
 0x483   :  { %v927_v51 = vpop.f32.mrf.mxu2  ;;  %2493 = vmatpush.bf16.msrb.mxu2 %v7135_v49  ;;  %v871_v2 = vadd.f32 %v870_v20, %v8306_v3  ;;  %v8439_v20 = vperm.slane %v8394_v13, 3  ;;  %v7106_v49 = vld [vmem:[%s9512_s13 + $0x310] sm:$0xff] }
 0x484   :  { %v891_v52 = vpop.f32.mrf.mxu0  ;;  %2457 = vmatpush.bf16.msra.mxu0 %v7117_v54  ;;  %v928_v5 = vadd.f32 %v927_v51, %v8310_v36 }
 0x485   :  { %v892_v57 = vadd.f32 %v891_v52, %v8280_v53  ;;  %v910_v58 = vpop.f32.mrf.mxu1  ;;  %2476 = vmatpush.bf16.msra.mxu1 %v7125_v56  ;;  %v7116_v53 = vld [vmem:[%s9512_s13 + $0x360] sm:$0xff]  ;;  %v1120_v19 = vmax.f32 %v871_v2, 0.0 }
 0x486   :  { %v911_v59 = vadd.f32 %v910_v58, %v8283_v55  ;;  %2437 = vmatpush.bf16.msra.mxu3 %v7110_v60  ;;  %v7124_v55 = vld [vmem:[%s9512_s13 + $0x3a0] sm:$0xff] }
 0x487   :  { %v1137_v63 = vmax.f32 %v892_v57, 0.0  ;;  %2494 = vmatpush.bf16.msrb.mxu2 %v7134_v61  ;;  %v7112_v56 = vld [vmem:[%s9512_s13 + $0x340] sm:$0xff] }
 0x488   :  { %v1138_v0 = vmax.f32 %v911_v59, 0.0  ;;  %2458 = vmatpush.bf16.msra.mxu0 %v7116_v53  ;;  %v7120_v57 = vld [vmem:[%s9512_s13 + $0x380] sm:$0xff] }
 0x489   :  { %v1169_v4 = vpack.c.bf16 %v1137_v63, %v1121_v62  ;;  %2477 = vmatpush.bf16.msra.mxu1 %v7124_v55  ;;  %v7105_v63 = vld [vmem:[%s9512_s13 + $0x308] sm:$0xff] }
 0x48a   :  { %v872_v6 = vpop.f32.mrf.mxu3  ;;  %v1170_v8 = vpack.c.bf16 %v1138_v0, %v1122_v45  ;;  %2438 = vmatpush.bf16.msra.mxu3 %v7109_v1  ;;  %v7129_v45 = vld [vmem:[%s9512_s13 + $0x3c8] sm:$0xff] }
 0x48b   :  { %v873_v10 = vadd.f32 %v872_v6, %v8306_v3  ;;  %v929_v11 = vpop.f32.mrf.mxu2  ;;  %2316 = vmatmul.bf16.gmra.mxu0 %v1169_v4  ;;  %v7123_v3 = vld [vmem:[%s9512_s13 + $0x398] sm:$0xff]  ;;  %2495 = vmatpush.bf16.msrb.mxu2 %v7133_v9 }
 0x48c   :  { %v930_v12 = vadd.f32 %v929_v11, %v8310_v36  ;;  %2335 = vmatmul.bf16.gmra.mxu1 %v1170_v8  ;;  %v960_v7 = vpop.f32.mrf.mxu0  ;;  %v1123_v36 = vmax.f32 %v928_v5, 0.0  ;;  %2459 = vmatpush.bf16.msra.mxu0 %v7115_v18  ;;  %v8467_v6 = vld [vmem:[%s9537_s3 + $0x18] sm:$0xff]  ;;  %v7128_v11 = vld [vmem:[%s9512_s13 + $0x3c0] sm:$0xff] }
 0x48d   :  { %v1136_v40 = vmax.f32 %v873_v10, 0.0  ;;  %v979_v21 = vpop.f32.mrf.mxu1  ;;  %2478 = vmatpush.bf16.msra.mxu1 %v7123_v3  ;;  %v961_v28 = vadd.f32 %v960_v7, %v8409_v24  ;;  %v7104_v10 = vld [vmem:[%s9512_s13 + $0x300] sm:$0xff]  ;;  %v8480_v7 = vld [vmem:[%s9537_s3 + $0x10] sm:$0xff] }
 0x48e   :  { %v1139_v22 = vmax.f32 %v930_v12, 0.0  ;;  %2439 = vmatpush.bf16.msra.mxu3 %v7108_v23  ;;  %v980_v38 = vadd.f32 %v979_v21, %v8412_v29  ;;  %v8496_v23 = vld [vmem:[%s9537_s3] sm:$0xff] }
 0x48f   :  { %v1168_v25 = vpack.c.bf16 %v1136_v40, %v1120_v19  ;;  %2496 = vmatpush.bf16.msrb.mxu2 %v7132_v27  ;;  %v1093_v51 = vmax.f32 %v961_v28, 0.0  ;;  %v8487_v19 = vld [vmem:[%s9537_s3 + $0x8] sm:$0xff] }
 0x490   :  { %v1171_v14 = vpack.c.bf16 %v1139_v22, %v1123_v36  ;;  %2460 = vmatpush.bf16.msra.mxu0 %v7114_v15  ;;  %v1094_v52 = vmax.f32 %v980_v38, 0.0 }
 0x491   :  { %2297 = vmatmul.bf16.gmra.mxu3 %v1168_v25  ;;  %2479 = vmatpush.bf16.msra.mxu1 %v7122_v30 }
 0x492   :  { %2354 = vmatmul.bf16.gmra.mxu2 %v1171_v14  ;;  %v941_v32 = vpop.f32.mrf.mxu3  ;;  %2440 = vmatpush.bf16.msra.mxu3 %v7107_v33 }
 0x493   :  { %v998_v37 = vpop.f32.mrf.mxu2  ;;  %2497 = vmatpush.bf16.msrb.mxu2 %v7131_v35  ;;  %v942_v58 = vadd.f32 %v941_v32, %v8435_v50 }
 0x494   :  { %v962_v39 = vpop.f32.mrf.mxu0  ;;  %2461 = vmatpush.bf16.msra.mxu0 %v7113_v41  ;;  %v999_v60 = vadd.f32 %v998_v37, %v8439_v20 }
 0x495   :  { %v963_v46 = vadd.f32 %v962_v39, %v8409_v24  ;;  %v981_v47 = vpop.f32.mrf.mxu1  ;;  %2480 = vmatpush.bf16.msra.mxu1 %v7121_v42  ;;  %v1092_v2 = vmax.f32 %v942_v58, 0.0 }
 0x496   :  { %v982_v48 = vadd.f32 %v981_v47, %v8412_v29  ;;  %2441 = vmatpush.bf16.msra.mxu3 %v7106_v49  ;;  %v1095_v8 = vmax.f32 %v999_v60, 0.0 }
 0x497   :  { %v1109_v26 = vmax.f32 %v963_v46, 0.0  ;;  %2498 = vmatpush.bf16.msrb.mxu2 %v7130_v31 }
 0x498   :  { %v1110_v54 = vmax.f32 %v982_v48, 0.0  ;;  %2462 = vmatpush.bf16.msra.mxu0 %v7112_v56 }
 0x499   :  { %v1157_v59 = vpack.c.bf16 %v1109_v26, %v1093_v51  ;;  %2481 = vmatpush.bf16.msra.mxu1 %v7120_v57  ;;  %v595_v51 = vperm.slane %v8394_v13, 5 }
 0x49a   :  { %v1158_v61 = vpack.c.bf16 %v1110_v54, %v1094_v52  ;;  %v943_v62 = vpop.f32.mrf.mxu3  ;;  %2442 = vmatpush.bf16.msra.mxu3 %v7105_v63  ;;  %v596_v52 = vperm.slane %v8394_v13, 6 }
 0x49b   :  { %v944_v0 = vadd.f32 %v943_v62, %v8435_v50  ;;  %v1000_v53 = vpop.f32.mrf.mxu2  ;;  %2387 = vmatmul.bf16.vlgmr.msrb.gmra.mxu0 %v1157_v59  ;;  %2499 = vmatpush.bf16.msrb.mxu2 %v7129_v45  ;;  %v594_v59 = vperm.slane %v8394_v13, 4  ;;  %v597_v62 = vperm.slane %v8394_v13, 7 }
 0x49c   :  { %v1001_v55 = vadd.f32 %v1000_v53, %v8439_v20  ;;  %2406 = vmatmul.bf16.vlgmr.msrb.gmra.mxu1 %v1158_v61  ;;  %v965_v1 = vpop.f32.mrf.mxu0  ;;  %2701 = vmatpush.msrb.mxu0 %v8467_v6 }
 0x49d   :  { %v1108_v4 = vmax.f32 %v944_v0, 0.0  ;;  %v984_v5 = vpop.f32.mrf.mxu1  ;;  %2740 = vmatpush.msrb.mxu1 %v8467_v6  ;;  %v966_v40 = vadd.f32 %v965_v1, %v8409_v24 }
 0x49e   :  { %v1111_v9 = vmax.f32 %v1001_v55, 0.0  ;;  %2702 = vmatpush.msrb.mxu0 %v8480_v7  ;;  %2443 = vmatpush.bf16.msra.mxu3 %v7104_v10  ;;  %v985_v36 = vadd.f32 %v984_v5, %v8412_v29 }
 0x49f   :  { %v1156_v12 = vpack.c.bf16 %v1108_v4, %v1092_v2  ;;  %2741 = vmatpush.msrb.mxu1 %v8480_v7  ;;  %2500 = vmatpush.bf16.msrb.mxu2 %v7128_v11  ;;  %v1125_v15 = vmax.f32 %v966_v40, 0.0 }
 0x4a0   :  { %v1159_v18 = vpack.c.bf16 %v1111_v9, %v1095_v8  ;;  %2703 = vmatpush.msrb.mxu0 %v8487_v19  ;;  %v1126_v32 = vmax.f32 %v985_v36, 0.0 }
 0x4a1   :  { %2368 = vmatmul.bf16.vlgmr.msrb.gmra.mxu3 %v1156_v12  ;;  %2742 = vmatpush.msrb.mxu1 %v8487_v19 }
 0x4a2   :  { %2425 = vmatmul.bf16.vlgmr.msra.gmra.mxu2 %v1159_v18  ;;  %v946_v3 = vpop.f32.mrf.mxu3  ;;  %2704 = vmatpush.msrb.mxu0 %v8496_v23 }
 0x4a3   :  { %v1003_v21 = vpop.f32.mrf.mxu2  ;;  %2743 = vmatpush.msrb.mxu1 %v8496_v23  ;;  %v947_v35 = vadd.f32 %v946_v3, %v8435_v50 }
 0x4a4   :  { %v967_v22 = vpop.f32.mrf.mxu0  ;;  %v1004_v37 = vadd.f32 %v1003_v21, %v8439_v20 }
 0x4a5   :  { %v968_v27 = vadd.f32 %v967_v22, %v8409_v24  ;;  %v986_v25 = vpop.f32.mrf.mxu1 }
 0x4a6   :  { %v987_v14 = vadd.f32 %v986_v25, %v8412_v29  ;;  %v1124_v29 = vmax.f32 %v947_v35, 0.0  ;;  %v1127_v49 = vmax.f32 %v1004_v37, 0.0 }
 0x4a7   :  { %v1141_v30 = vmax.f32 %v968_v27, 0.0 }
 0x4a8   :  { %v1142_v33 = vmax.f32 %v987_v14, 0.0 }
 0x4a9   :  { %v1173_v28 = vpack.c.bf16 %v1141_v30, %v1125_v15 }
 0x4aa   :  { %v948_v38 = vpop.f32.mrf.mxu3  ;;  %v1174_v39 = vpack.c.bf16 %v1142_v33, %v1126_v32 }
 0x4ab   :  { %v949_v41 = vadd.f32 %v948_v38, %v8435_v50  ;;  %v1005_v42 = vpop.f32.mrf.mxu2  ;;  %2392 = vmatmul.bf16.gmra.mxu0 %v1173_v28 }
 0x4ac   :  { %v1006_v24 = vadd.f32 %v1005_v42, %v8439_v20  ;;  %2411 = vmatmul.bf16.gmra.mxu1 %v1174_v39  ;;  %v1036_v46 = vpop.f32.mrf.mxu0 }
 0x4ad   :  { %v1140_v47 = vmax.f32 %v949_v41, 0.0  ;;  %v1055_v48 = vpop.f32.mrf.mxu1  ;;  %v1037_v56 = vadd.f32 %v1036_v46, %v595_v51 }
 0x4ae   :  { %v1143_v31 = vmax.f32 %v1006_v24, 0.0  ;;  %v1056_v58 = vadd.f32 %v1055_v48, %v596_v52 }
 0x4af   :  { %v1172_v26 = vpack.c.bf16 %v1140_v47, %v1124_v29  ;;  %v1097_v45 = vmax.f32 %v1037_v56, 0.0  ;;  %v7320_v56 = vld [vmem:[%s9513_s14] ss:$0 sm:$0xff] }
 0x4b0   :  { %v1175_v54 = vpack.c.bf16 %v1143_v31, %v1127_v49  ;;  %v1098_v53 = vmax.f32 %v1056_v58, 0.0 }
 0x4b1   :  { %2373 = vmatmul.bf16.gmra.mxu3 %v1172_v26 }
 0x4b2   :  { %2430 = vmatmul.bf16.gmra.mxu2 %v1175_v54  ;;  %v1017_v50 = vpop.f32.mrf.mxu3 }
 0x4b3   :  { %v1074_v57 = vpop.f32.mrf.mxu2  ;;  %v1018_v1 = vadd.f32 %v1017_v50, %v594_v59 }
 0x4b4   :  { %v1038_v20 = vpop.f32.mrf.mxu0  ;;  %v1075_v4 = vadd.f32 %v1074_v57, %v597_v62 }
 0x4b5   :  { %v1039_v60 = vadd.f32 %v1038_v20, %v595_v51  ;;  %v1057_v61 = vpop.f32.mrf.mxu1  ;;  %v1096_v18 = vmax.f32 %v1018_v1, 0.0 }
 0x4b6   :  { %v1058_v63 = vadd.f32 %v1057_v61, %v596_v52  ;;  %v1099_v40 = vmax.f32 %v1075_v4, 0.0 }
 0x4b7   :  { %v1113_v0 = vmax.f32 %v1039_v60, 0.0 }
 0x4b8   :  { %v1114_v55 = vmax.f32 %v1058_v63, 0.0 }
 0x4b9   :  { %v1161_v2 = vpack.c.bf16 %v1113_v0, %v1097_v45 }
 0x4ba   :  { %v1162_v5 = vpack.c.bf16 %v1114_v55, %v1098_v53  ;;  %v1019_v8 = vpop.f32.mrf.mxu3 }
 0x4bb   :  { %v1020_v9 = vadd.f32 %v1019_v8, %v594_v59  ;;  %v1076_v10 = vpop.f32.mrf.mxu2  ;;  %2463 = vmatmul.bf16.vlgmr.msra.gmra.mxu0 %v1161_v2 }
 0x4bc   :  { %v1077_v11 = vadd.f32 %v1076_v10, %v597_v62  ;;  %2482 = vmatmul.bf16.vlgmr.msra.gmra.mxu1 %v1162_v5  ;;  %v1041_v12 = vpop.f32.mrf.mxu0  ;;  %2811 = vmatpush.msra.mxu0 %v8467_v6 }
 0x4bd   :  { %v1112_v13 = vmax.f32 %v1020_v9, 0.0  ;;  %v1060_v3 = vpop.f32.mrf.mxu1  ;;  %2842 = vmatpush.msra.mxu1 %v8467_v6  ;;  %v1042_v25 = vadd.f32 %v1041_v12, %v595_v51 }
 0x4be   :  { %v1115_v21 = vmax.f32 %v1077_v11, 0.0  ;;  %2812 = vmatpush.msra.mxu0 %v8480_v7  ;;  %v1061_v6 = vadd.f32 %v1060_v3, %v596_v52 }
 0x4bf   :  { %v1160_v36 = vpack.c.bf16 %v1112_v13, %v1096_v18  ;;  %2843 = vmatpush.msra.mxu1 %v8480_v7  ;;  %v1129_v7 = vmax.f32 %v1042_v25, 0.0 }
 0x4c0   :  { %v1163_v22 = vpack.c.bf16 %v1115_v21, %v1099_v40  ;;  %2813 = vmatpush.msra.mxu0 %v8487_v19  ;;  %v1130_v28 = vmax.f32 %v1061_v6, 0.0 }
 0x4c1   :  { %2444 = vmatmul.bf16.vlgmr.msra.gmra.mxu3 %v1160_v36  ;;  %2844 = vmatpush.msra.mxu1 %v8487_v19 }
 0x4c2   :  { %2501 = vmatmul.bf16.vlgmr.msrb.gmra.mxu2 %v1163_v22  ;;  %v1022_v27 = vpop.f32.mrf.mxu3  ;;  %2814 = vmatpush.msra.mxu0 %v8496_v23 }
 0x4c3   :  { %v1079_v14 = vpop.f32.mrf.mxu2  ;;  %2845 = vmatpush.msra.mxu1 %v8496_v23  ;;  %v1023_v38 = vadd.f32 %v1022_v27, %v594_v59 }
 0x4c4   :  { %v1043_v15 = vpop.f32.mrf.mxu0  ;;  %v1080_v19 = vadd.f32 %v1079_v14, %v597_v62 }
 0x4c5   :  { %v1044_v30 = vadd.f32 %v1043_v15, %v595_v51  ;;  %v1062_v32 = vpop.f32.mrf.mxu1  ;;  %v1128_v23 = vmax.f32 %v1023_v38, 0.0 }
 0x4c6   :  { %v1063_v33 = vadd.f32 %v1062_v32, %v596_v52  ;;  %v1131_v48 = vmax.f32 %v1080_v19, 0.0 }
 0x4c7   :  { %v1145_v35 = vmax.f32 %v1044_v30, 0.0 }
 0x4c8   :  { %v1146_v37 = vmax.f32 %v1063_v33, 0.0 }
 0x4c9   :  { %v1177_v39 = vpack.c.bf16 %v1145_v35, %v1129_v7 }
 0x4ca   :  { %v1024_v41 = vpop.f32.mrf.mxu3  ;;  %v1178_v42 = vpack.c.bf16 %v1146_v37, %v1130_v28 }
 0x4cb   :  { %v1025_v24 = vadd.f32 %v1024_v41, %v594_v59  ;;  %v1081_v46 = vpop.f32.mrf.mxu2  ;;  %2468 = vmatmul.bf16.gmra.mxu0 %v1177_v39 }
 0x4cc   :  { %v1082_v29 = vadd.f32 %v1081_v46, %v597_v62  ;;  %2487 = vmatmul.bf16.gmra.mxu1 %v1178_v42 }
 0x4cd   :  { %v1144_v47 = vmax.f32 %v1025_v24, 0.0 }
 0x4ce   :  { %v1147_v49 = vmax.f32 %v1082_v29, 0.0 }
 0x4cf   :  { %v1176_v31 = vpack.c.bf16 %v1144_v47, %v1128_v23 }
 0x4d0   :  { %v1179_v51 = vpack.c.bf16 %v1147_v49, %v1131_v48 }
 0x4d1   :  { %2449 = vmatmul.bf16.gmra.mxu3 %v1176_v31 }
 0x4d2   :  { %2506 = vmatmul.bf16.gmra.mxu2 %v1179_v51 }
 0x4d8   :  { %v2236_v26 = vpop.f32.mrf.mxu0 }
 0x4d9   :  { %v2255_v52 = vpop.f32.mrf.mxu1 }
 0x4e0   :  { %v2238_v54 = vpop.f32.mrf.mxu0 }
 0x4e1   :  { %v2257_v50 = vpop.f32.mrf.mxu1 }
 0x4e4   :  { %v2217_v57 = vpop.f32.mrf.mxu3 }
 0x4e5   :  { %v2218_v58 = vadd.f32 %v7320_v56, %v2217_v57  ;;  %v2274_v20 = vpop.f32.mrf.mxu2 }
 0x4e7   :  { %v2237_v59 = vadd.f32 %v2236_v26, %v2218_v58 }
 0x4e8   :  { %v2241_v60 = vpop.f32.mrf.mxu0 }
 0x4e9   :  { %v2256_v61 = vadd.f32 %v2255_v52, %v2237_v59  ;;  %v2260_v62 = vpop.f32.mrf.mxu1 }
 0x4eb   :  { %v2275_v63 = vadd.f32 %v2274_v20, %v2256_v61 }
 0x4ec   :  { %v2219_v45 = vpop.f32.mrf.mxu3 }
 0x4ed   :  { %v2276_v0 = vpop.f32.mrf.mxu2  ;;  %v2220_v37 = vadd.f32 %v7320_v56, %v2219_v45 }
 0x4ef   :  { %v2239_v41 = vadd.f32 %v2238_v54, %v2220_v37 }
 0x4f0   :  { %v2243_v53 = vpop.f32.mrf.mxu0 }
 0x4f1   :  { %v2262_v55 = vpop.f32.mrf.mxu1  ;;  %v2258_v24 = vadd.f32 %v2257_v50, %v2239_v41 }
 0x4f3   :  { %v2277_v49 = vadd.f32 %v2276_v0, %v2258_v24 }
 0x4f4   :  { %v2222_v1 = vpop.f32.mrf.mxu3 }
 0x4f5   :  { %v2223_v2 = vadd.f32 %v7320_v56, %v2222_v1  ;;  %v2279_v4 = vpop.f32.mrf.mxu2 }
 0x4f7   :  { %v2242_v5 = vadd.f32 %v2241_v60, %v2223_v2 }
 0x4f8   :  { %v2312_v8 = vpop.f32.mrf.mxu0 }
 0x4f9   :  { %v2261_v9 = vadd.f32 %v2260_v62, %v2242_v5  ;;  %v2331_v10 = vpop.f32.mrf.mxu1 }
 0x4fb   :  { %v2280_v11 = vadd.f32 %v2279_v4, %v2261_v9 }
 0x4fc   :  { %v2224_v12 = vpop.f32.mrf.mxu3 }
 0x4fd   :  { %v2281_v18 = vpop.f32.mrf.mxu2  ;;  %v2225_v26 = vadd.f32 %v7320_v56, %v2224_v12 }
 0x4ff   :  { %v2244_v60 = vadd.f32 %v2243_v53, %v2225_v26 }
 0x500   :  { %v2314_v13 = vpop.f32.mrf.mxu0 }
 0x501   :  { %v2333_v3 = vpop.f32.mrf.mxu1  ;;  %v2263_v50 = vadd.f32 %v2262_v55, %v2244_v60 }
 0x503   :  { %v2282_v0 = vadd.f32 %v2281_v18, %v2263_v50 }
 0x504   :  { %v2293_v40 = vpop.f32.mrf.mxu3 }
 0x505   :  { %v2350_v21 = vpop.f32.mrf.mxu2  ;;  %v2294_v42 = vadd.f32 %v2293_v40, %v2275_v63 }
 0x507   :  { %v2313_v23 = vadd.f32 %v2312_v8, %v2294_v42 }
 0x508   :  { %v2317_v36 = vpop.f32.mrf.mxu0 }
 0x509   :  { %v2336_v22 = vpop.f32.mrf.mxu1  ;;  %v2332_v31 = vadd.f32 %v2331_v10, %v2313_v23 }
 0x50b   :  { %v2351_v57 = vadd.f32 %v2350_v21, %v2332_v31 }
 0x50c   :  { %v2295_v27 = vpop.f32.mrf.mxu3 }
 0x50d   :  { %v2352_v25 = vpop.f32.mrf.mxu2  ;;  %v2296_v51 = vadd.f32 %v2295_v27, %v2277_v49 }
 0x50f   :  { %v2315_v58 = vadd.f32 %v2314_v13, %v2296_v51 }
 0x510   :  { %v2319_v14 = vpop.f32.mrf.mxu0 }
 0x511   :  { %v2338_v6 = vpop.f32.mrf.mxu1  ;;  %v2334_v54 = vadd.f32 %v2333_v3, %v2315_v58 }
 0x513   :  { %v2353_v2 = vadd.f32 %v2352_v25, %v2334_v54 }
 0x514   :  { %v2298_v15 = vpop.f32.mrf.mxu3 }
 0x515   :  { %v2355_v30 = vpop.f32.mrf.mxu2  ;;  %v2299_v63 = vadd.f32 %v2298_v15, %v2280_v11 }
 0x517   :  { %v2318_v4 = vadd.f32 %v2317_v36, %v2299_v63 }
 0x518   :  { %v2388_v32 = vpop.f32.mrf.mxu0 }
 0x519   :  { %v2407_v33 = vpop.f32.mrf.mxu1  ;;  %v2337_v10 = vadd.f32 %v2336_v22, %v2318_v4 }
 0x51b   :  { %v2356_v27 = vadd.f32 %v2355_v30, %v2337_v10 }
 0x51c   :  { %v2300_v7 = vpop.f32.mrf.mxu3 }
 0x51d   :  { %v2357_v35 = vpop.f32.mrf.mxu2  ;;  %v2301_v12 = vadd.f32 %v2300_v7, %v2282_v0 }
 0x51f   :  { %v2320_v37 = vadd.f32 %v2319_v14, %v2301_v12 }
 0x520   :  { %v2390_v28 = vpop.f32.mrf.mxu0 }
 0x521   :  { %v2409_v38 = vpop.f32.mrf.mxu1  ;;  %v2339_v25 = vadd.f32 %v2338_v6, %v2320_v37 }
 0x523   :  { %v2358_v7 = vadd.f32 %v2357_v35, %v2339_v25 }
 0x524   :  { %v2369_v39 = vpop.f32.mrf.mxu3 }
 0x525   :  { %v2426_v19 = vpop.f32.mrf.mxu2  ;;  %v2370_v61 = vadd.f32 %v2369_v39, %v2351_v57 }
 0x527   :  { %v2389_v45 = vadd.f32 %v2388_v32, %v2370_v61 }
 0x528   :  { %v2393_v46 = vpop.f32.mrf.mxu0 }
 0x529   :  { %v2412_v48 = vpop.f32.mrf.mxu1  ;;  %v2408_v8 = vadd.f32 %v2407_v33, %v2389_v45 }
 0x52b   :  { %v2427_v40 = vadd.f32 %v2426_v19, %v2408_v8 }
 0x52c   :  { %v2371_v29 = vpop.f32.mrf.mxu3 }
 0x52d   :  { %v2428_v47 = vpop.f32.mrf.mxu2  ;;  %v2372_v9 = vadd.f32 %v2371_v29, %v2353_v2 }
 0x52f   :  { %v2391_v21 = vadd.f32 %v2390_v28, %v2372_v9 }
 0x530   :  { %v2395_v59 = vpop.f32.mrf.mxu0 }
 0x531   :  { %v2414_v62 = vpop.f32.mrf.mxu1  ;;  %v2410_v55 = vadd.f32 %v2409_v38, %v2391_v21 }
 0x533   :  { %v2429_v18 = vadd.f32 %v2428_v47, %v2410_v55 }
 0x534   :  { %v2374_v52 = vpop.f32.mrf.mxu3 }
 0x535   :  { %v2431_v20 = vpop.f32.mrf.mxu2  ;;  %v2375_v15 = vadd.f32 %v2374_v52, %v2356_v27 }
 0x537   :  { %v2394_v33 = vadd.f32 %v2393_v46, %v2375_v15 }
 0x538   :  { %v2464_v56 = vpop.f32.mrf.mxu0 }
 0x539   :  { %v2483_v13 = vpop.f32.mrf.mxu1  ;;  %v2413_v30 = vadd.f32 %v2412_v48, %v2394_v33 }
 0x53b   :  { %v2432_v6 = vadd.f32 %v2431_v20, %v2413_v30 }
 0x53c   :  { %v2376_v1 = vpop.f32.mrf.mxu3 }
 0x53d   :  { %v2433_v5 = vpop.f32.mrf.mxu2  ;;  %v2377_v14 = vadd.f32 %v2376_v1, %v2358_v7 }
 0x53f   :  { %v2396_v49 = vadd.f32 %v2395_v59, %v2377_v14 }
 0x540   :  { %v2466_v39 = vpop.f32.mrf.mxu0 }
 0x541   :  { %v2485_v42 = vpop.f32.mrf.mxu1  ;;  %v2415_v52 = vadd.f32 %v2414_v62, %v2396_v49 }
 0x543   :  { %v2434_v60 = vadd.f32 %v2433_v5, %v2415_v52 }
 0x544   :  { %v2445_v53 = vpop.f32.mrf.mxu3 }
 0x545   :  { %v2446_v3 = vadd.f32 %v2445_v53, %v2427_v40  ;;  %v2502_v11 = vpop.f32.mrf.mxu2 }
 0x547   :  { %v2465_v32 = vadd.f32 %v2464_v56, %v2446_v3 }
 0x548   :  { %v2469_v47 = vpop.f32.mrf.mxu0 }
 0x549   :  { %v2484_v36 = vadd.f32 %v2483_v13, %v2465_v32  ;;  %v2488_v35 = vpop.f32.mrf.mxu1 }
 0x54b   :  { %v2503_v41 = vadd.f32 %v2502_v11, %v2484_v36  ;;  %v7137_v36 = vld [vmem:[%s9533_s22 + $0x18] sm:$0xff] }
 0x54c   :  { %v2447_v22 = vpop.f32.mrf.mxu3  ;;  %2656 = vmatpush.bf16.msrb.mxu3 %v7137_v36 }
 0x54d   :  { %v2448_v24 = vadd.f32 %v2447_v22, %v2429_v18  ;;  %v2512_v28 = vadd.f32 %v2503_v41, %v7813_v16  ;;  %v2504_v19 = vpop.f32.mrf.mxu2  ;;  %v7136_v41 = vld [vmem:[%s9533_s22 + $0x10] sm:$0xff] }
 0x54f   :  { %v2467_v29 = vadd.f32 %v2466_v39, %v2448_v24  ;;  %v2518_v38 = vsel %vm144_vm8, %v2512_v28, 0.0 }
 0x550   :  { %2519 = vadd.xlane.f32.xlu1 %v2518_v38  ;;  %v2471_v59 = vpop.f32.mrf.mxu0  ;;  %2657 = vmatpush.bf16.msrb.mxu3 %v7136_v41 }
 0x551   :  { %v2486_v23 = vadd.f32 %v2485_v42, %v2467_v29  ;;  %v2490_v1 = vpop.f32.mrf.mxu1 }
 0x553   :  { %v2505_v31 = vadd.f32 %v2504_v19, %v2486_v23 }
 0x554   :  { %v2450_v46 = vpop.f32.mrf.mxu3 }
 0x555   :  { %v2451_v51 = vadd.f32 %v2450_v46, %v2432_v6  ;;  %v2513_v26 = vadd.f32 %v2505_v31, %v7815_v17  ;;  %v2507_v48 = vpop.f32.mrf.mxu2 }
 0x557   :  { %v2470_v57 = vadd.f32 %v2469_v47, %v2451_v51  ;;  %v2521_v16 = vsel %vm144_vm8, %v2513_v26, 0.0 }
 0x558   :  { %2522 = vadd.xlane.f32.xlu2 %v2521_v16  ;;  %v7321_v16 = vld [vmem:[%s9514_s15] ss:$0 sm:$0xff] }
 0x559   :  { %v2489_v58 = vadd.f32 %v2488_v35, %v2470_v57 }
 0x55b   :  { %v2508_v61 = vadd.f32 %v2507_v48, %v2489_v58 }
 0x55c   :  { %v2452_v54 = vpop.f32.mrf.mxu3 }
 0x55d   :  { %v2453_v63 = vadd.f32 %v2452_v54, %v2434_v60  ;;  %v2514_v20 = vadd.f32 %v2508_v61, %v7858_v43  ;;  %v2509_v62 = vpop.f32.mrf.mxu2 }
 0x55f   :  { %v2472_v50 = vadd.f32 %v2471_v59, %v2453_v63  ;;  %v2524_v45 = vsel %vm144_vm8, %v2514_v20, 0.0 }
 0x560   :  { %2525 = vadd.xlane.f32.xlu0 %v2524_v45 }
 0x561   :  { %v2491_v17 = vadd.f32 %v2490_v1, %v2472_v50 }
 0x563   :  { %v2510_v2 = vadd.f32 %v2509_v62, %v2491_v17 }
 0x565   :  { %v2515_v4 = vadd.f32 %v2510_v2, %v7860_v44 }
 0x567   :  { %v2527_v0 = vsel %vm144_vm8, %v2515_v4, 0.0 }
 0x568   :  { %2528 = vadd.xlane.f32.xlu1 %v2527_v0 }
 0x5c3   :  { %v2520_v5 = vpop.xlane.xlu1 %2519 }
 0x5c4   :  { %v2530_v8 = vmul.f32 %v2520_v5, %v7664_v34 }
 0x5c6   :  { %v2534_v9 = vsub.f32 %v2512_v28, %v2530_v8 }
 0x5c8   :  { %v2538_v56 = vmul.f32 %v2534_v9, %v2534_v9 }
 0x5ca   :  { %v2542_v43 = vsel %vm144_vm8, %v2538_v56, 0.0 }
 0x5cb   :  { %v2523_v10 = vpop.xlane.xlu2 %2522  ;;  %2543 = vadd.xlane.f32.xlu2 %v2542_v43 }
 0x5cc   :  { %v2531_v12 = vmul.f32 %v2523_v10, %v7664_v34 }
 0x5ce   :  { %v8532_v13 = vsub.f32 %v2513_v26, %v2531_v12 }
 0x5d0   :  { %v2539_v40 = vmul.f32 %v8532_v13, %v8532_v13 }
 0x5d2   :  { %v2545_v44 = vsel %vm144_vm8, %v2539_v40, 0.0 }
 0x5d3   :  { %2546 = vadd.xlane.f32.xlu0 %v2545_v44  ;;  %v2526_v21 = vpop.xlane.xlu0 %2525 }
 0x5d4   :  { %v2532_v53 = vmul.f32 %v2526_v21, %v7664_v34 }
 0x5d6   :  { %v8538_v27 = vsub.f32 %v2514_v20, %v2532_v53  ;;  %v7322_v20 = vld [vmem:[%s9515_s16] ss:$0 sm:$0xff] }
 0x5d8   :  { %v2540_v37 = vmul.f32 %v8538_v27, %v8538_v27 }
 0x5da   :  { %v2548_v3 = vsel %vm144_vm8, %v2540_v37, 0.0 }
 0x5db   :  { %v2529_v11 = vpop.xlane.xlu1 %2528  ;;  %2549 = vadd.xlane.f32.xlu1 %v2548_v3 }
 0x5dc   :  { %v2533_v55 = vmul.f32 %v2529_v11, %v7664_v34 }
 0x5de   :  { %v8544_v15 = vsub.f32 %v2515_v4, %v2533_v55 }
 0x5e0   :  { %v2541_v32 = vmul.f32 %v8544_v15, %v8544_v15 }
 0x5e2   :  { %v2551_v25 = vsel %vm144_vm8, %v2541_v32, 0.0 }
 0x5e3   :  { %2552 = vadd.xlane.f32.xlu2 %v2551_v25 }
 0x63e   :  { %v2544_v39 = vpop.xlane.xlu2 %2543 }
 0x63f   :  { %v2554_v18 = vmul.f32 %v2544_v39, %v7664_v34 }
 0x641   :  { %v2558_v33 = vadd.f32 1e-05, %v2554_v18 }
 0x643   :  { %7366 = vrsqrt.f32 %v2558_v33  ;;  %vm2568_vm7 = vweird.f32 %v2558_v33 }
 0x646   :  { %v2547_v42 = vpop.xlane.xlu0 %2546 }
 0x647   :  { %v2555_v22 = vmul.f32 %v2547_v42, %v7664_v34 }
 0x649   :  { %v7367_v7 = vpop.eup %7366  ;;  %v2559_v24 = vadd.f32 1e-05, %v2555_v22 }
 0x64a   :  { %v2563_v28 = vmul.f32 %v7367_v7, %v2558_v33  ;;  %vm2569_vm6 = vweird.f32 %v7367_v7 }
 0x64b   :  { %7368 = vrsqrt.f32 %v2559_v24  ;;  %vm2570_vm9 = vmor %vm2568_vm7, %vm2569_vm6  ;;  %vm2578_vm11 = vweird.f32 %v2559_v24 }
 0x64c   :  { %v2564_v19 = vmul.f32 %v7367_v7, %v2563_v28 }
 0x64e   :  { %v2565_v30 = vmul.f32 0.5, %v2564_v19  ;;  %v2550_v14 = vpop.xlane.xlu1 %2549 }
 0x64f   :  { %v2556_v29 = vmul.f32 %v2550_v14, %v7664_v34 }
 0x650   :  { %v2566_v38 = vsub.f32 1.5, %v2565_v30 }
 0x651   :  { %v7369_v23 = vpop.eup %7368  ;;  %v2560_v6 = vadd.f32 1e-05, %v2556_v29 }
 0x652   :  { %v2567_v49 = vmul.f32 %v7367_v7, %v2566_v38  ;;  %v2573_v31 = vmul.f32 %v7369_v23, %v2559_v24  ;;  %vm2579_vm10 = vweird.f32 %v7369_v23 }
 0x653   :  { %7370 = vrsqrt.f32 %v2560_v6  ;;  %vm2580_vm12 = vmor %vm2578_vm11, %vm2579_vm10  ;;  %vm2588_vm14 = vweird.f32 %v2560_v6 }
 0x654   :  { %v2574_v47 = vmul.f32 %v7369_v23, %v2573_v31  ;;  %v2571_v46 = vsel %vm2570_vm9, %v7367_v7, %v2567_v49 }
 0x655   :  { %v2602_v48 = vmul.f32 %v2571_v46, %v2534_v9 }
 0x656   :  { %v2575_v51 = vmul.f32 0.5, %v2574_v47  ;;  %v2553_v26 = vpop.xlane.xlu2 %2552 }
 0x657   :  { %v2557_v35 = vmul.f32 %v2553_v26, %v7664_v34  ;;  %v2609_v59 = vmul.f32 %v7321_v16, %v2602_v48  ;;  %v7138_v48 = vld [vmem:[%s9506_s7 + $0x10] sm:$0xff] }
 0x658   :  { %v2576_v52 = vsub.f32 1.5, %v2575_v51  ;;  %v7139_v51 = vld [vmem:[%s9506_s7 + $0x18] sm:$0xff]  ;;  %s5231_s7 = sshll.u32 %s9520_s21, 4  ;;  %s5232_s7 = int_to_ptr.hbm [resolvable:$true] %s5231_s7 }
 0x659   :  { %v7371_v57 = vpop.eup %7370  ;;  %v2561_v58 = vadd.f32 1e-05, %v2557_v35  ;;  %v8566_v2 = vadd.f32 %v7322_v20, %v2609_v59  ;;  %2917 = vmatpush.bf16.msra.mxu2 %v7139_v51 }
 0x65a   :  { %v2577_v60 = vmul.f32 %v7369_v23, %v2576_v52  ;;  %v2583_v61 = vmul.f32 %v7371_v57, %v2560_v6  ;;  %vm2589_vm13 = vweird.f32 %v7371_v57 }
 0x65b   :  { %7372 = vrsqrt.f32 %v2561_v58  ;;  %vm2590_vm15 = vmor %vm2588_vm14, %vm2589_vm13  ;;  %vm2598_vm1 = vweird.f32 %v2561_v58 }
 0x65c   :  { %v2581_v54 = vsel %vm2580_vm12, %v7369_v23, %v2577_v60  ;;  %v2584_v63 = vmul.f32 %v7371_v57, %v2583_v61 }
 0x65d   :  { %v2603_v50 = vmul.f32 %v2581_v54, %v8532_v13  ;;  %2918 = vmatpush.bf16.msra.mxu2 %v7138_v48 }
 0x65e   :  { %v2585_v45 = vmul.f32 0.5, %v2584_v63 }
 0x65f   :  { %v2610_v1 = vmul.f32 %v7321_v16, %v2603_v50 }
 0x660   :  { %v2586_v17 = vsub.f32 1.5, %v2585_v45 }
 0x661   :  { %v7373_v62 = vpop.eup %7372  ;;  %v8568_v4 = vadd.f32 %v7322_v20, %v2610_v1 }
 0x662   :  { %v2587_v0 = vmul.f32 %v7371_v57, %v2586_v17  ;;  %v2593_v5 = vmul.f32 %v7373_v62, %v2561_v58  ;;  %vm2599_vm0 = vweird.f32 %v7373_v62 }
 0x663   :  { %v2620_v8 = vpack.c.bf16 %v8568_v4, %v8566_v2  ;;  %vm2600_vm2 = vmor %vm2598_vm1, %vm2599_vm0 }
 0x664   :  { %v2594_v9 = vmul.f32 %v7373_v62, %v2593_v5  ;;  %v2591_v56 = vsel %vm2590_vm15, %v7371_v57, %v2587_v0 }
 0x665   :  { %5960 = vmatmul.msk.bf16.vlgmr.msrb.gmra.mxu3 %vm144_vm8, %v2620_v8  ;;  %v2604_v12 = vmul.f32 %v2591_v56, %v8538_v27  ;;  %v7323_v27 = vld [vmem:[%s9505_s6 + $0x1] ss:$0 sm:$0xff] }
 0x666   :  { %v2595_v43 = vmul.f32 0.5, %v2594_v9 }
 0x667   :  { %v2611_v21 = vmul.f32 %v7321_v16, %v2604_v12 }
 0x668   :  { %v2596_v10 = vsub.f32 1.5, %v2595_v43 }
 0x669   :  { %v8575_v37 = vadd.f32 %v7322_v20, %v2611_v21 }
 0x66a   :  { %v2597_v13 = vmul.f32 %v7373_v62, %v2596_v10 }
 0x66c   :  { %v2601_v40 = vsel %vm2600_vm2, %v7373_v62, %v2597_v13 }
 0x66d   :  { %v2605_v44 = vmul.f32 %v2601_v40, %v8544_v15 }
 0x66f   :  { %v2612_v53 = vmul.f32 %v7321_v16, %v2605_v44 }
 0x671   :  { %v8577_v3 = vadd.f32 %v7322_v20, %v2612_v53 }
 0x673   :  { %v2621_v11 = vpack.c.bf16 %v8577_v3, %v8575_v37 }
 0x675   :  { %5961 = vmatmul.msk.bf16.gmra.mxu3 %vm144_vm8, %v2621_v11 }
 0x6e8   :  { %v2659_v55 = vpop.f32.mrf.mxu3 }
 0x6e9   :  { %v2660_v32 = vadd.f32 %v7323_v27, %v2659_v55 }
 0x6eb   :  { %2675 = vrot.lane.b32.xlu0 %v2660_v32, %s7445_s23  ;;  %v2669_v41 = vmul.f32 0.35355338, %v2660_v32 }
 0x6f0   :  { %v2661_v15 = vpop.f32.mrf.mxu3 }
 0x6f1   :  { %v2662_v25 = vadd.f32 %v7323_v27, %v2661_v15 }
 0x6f3   :  { %2677 = vrot.lane.b32.xlu2 %v2662_v25, %s7445_s23  ;;  %v2670_v24 = vmul.f32 0.35355338, %v2662_v25 }
 0x6f8   :  { %v2664_v36 = vpop.f32.mrf.mxu3 }
 0x6f9   :  { %v2665_v39 = vadd.f32 %v7323_v27, %v2664_v36 }
 0x6fb   :  { %2714 = vrot.lane.b32.xlu1 %v2665_v39, %s7445_s23  ;;  %2781 = vrot.lane.b32.xlu2 %v2665_v39, %s7446_s1  ;;  %v2671_v19 = vmul.f32 0.35355338, %v2665_v39 }
 0x700   :  { %v2666_v18 = vpop.f32.mrf.mxu3 }
 0x701   :  { %v2667_v33 = vadd.f32 %v7323_v27, %v2666_v18 }
 0x703   :  { %2771 = vrot.lane.b32.xlu1 %v2660_v32, %s7446_s1  ;;  %2716 = vrot.lane.b32.xlu0 %v2667_v33, %s7445_s23  ;;  %v2672_v38 = vmul.f32 0.35355338, %v2667_v33 }
 0x70b   :  { %2783 = vrot.lane.b32.xlu1 %v2667_v33, %s7446_s1  ;;  %2773 = vrot.lane.b32.xlu0 %v2662_v25, %s7446_s1 }
 0x74d   :  { %v2678_v7 = vpop.permute.xlu2 %2677 }
 0x74e   :  { %v2682_v28 = vmul.f32 %v2678_v7, %v2670_v24  ;;  %v2792_v6 = vmul.f32 %v2678_v7, %v2672_v38 }
 0x75d   :  { %v2676_v42 = vpop.permute.xlu0 %2675 }
 0x75e   :  { %v2681_v22 = vmul.f32 %v2676_v42, %v2669_v41  ;;  %v2791_v14 = vmul.f32 %v2676_v42, %v2671_v19 }
 0x760   :  { %5962 = vmatmul.msk.f32.vlgmr.msrb.gmra.mxu0 %vm144_vm8, %v2681_v22 }
 0x768   :  { %5963 = vmatmul.msk.f32.gmra.mxu0 %vm144_vm8, %v2682_v28 }
 0x76d   :  { %v2715_v30 = vpop.permute.xlu1 %2714 }
 0x76e   :  { %v2720_v29 = vmul.f32 %v2715_v30, %v2669_v41  ;;  %v2822_v31 = vmul.f32 %v2715_v30, %v2671_v19  ;;  %v2782_v41 = vpop.permute.xlu2 %2781 }
 0x770   :  { %5964 = vmatmul.msk.f32.vlgmr.msrb.gmra.mxu1 %vm144_vm8, %v2720_v29  ;;  %5966 = vmatmul.msk.f32.vlgmr.msra.gmra.mxu0 %vm144_vm8, %v2791_v14 }
 0x775   :  { %v2717_v23 = vpop.permute.xlu0 %2716  ;;  %v2772_v13 = vpop.permute.xlu1 %2771 }
 0x776   :  { %v2721_v49 = vmul.f32 %v2717_v23, %v2670_v24  ;;  %v2823_v47 = vmul.f32 %v2717_v23, %v2672_v38 }
 0x778   :  { %5965 = vmatmul.msk.f32.gmra.mxu1 %vm144_vm8, %v2721_v49  ;;  %5967 = vmatmul.msk.f32.gmra.mxu0 %vm144_vm8, %v2792_v6 }
 0x77d   :  { %v2784_v19 = vpop.permute.xlu1 %2783  ;;  %v2774_v30 = vpop.permute.xlu0 %2773 }
 0x780   :  { %5968 = vmatmul.msk.f32.vlgmr.msra.gmra.mxu1 %vm144_vm8, %v2822_v31 }
 0x788   :  { %5969 = vmatmul.msk.f32.gmra.mxu1 %vm144_vm8, %v2823_v47 }
 0x7dd   :  { %v2706_v46 = vpop.f32.mrf.mxu0 }
 0x7e5   :  { %v2709_v16 = vpop.f32.mrf.mxu0 }
 0x7ed   :  { %v2745_v26 = vpop.f32.mrf.mxu1  ;;  %v2816_v17 = vpop.f32.mrf.mxu0 }
 0x7ee   :  { %v2751_v35 = vmax.f32 %v2706_v46, %v2745_v26 }
 0x7f0   :  { %v2753_v52 = vsub.f32 %v2706_v46, %v2751_v35  ;;  %v2759_v57 = vsub.f32 %v2745_v26, %v2751_v35 }
 0x7f2   :  { %v2755_v58 = vmul.f32 1.442695, %v2753_v52  ;;  %v2761_v60 = vmul.f32 1.442695, %v2759_v57 }
 0x7f4   :  { %7374 = vpow2.f32 %v2755_v58 }
 0x7f5   :  { %7376 = vpow2.f32 %v2761_v60  ;;  %v2748_v61 = vpop.f32.mrf.mxu1  ;;  %v2819_v21 = vpop.f32.mrf.mxu0 }
 0x7f6   :  { %v2752_v54 = vmax.f32 %v2709_v16, %v2748_v61 }
 0x7f8   :  { %v2754_v63 = vsub.f32 %v2709_v16, %v2752_v54  ;;  %v2760_v20 = vsub.f32 %v2748_v61, %v2752_v54 }
 0x7fa   :  { %v7375_v59 = vpop.eup %7374  ;;  %v2757_v50 = vmul.f32 1.442695, %v2754_v63  ;;  %v2763_v45 = vmul.f32 1.442695, %v2760_v20  ;;  %v7324_v20 = vld [vmem:[%s9507_s8 + $0x1] ss:$0 sm:$0xff] }
 0x7fb   :  { %v7377_v1 = vpop.eup %7376 }
 0x7fc   :  { %v2765_v62 = vadd.f32 %v7377_v1, %v7375_v59  ;;  %7378 = vpow2.f32 %v2757_v50 }
 0x7fd   :  { %7380 = vpow2.f32 %v2763_v45  ;;  %v2847_v0 = vpop.f32.mrf.mxu1 }
 0x7fe   :  { %v2853_v5 = vmax.f32 %v2816_v17, %v2847_v0  ;;  %7382 = vrcp.f32 %v2765_v62 }
 0x800   :  { %v2855_v8 = vsub.f32 %v2816_v17, %v2853_v5  ;;  %v2861_v9 = vsub.f32 %v2847_v0, %v2853_v5 }
 0x802   :  { %v7379_v56 = vpop.eup %7378  ;;  %v2857_v43 = vmul.f32 1.442695, %v2855_v8  ;;  %v2863_v10 = vmul.f32 1.442695, %v2861_v9 }
 0x803   :  { %v7381_v12 = vpop.eup %7380 }
 0x804   :  { %v2766_v40 = vadd.f32 %v7381_v12, %v7379_v56  ;;  %7384 = vpow2.f32 %v2857_v43  ;;  %v7383_v44 = vpop.eup %7382 }
 0x805   :  { %7386 = vpow2.f32 %v2863_v10  ;;  %v2850_v53 = vpop.f32.mrf.mxu1  ;;  %v2769_v27 = vmul.f32 %v7383_v44, %v7375_v59  ;;  %v2779_v15 = vmul.f32 %v7383_v44, %v7377_v1 }
 0x806   :  { %7388 = vrcp.f32 %v2766_v40  ;;  %v2854_v11 = vmax.f32 %v2819_v21, %v2850_v53 }
 0x807   :  { %v2777_v42 = vmul.f32 %v2772_v13, %v2769_v27  ;;  %v2787_v7 = vmul.f32 %v2782_v41, %v2779_v15 }
 0x808   :  { %v2856_v55 = vsub.f32 %v2819_v21, %v2854_v11  ;;  %v2862_v32 = vsub.f32 %v2850_v53, %v2854_v11 }
 0x809   :  { %v2789_v38 = vadd.f32 %v2787_v7, %v2777_v42  ;;  %v6087_v7 = vld [vmem:[%s9510_s11 + $0x180] sm:$0xf] }
 0x80a   :  { %v7385_v25 = vpop.eup %7384  ;;  %v2859_v36 = vmul.f32 1.442695, %v2856_v55  ;;  %v2865_v39 = vmul.f32 1.442695, %v2862_v32 }
 0x80b   :  { %v7387_v18 = vpop.eup %7386 }
 0x80c   :  { %v7389_v33 = vpop.eup %7388  ;;  %v2867_v22 = vadd.f32 %v7387_v18, %v7385_v25  ;;  %7390 = vpow2.f32 %v2859_v36 }
 0x80d   :  { %v2770_v24 = vmul.f32 %v7389_v33, %v7379_v56  ;;  %v2780_v28 = vmul.f32 %v7389_v33, %v7381_v12  ;;  %7392 = vpow2.f32 %v2865_v39 }
 0x80e   :  { %7394 = vrcp.f32 %v2867_v22 }
 0x80f   :  { %v2778_v14 = vmul.f32 %v2774_v30, %v2770_v24  ;;  %v2788_v29 = vmul.f32 %v2784_v19, %v2780_v28  ;;  %v7164_v24 = vld [vmem:[%s9510_s11 + $0x1bc] sm:$0xf0] }
 0x810   :  { %v6088_v28 = vor.u32 %v7164_v24, %v6087_v7  ;;  %v6111_v24 = vld [vmem:[%s9510_s11 + $0x198] sm:$0xf] }
 0x811   :  { %v2790_v23 = vadd.f32 %v2788_v29, %v2778_v14  ;;  %v7156_v14 = vld [vmem:[%s9510_s11 + $0x184] sm:$0xf] }
 0x812   :  { %v7391_v6 = vpop.eup %7390  ;;  %3284 = vmatpush.bf16.msra.mxu3 %v6088_v28  ;;  %v7167_v28 = vld [vmem:[%s9510_s11 + $0x1d4] sm:$0xf0] }
 0x813   :  { %v7393_v49 = vpop.eup %7392  ;;  %v2881_v31 = vpack.c.bf16 %v2790_v23, %v2789_v38  ;;  %v6089_v38 = vld [vmem:[%s9510_s11 + $0x1c0] sm:$0xf0]  ;;  %v6095_v23 = vld [vmem:[%s9510_s11 + $0x188] sm:$0xf] }
 0x814   :  { %v2868_v47 = vadd.f32 %v7393_v49, %v7391_v6  ;;  %v7395_v46 = vpop.eup %7394 }
 0x815   :  { %5983 = vmatmul.msk.bf16.vlgmr.msra.gmra.mxu2 %vm144_vm8, %v2881_v31  ;;  %v2871_v51 = vmul.f32 %v7395_v46, %v7385_v25  ;;  %v2875_v26 = vmul.f32 %v7395_v46, %v7387_v18  ;;  %v6092_v31 = vor.u32 %v7156_v14, %v6089_v38  ;;  %v6112_v14 = vor.u32 %v7167_v28, %v6111_v24  ;;  %v7142_v38 = vld [vmem:[%s9510_s11 + $0x114] sm:$0xf]  ;;  %v7144_v28 = vld [vmem:[%s9510_s11 + $0x124] sm:$0xf] }
 0x816   :  { %7396 = vrcp.f32 %v2868_v47 }
 0x817   :  { %v2873_v16 = vmul.f32 %v2871_v51, %v2772_v13  ;;  %v2877_v48 = vmul.f32 %v2875_v26, %v2782_v41  ;;  %v6023_v51 = vld [vmem:[%s9510_s11 + $0x100] sm:$0xf]  ;;  %3303 = vmatpush.bf16.msrb.mxu0 %v6092_v31 }
 0x818   :  { %v7148_v26 = vld [vmem:[%s9510_s11 + $0x13c] sm:$0xf0] }
 0x819   :  { %v2879_v61 = vadd.f32 %v2877_v48, %v2873_v16  ;;  %v6033_v16 = vld [vmem:[%s9510_s11 + $0x148] sm:$0xf0]  ;;  %v7140_v48 = vld [vmem:[%s9510_s11 + $0x104] sm:$0xf] }
 0x81c   :  { %v7397_v35 = vpop.eup %7396 }
 0x81d   :  { %v2876_v52 = vmul.f32 %v7397_v35, %v7393_v49  ;;  %v2872_v57 = vmul.f32 %v7397_v35, %v7391_v6  ;;  %v7165_v6 = vld [vmem:[%s9510_s11 + $0x1c4] sm:$0xf0]  ;;  %v7141_v35 = vld [vmem:[%s9510_s11 + $0x10c] sm:$0xf] }
 0x81e   :  { %v6096_v47 = vor.u32 %v7165_v6, %v6095_v23 }
 0x81f   :  { %v2874_v58 = vmul.f32 %v2872_v57, %v2774_v30  ;;  %v2878_v60 = vmul.f32 %v2876_v52, %v2784_v19  ;;  %v7157_v19 = vld [vmem:[%s9510_s11 + $0x18c] sm:$0xf]  ;;  %v6024_v57 = vor.u32 %v7148_v26, %v6023_v51 }
 0x820   :  { %v6097_v30 = vld [vmem:[%s9510_s11 + $0x1c8] sm:$0xf0]  ;;  %3322 = vmatpush.bf16.msrb.mxu1 %v6096_v47  ;;  %v6041_v47 = vld [vmem:[%s9510_s11 + $0x150] sm:$0xf0] }
 0x821   :  { %v2880_v54 = vadd.f32 %v2878_v60, %v2874_v58  ;;  %v6100_v29 = vor.u32 %v7157_v19, %v6097_v30  ;;  %v6036_v58 = vor.u32 %v7141_v35, %v6033_v16  ;;  %v6025_v60 = vld [vmem:[%s9510_s11 + $0x140] sm:$0xf0]  ;;  %3285 = vmatpush.bf16.msra.mxu3 %v6024_v57  ;;  %v7143_v19 = vld [vmem:[%s9510_s11 + $0x11c] sm:$0xf]  ;;  %v6044_v35 = vor.u32 %v7142_v38, %v6041_v47 }
 0x822   :  { %v6145_v47 = vld [vmem:[%s9510_s11 + $0x1f8] sm:$0xf0] }
 0x823   :  { %v2882_v63 = vpack.c.bf16 %v2880_v54, %v2879_v61  ;;  %3341 = vmatpush.bf16.msrb.mxu2 %v6100_v29  ;;  %v6031_v61 = vld [vmem:[%s9510_s11 + $0x108] sm:$0xf]  ;;  %v6049_v29 = vld [vmem:[%s9510_s11 + $0x158] sm:$0xf0] }
 0x824   :  { %v7149_v54 = vld [vmem:[%s9510_s11 + $0x144] sm:$0xf0]  ;;  %v6052_v31 = vor.u32 %v7143_v19, %v6049_v29  ;;  %v6057_v19 = vld [vmem:[%s9510_s11 + $0x160] sm:$0xf0] }
 0x825   :  { %5984 = vmatmul.msk.bf16.gmra.mxu2 %vm144_vm8, %v2882_v63  ;;  %v6028_v63 = vor.u32 %v7140_v48, %v6025_v60  ;;  %v7326_v48 = vld [vmem:[%s9509_s10 + $0x1] ss:$0 sm:$0xff]  ;;  %v7153_v29 = vld [vmem:[%s9510_s11 + $0x164] sm:$0xf0] }
 0x827   :  { %3342 = vmatpush.bf16.msrb.mxu2 %v6036_v58  ;;  %3304 = vmatpush.bf16.msrb.mxu0 %v6028_v63 }
 0x898   :  { %v2920_v59 = vpop.f32.mrf.mxu2 }
 0x899   :  { %v2921_v50 = vadd.f32 %v7324_v20, %v2920_v59 }
 0x89b   :  { %v2930_v45 = vadd.f32 %v2921_v50, %v8566_v2 }
 0x89d   :  { %v2938_v1 = vsel %vm144_vm8, %v2930_v45, 0.0 }
 0x89e   :  { %2939 = vadd.xlane.f32.xlu0 %v2938_v1 }
 0x8a0   :  { %v2922_v17 = vpop.f32.mrf.mxu2 }
 0x8a1   :  { %v2923_v62 = vadd.f32 %v7324_v20, %v2922_v17 }
 0x8a3   :  { %v2931_v0 = vadd.f32 %v2923_v62, %v8568_v4 }
 0x8a5   :  { %v2941_v5 = vsel %vm144_vm8, %v2931_v0, 0.0 }
 0x8a6   :  { %2942 = vadd.xlane.f32.xlu2 %v2941_v5 }
 0x8a8   :  { %v2925_v8 = vpop.f32.mrf.mxu2 }
 0x8a9   :  { %v2926_v9 = vadd.f32 %v7324_v20, %v2925_v8 }
 0x8ab   :  { %v2932_v56 = vadd.f32 %v2926_v9, %v8575_v37 }
 0x8ad   :  { %v2944_v43 = vsel %vm144_vm8, %v2932_v56, 0.0 }
 0x8ae   :  { %2945 = vadd.xlane.f32.xlu1 %v2944_v43 }
 0x8b0   :  { %v2927_v10 = vpop.f32.mrf.mxu2 }
 0x8b1   :  { %v2928_v12 = vadd.f32 %v7324_v20, %v2927_v10  ;;  %v6032_v20 = vor.u32 %v7149_v54, %v6031_v61 }
 0x8b3   :  { %v2933_v2 = vadd.f32 %v2928_v12, %v8577_v3  ;;  %3323 = vmatpush.bf16.msrb.mxu1 %v6032_v20 }
 0x8b5   :  { %v2947_v13 = vsel %vm144_vm8, %v2933_v2, 0.0 }
 0x8b6   :  { %2948 = vadd.xlane.f32.xlu0 %v2947_v13  ;;  %v7166_v13 = vld [vmem:[%s9510_s11 + $0x1cc] sm:$0xf0] }
 0x8b7   :  { %3398 = vmatpush.bf16.msra.mxu1 %v6112_v14  ;;  %v6060_v14 = vor.u32 %v7144_v28, %v6057_v19  ;;  %v7173_v28 = vld [vmem:[%s9512_s13 + $0x408] sm:$0xff] }
 0x8b8   :  { %v7197_v19 = vld [vmem:[%s9512_s13 + $0x4c8] sm:$0xff] }
 0x911   :  { %v2940_v40 = vpop.xlane.xlu0 %2939 }
 0x912   :  { %v2950_v4 = vmul.f32 %v2940_v40, %v7664_v34 }
 0x914   :  { %v8621_v44 = vsub.f32 %v2930_v45, %v2950_v4 }
 0x916   :  { %v2958_v21 = vmul.f32 %v8621_v44, %v8621_v44 }
 0x918   :  { %v2962_v37 = vsel %vm144_vm8, %v2958_v21, 0.0  ;;  %v7159_v21 = vld [vmem:[%s9510_s11 + $0x19c] sm:$0xf] }
 0x919   :  { %v2943_v53 = vpop.xlane.xlu2 %2942  ;;  %2963 = vadd.xlane.f32.xlu2 %v2962_v37  ;;  %v6113_v37 = vld [vmem:[%s9510_s11 + $0x1d8] sm:$0xf0] }
 0x91a   :  { %v2951_v11 = vmul.f32 %v2943_v53, %v7664_v34  ;;  %v7158_v53 = vld [vmem:[%s9510_s11 + $0x194] sm:$0xf] }
 0x91c   :  { %v8627_v27 = vsub.f32 %v2931_v0, %v2951_v11 }
 0x91e   :  { %v2959_v3 = vmul.f32 %v8627_v27, %v8627_v27 }
 0x920   :  { %v2965_v55 = vsel %vm144_vm8, %v2959_v3, 0.0  ;;  %v6116_v3 = vor.u32 %v7159_v21, %v6113_v37 }
 0x921   :  { %v2946_v32 = vpop.xlane.xlu1 %2945  ;;  %2966 = vadd.xlane.f32.xlu1 %v2965_v55  ;;  %v6105_v55 = vld [vmem:[%s9510_s11 + $0x1d0] sm:$0xf0] }
 0x922   :  { %v2952_v15 = vmul.f32 %v2946_v32, %v7664_v34  ;;  %3417 = vmatpush.bf16.msra.mxu2 %v6116_v3 }
 0x924   :  { %v8633_v25 = vsub.f32 %v2932_v56, %v2952_v15 }
 0x926   :  { %v2960_v36 = vmul.f32 %v8633_v25, %v8633_v25  ;;  %3418 = vmatpush.bf16.msra.mxu2 %v6052_v31 }
 0x928   :  { %v2968_v39 = vsel %vm144_vm8, %v2960_v36, 0.0 }
 0x929   :  { %2969 = vadd.xlane.f32.xlu0 %v2968_v39  ;;  %v2949_v18 = vpop.xlane.xlu0 %2948  ;;  %v6108_v39 = vor.u32 %v7158_v53, %v6105_v55 }
 0x92a   :  { %v2953_v33 = vmul.f32 %v2949_v18, %v7664_v34  ;;  %v6039_v18 = vld [vmem:[%s9510_s11 + $0x110] sm:$0xf] }
 0x92b   :  { %3379 = vmatpush.bf16.msra.mxu0 %v6108_v39  ;;  %v6127_v39 = vld [vmem:[%s9510_s11 + $0x1a8] sm:$0xf] }
 0x92c   :  { %v8639_v41 = vsub.f32 %v2933_v2, %v2953_v33  ;;  %v6103_v2 = vld [vmem:[%s9510_s11 + $0x190] sm:$0xf] }
 0x92d   :  { %v6104_v4 = vor.u32 %v7166_v13, %v6103_v2  ;;  %v7150_v33 = vld [vmem:[%s9510_s11 + $0x14c] sm:$0xf0] }
 0x92e   :  { %v2961_v42 = vmul.f32 %v8639_v41, %v8639_v41  ;;  %v6040_v7 = vor.u32 %v7150_v33, %v6039_v18  ;;  %v7169_v33 = vld [vmem:[%s9510_s11 + $0x1e4] sm:$0xf0] }
 0x92f   :  { %3360 = vmatpush.bf16.msrb.mxu3 %v6104_v4  ;;  %3380 = vmatpush.bf16.msra.mxu0 %v6044_v35 }
 0x930   :  { %v2971_v22 = vsel %vm144_vm8, %v2961_v42, 0.0  ;;  %v8731_v42 = vld [vmem:[%s9508_s9 + $0x1] ss:$0 sm:$0xff] }
 0x931   :  { %2972 = vadd.xlane.f32.xlu2 %v2971_v22 }
 0x933   :  { %3361 = vmatpush.bf16.msrb.mxu3 %v6040_v7  ;;  %v6128_v7 = vor.u32 %v7169_v33, %v6127_v39  ;;  %v7175_v39 = vld [vmem:[%s9512_s13 + $0x418] sm:$0xff]  ;;  %v7181_v33 = vld [vmem:[%s9512_s13 + $0x448] sm:$0xff] }
 0x98c   :  { %v2964_v49 = vpop.xlane.xlu2 %2963 }
 0x98d   :  { %v2974_v46 = vmul.f32 %v2964_v49, %v7664_v34 }
 0x98f   :  { %v2978_v52 = vadd.f32 1e-05, %v2974_v46  ;;  %v6047_v46 = vld [vmem:[%s9510_s11 + $0x118] sm:$0xf] }
 0x991   :  { %7398 = vrsqrt.f32 %v2978_v52  ;;  %vm2988_vm4 = vweird.f32 %v2978_v52 }
 0x994   :  { %v2967_v59 = vpop.xlane.xlu1 %2966 }
 0x995   :  { %v2975_v50 = vmul.f32 %v2967_v59, %v7664_v34 }
 0x997   :  { %v7399_v45 = vpop.eup %7398  ;;  %v2979_v1 = vadd.f32 1e-05, %v2975_v50 }
 0x998   :  { %v2983_v17 = vmul.f32 %v7399_v45, %v2978_v52  ;;  %vm2989_vm3 = vweird.f32 %v7399_v45 }
 0x999   :  { %7400 = vrsqrt.f32 %v2979_v1  ;;  %vm8713_vm5 = vmor %vm2988_vm4, %vm2989_vm3  ;;  %vm2998_vm7 = vweird.f32 %v2979_v1 }
 0x99a   :  { %v2984_v62 = vmul.f32 %v7399_v45, %v2983_v17 }
 0x99c   :  { %v2985_v0 = vmul.f32 0.5, %v2984_v62  ;;  %v2970_v5 = vpop.xlane.xlu0 %2969 }
 0x99d   :  { %v2976_v8 = vmul.f32 %v2970_v5, %v7664_v34 }
 0x99e   :  { %v2986_v9 = vsub.f32 1.5, %v2985_v0 }
 0x99f   :  { %v7401_v56 = vpop.eup %7400  ;;  %v8695_v43 = vadd.f32 1e-05, %v2976_v8  ;;  %v6119_v8 = vld [vmem:[%s9510_s11 + $0x1a0] sm:$0xf] }
 0x9a0   :  { %v2987_v10 = vmul.f32 %v7399_v45, %v2986_v9  ;;  %v2993_v12 = vmul.f32 %v7401_v56, %v2979_v1  ;;  %vm2999_vm6 = vweird.f32 %v7401_v56  ;;  %v7168_v9 = vld [vmem:[%s9510_s11 + $0x1dc] sm:$0xf0] }
 0x9a1   :  { %7402 = vrsqrt.f32 %v8695_v43  ;;  %vm3000_vm9 = vmor %vm2998_vm7, %vm2999_vm6  ;;  %vm3008_vm11 = vweird.f32 %v8695_v43 }
 0x9a2   :  { %v2994_v40 = vmul.f32 %v7401_v56, %v2993_v12  ;;  %v2991_v32 = vsel %vm8713_vm5, %v7399_v45, %v2987_v10  ;;  %v6129_v10 = vld [vmem:[%s9510_s11 + $0x1e8] sm:$0xf0]  ;;  %v7160_v12 = vld [vmem:[%s9510_s11 + $0x1a4] sm:$0xf] }
 0x9a3   :  { %v3022_v6 = vmul.f32 %v2991_v32, %v8621_v44  ;;  %v7151_v44 = vld [vmem:[%s9510_s11 + $0x154] sm:$0xf0] }
 0x9a4   :  { %v2995_v15 = vmul.f32 0.5, %v2994_v40  ;;  %v2973_v36 = vpop.xlane.xlu2 %2972  ;;  %v6048_v52 = vor.u32 %v7151_v44, %v6047_v46  ;;  %v6121_v40 = vld [vmem:[%s9510_s11 + $0x1e0] sm:$0xf0]  ;;  %v7162_v46 = vld [vmem:[%s9510_s11 + $0x1b4] sm:$0xf] }
 0x9a5   :  { %v2977_v22 = vmul.f32 %v2973_v36, %v7664_v34  ;;  %v3029_v58 = vmul.f32 %v8731_v42, %v3022_v6  ;;  %v6124_v21 = vor.u32 %v7160_v12, %v6121_v40  ;;  %v7152_v36 = vld [vmem:[%s9510_s11 + $0x15c] sm:$0xf0]  ;;  %v7170_v6 = vld [vmem:[%s9510_s11 + $0x1ec] sm:$0xf0]  ;;  %v7193_v12 = vld [vmem:[%s9512_s13 + $0x4a8] sm:$0xff] }
 0x9a6   :  { %v2996_v30 = vsub.f32 1.5, %v2995_v15  ;;  %3399 = vmatpush.bf16.msra.mxu1 %v6048_v52  ;;  %v6071_v44 = vld [vmem:[%s9510_s11 + $0x130] sm:$0xf]  ;;  %v7184_v40 = vld [vmem:[%s9512_s13 + $0x460] sm:$0xff] }
 0x9a7   :  { %v7403_v23 = vpop.eup %7402  ;;  %v2981_v49 = vadd.f32 1e-05, %v2977_v22  ;;  %v8767_v59 = vadd.f32 %v7326_v48, %v3029_v58  ;;  %v6065_v22 = vld [vmem:[%s9510_s11 + $0x168] sm:$0xf0]  ;;  %v7154_v52 = vld [vmem:[%s9510_s11 + $0x16c] sm:$0xf0] }
 0x9a8   :  { %v2997_v51 = vmul.f32 %v7401_v56, %v2996_v30  ;;  %v3003_v26 = vmul.f32 %v7403_v23, %v8695_v43  ;;  %vm3009_vm10 = vweird.f32 %v7403_v23  ;;  %v7161_v43 = vld [vmem:[%s9510_s11 + $0x1ac] sm:$0xf]  ;;  %v6063_v30 = vld [vmem:[%s9510_s11 + $0x128] sm:$0xf]  ;;  %v7147_v58 = vld [vmem:[%s9510_s11 + $0x13c] sm:$0xf] }
 0x9a9   :  { %7404 = vrsqrt.f32 %v2981_v49  ;;  %vm8776_vm12 = vmor %vm3008_vm11, %vm3009_vm10  ;;  %v6132_v13 = vor.u32 %v7161_v43, %v6129_v10  ;;  %vm3018_vm14 = vweird.f32 %v2981_v49  ;;  %v6064_v38 = vor.u32 %v7153_v29, %v6063_v30  ;;  %v7203_v43 = vld [vmem:[%s9512_s13 + $0x4f8] sm:$0xff]  ;;  %v7185_v10 = vld [vmem:[%s9512_s13 + $0x468] sm:$0xff] }
 0x9aa   :  { %v3001_v57 = vsel %vm3000_vm9, %v7401_v56, %v2997_v51  ;;  %v3004_v16 = vmul.f32 %v7403_v23, %v3003_v26  ;;  %v6120_v56 = vor.u32 %v7168_v9, %v6119_v8  ;;  %v6137_v51 = vld [vmem:[%s9510_s11 + $0x1f0] sm:$0xf0]  ;;  %v7219_v30 = vld [vmem:[%s9512_s13 + $0x578] sm:$0xff]  ;;  %v7172_v29 = vld [vmem:[%s9512_s13 + $0x400] sm:$0xff] }
 0x9ab   :  { %v3023_v60 = vmul.f32 %v3001_v57, %v8627_v27  ;;  %v6140_v35 = vor.u32 %v7162_v46, %v6137_v51  ;;  %v6143_v57 = vld [vmem:[%s9510_s11 + $0x1b8] sm:$0xf]  ;;  %v7186_v8 = vld [vmem:[%s9512_s13 + $0x470] sm:$0xff] }
 0x9ac   :  { %v3005_v61 = vmul.f32 0.5, %v3004_v16  ;;  %v6072_v16 = vor.u32 %v7154_v52, %v6071_v44  ;;  %v7194_v9 = vld [vmem:[%s9512_s13 + $0x4b0] sm:$0xff]  ;;  %v7209_v44 = vld [vmem:[%s9512_s13 + $0x528] sm:$0xff] }
 0x9ad   :  { %v3030_v54 = vmul.f32 %v8731_v42, %v3023_v60  ;;  %v6081_v60 = vld [vmem:[%s9510_s11 + $0x178] sm:$0xf0]  ;;  %v7210_v46 = vld [vmem:[%s9512_s13 + $0x530] sm:$0xff]  ;;  %v7233_v52 = vld [vmem:[%s9512_s13 + $0x5e8] sm:$0xff] }
 0x9ae   :  { %v3006_v63 = vsub.f32 1.5, %v3005_v61  ;;  %v7234_v51 = vld [vmem:[%s9512_s13 + $0x5f0] sm:$0xff] }
 0x9af   :  { %v7405_v20 = vpop.eup %7404  ;;  %v8769_v50 = vadd.f32 %v7326_v48, %v3030_v54  ;;  %v6084_v54 = vor.u32 %v7147_v58, %v6081_v60 }
 0x9b0   :  { %v3007_v45 = vmul.f32 %v7403_v23, %v3006_v63  ;;  %v3013_v1 = vmul.f32 %v7405_v20, %v2981_v49  ;;  %vm3019_vm13 = vweird.f32 %v7405_v20  ;;  %v7163_v49 = vld [vmem:[%s9510_s11 + $0x1bc] sm:$0xf]  ;;  %v7146_v63 = vld [vmem:[%s9510_s11 + $0x134] sm:$0xf] }
 0x9b1   :  { %v8773_v17 = vpack.c.bf16 %v8769_v50, %v8767_v59  ;;  %vm3020_vm15 = vmor %vm3018_vm14, %vm3019_vm13  ;;  %v6148_v26 = vor.u32 %v7163_v49, %v6145_v47  ;;  %v7211_v49 = vld [vmem:[%s9512_s13 + $0x538] sm:$0xff]  ;;  %v7217_v47 = vld [vmem:[%s9512_s13 + $0x568] sm:$0xff] }
 0x9b2   :  { %v3014_v27 = vmul.f32 %v7405_v20, %v3013_v1  ;;  %v3011_v0 = vsel %vm8776_vm12, %v7403_v23, %v3007_v45  ;;  %v6135_v23 = vld [vmem:[%s9510_s11 + $0x1b0] sm:$0xf]  ;;  %v6079_v45 = vld [vmem:[%s9510_s11 + $0x138] sm:$0xf] }
 0x9b3   :  { %6149 = vmatmul.msk.bf16.vlgmr.msra.gmra.mxu3 %vm144_vm8, %v8773_v17  ;;  %6151 = vmatmul.msk.bf16.vlgmr.msrb.gmra.mxu0 %vm144_vm8, %v8773_v17  ;;  %v3024_v4 = vmul.f32 %v3011_v0, %v8633_v25  ;;  %v6136_v31 = vor.u32 %v7170_v6, %v6135_v23  ;;  %v7187_v0 = vld [vmem:[%s9512_s13 + $0x478] sm:$0xff]  ;;  %v7218_v23 = vld [vmem:[%s9512_s13 + $0x570] sm:$0xff] }
 0x9b4   :  { %v3015_v5 = vmul.f32 0.5, %v3014_v27  ;;  %6153 = vmatmul.msk.bf16.vlgmr.msrb.gmra.mxu1 %vm144_vm8, %v8773_v17  ;;  %6155 = vmatmul.msk.bf16.vlgmr.msrb.gmra.mxu2 %vm144_vm8, %v8773_v17  ;;  %v7155_v27 = vld [vmem:[%s9510_s11 + $0x174] sm:$0xf0]  ;;  %v7226_v6 = vld [vmem:[%s9512_s13 + $0x5b0] sm:$0xff] }
 0x9b5   :  { %3436 = vmatpush.bf16.msra.mxu3 %v6120_v56  ;;  %3493 = vmatpush.bf16.msrb.mxu2 %v6132_v13  ;;  %v3031_v11 = vmul.f32 %v8731_v42, %v3024_v4  ;;  %v6080_v62 = vor.u32 %v7155_v27, %v6079_v45  ;;  %v7179_v56 = vld [vmem:[%s9512_s13 + $0x438] sm:$0xff]  ;;  %v7202_v13 = vld [vmem:[%s9512_s13 + $0x4f0] sm:$0xff]  ;;  %v7192_v4 = vld [vmem:[%s9512_s13 + $0x4a0] sm:$0xff] }
 0x9b6   :  { %v3016_v2 = vsub.f32 1.5, %v3015_v5  ;;  %3455 = vmatpush.bf16.msrb.mxu0 %v6124_v21  ;;  %3474 = vmatpush.bf16.msrb.mxu1 %v6128_v7  ;;  %v7195_v5 = vld [vmem:[%s9512_s13 + $0x4b8] sm:$0xff]  ;;  %v7177_v21 = vld [vmem:[%s9512_s13 + $0x428] sm:$0xff]  ;;  %v7180_v7 = vld [vmem:[%s9512_s13 + $0x440] sm:$0xff] }
 0x9b7   :  { %v8812_v32 = vadd.f32 %v7326_v48, %v3031_v11  ;;  %v7191_v11 = vld [vmem:[%s9512_s13 + $0x498] sm:$0xff]  ;;  %v7222_v45 = vld [vmem:[%s9512_s13 + $0x590] sm:$0xff] }
 0x9b8   :  { %v3017_v37 = vmul.f32 %v7405_v20, %v3016_v2  ;;  %v7178_v2 = vld [vmem:[%s9512_s13 + $0x430] sm:$0xff]  ;;  %v7207_v27 = vld [vmem:[%s9512_s13 + $0x518] sm:$0xff] }
 0x9ba   :  { %v3021_v53 = vsel %vm3020_vm15, %v7405_v20, %v3017_v37  ;;  %3456 = vmatpush.bf16.msrb.mxu0 %v6060_v14  ;;  %3475 = vmatpush.bf16.msrb.mxu1 %v6064_v38  ;;  %v6073_v20 = vld [vmem:[%s9510_s11 + $0x170] sm:$0xf0]  ;;  %v7201_v37 = vld [vmem:[%s9512_s13 + $0x4e8] sm:$0xff]  ;;  %v7227_v14 = vld [vmem:[%s9512_s13 + $0x5b8] sm:$0xff] }
 0x9bb   :  { %v3025_v3 = vmul.f32 %v3021_v53, %v8639_v41  ;;  %v6055_v41 = vld [vmem:[%s9510_s11 + $0x120] sm:$0xf]  ;;  %v6076_v1 = vor.u32 %v7146_v63, %v6073_v20  ;;  %v7183_v53 = vld [vmem:[%s9512_s13 + $0x458] sm:$0xff]  ;;  %v7214_v20 = vld [vmem:[%s9512_s13 + $0x550] sm:$0xff] }
 0x9bc   :  { %v6056_v18 = vor.u32 %v7152_v36, %v6055_v41  ;;  %v7182_v41 = vld [vmem:[%s9512_s13 + $0x450] sm:$0xff]  ;;  %v7196_v38 = vld [vmem:[%s9512_s13 + $0x4c0] sm:$0xff] }
 0x9bd   :  { %v3032_v55 = vmul.f32 %v8731_v42, %v3025_v3  ;;  %v7145_v42 = vld [vmem:[%s9510_s11 + $0x12c] sm:$0xf]  ;;  %v7176_v3 = vld [vmem:[%s9512_s13 + $0x420] sm:$0xff]  ;;  %v7190_v36 = vld [vmem:[%s9512_s13 + $0x490] sm:$0xff] }
 0x9be   :  { %v6068_v24 = vor.u32 %v7145_v42, %v6065_v22  ;;  %3437 = vmatpush.bf16.msra.mxu3 %v6056_v18  ;;  %v7199_v18 = vld [vmem:[%s9512_s13 + $0x4d8] sm:$0xff]  ;;  %v7174_v42 = vld [vmem:[%s9512_s13 + $0x410] sm:$0xff] }
 0x9bf   :  { %v8814_v15 = vadd.f32 %v7326_v48, %v3032_v55  ;;  %v7171_v48 = vld [vmem:[%s9510_s11 + $0x1f4] sm:$0xf0]  ;;  %v7200_v55 = vld [vmem:[%s9512_s13 + $0x4e0] sm:$0xff]  ;;  %v7198_v22 = vld [vmem:[%s9512_s13 + $0x4d0] sm:$0xff] }
 0x9c0   :  { %3494 = vmatpush.bf16.msrb.mxu2 %v6068_v24  ;;  %v6144_v61 = vor.u32 %v7171_v48, %v6143_v57  ;;  %v7188_v24 = vld [vmem:[%s9512_s13 + $0x480] sm:$0xff]  ;;  %v7215_v57 = vld [vmem:[%s9512_s13 + $0x558] sm:$0xff]  ;;  %v9101_v48 = vld [vmem:[%s9511_s12 + $0x10] sm:$0xff] }
 0x9c1   :  { %v8818_v25 = vpack.c.bf16 %v8814_v15, %v8812_v32  ;;  %v9110_v63 = vperm.slane %v9101_v48, 1 }
 0x9c3   :  { %6150 = vmatmul.msk.bf16.gmra.mxu3 %vm144_vm8, %v8818_v25  ;;  %6152 = vmatmul.msk.bf16.gmra.mxu0 %vm144_vm8, %v8818_v25 }
 0x9c4   :  { %6154 = vmatmul.msk.bf16.gmra.mxu1 %vm144_vm8, %v8818_v25  ;;  %6156 = vmatmul.msk.bf16.gmra.mxu2 %vm144_vm8, %v8818_v25 }
 0x9d3   :  { %6157 = vmatmul.msk.bf16.vlgmr.msrb.gmra.mxu3 %vm144_vm8, %v8773_v17  ;;  %6159 = vmatmul.msk.bf16.vlgmr.msra.gmra.mxu0 %vm144_vm8, %v8773_v17 }
 0x9d4   :  { %6161 = vmatmul.msk.bf16.vlgmr.msra.gmra.mxu1 %vm144_vm8, %v8773_v17  ;;  %6163 = vmatmul.msk.bf16.vlgmr.msra.gmra.mxu2 %vm144_vm8, %v8773_v17 }
 0x9d5   :  { %3512 = vmatpush.bf16.msrb.mxu3 %v6136_v31  ;;  %3569 = vmatpush.bf16.msra.mxu2 %v6148_v26  ;;  %v7235_v31 = vld [vmem:[%s9512_s13 + $0x5f8] sm:$0xff]  ;;  %v7216_v26 = vld [vmem:[%s9512_s13 + $0x560] sm:$0xff] }
 0x9d6   :  { %3531 = vmatpush.bf16.msra.mxu0 %v6140_v35  ;;  %3550 = vmatpush.bf16.msra.mxu1 %v6144_v61  ;;  %v7224_v35 = vld [vmem:[%s9512_s13 + $0x5a0] sm:$0xff] }
 0x9d7   :  { %v7208_v61 = vld [vmem:[%s9512_s13 + $0x520] sm:$0xff] }
 0x9d9   :  { %3513 = vmatpush.bf16.msrb.mxu3 %v6072_v16  ;;  %3570 = vmatpush.bf16.msra.mxu2 %v6084_v54  ;;  %v7223_v16 = vld [vmem:[%s9512_s13 + $0x598] sm:$0xff]  ;;  %v7232_v54 = vld [vmem:[%s9512_s13 + $0x5e0] sm:$0xff] }
 0x9da   :  { %3532 = vmatpush.bf16.msra.mxu0 %v6076_v1  ;;  %3551 = vmatpush.bf16.msra.mxu1 %v6080_v62  ;;  %v9119_v1 = vperm.slane %v9101_v48, 2  ;;  %v7231_v62 = vld [vmem:[%s9512_s13 + $0x5d8] sm:$0xff] }
 0x9e3   :  { %6158 = vmatmul.msk.bf16.gmra.mxu3 %vm144_vm8, %v8818_v25  ;;  %6160 = vmatmul.msk.bf16.gmra.mxu0 %vm144_vm8, %v8818_v25 }
 0x9e4   :  { %6162 = vmatmul.msk.bf16.gmra.mxu1 %vm144_vm8, %v8818_v25  ;;  %6164 = vmatmul.msk.bf16.gmra.mxu2 %vm144_vm8, %v8818_v25 }
 0x9f3   :  { %6165 = vmatmul.msk.bf16.vlgmr.msra.gmra.mxu3 %vm144_vm8, %v8773_v17  ;;  %6167 = vmatmul.msk.bf16.vlgmr.msrb.gmra.mxu0 %vm144_vm8, %v8773_v17 }
 0x9f4   :  { %6169 = vmatmul.msk.bf16.vlgmr.msrb.gmra.mxu1 %vm144_vm8, %v8773_v17  ;;  %6171 = vmatmul.msk.bf16.vlgmr.msrb.gmra.mxu2 %vm144_vm8, %v8773_v17 }
 0x9f5   :  { %4727 = vmatpush.bf16.msrb.mxu0 %v7187_v0  ;;  %4746 = vmatpush.bf16.msrb.mxu1 %v7195_v5 }
 0x9f6   :  { %4708 = vmatpush.bf16.msra.mxu3 %v7179_v56  ;;  %4765 = vmatpush.bf16.msrb.mxu2 %v7203_v43  ;;  %v7221_v56 = vld [vmem:[%s9512_s13 + $0x588] sm:$0xff] }
 0x9f9   :  { %4728 = vmatpush.bf16.msrb.mxu0 %v7186_v8  ;;  %4747 = vmatpush.bf16.msrb.mxu1 %v7194_v9  ;;  %v7213_v9 = vld [vmem:[%s9512_s13 + $0x548] sm:$0xff] }
 0x9fa   :  { %4709 = vmatpush.bf16.msra.mxu3 %v7178_v2  ;;  %4766 = vmatpush.bf16.msrb.mxu2 %v7202_v13 }
 0x9fd   :  { %4729 = vmatpush.bf16.msrb.mxu0 %v7185_v10  ;;  %4748 = vmatpush.bf16.msrb.mxu1 %v7193_v12  ;;  %v9136_v12 = vperm.slane %v9101_v48, 0 }
 0x9fe   :  { %4710 = vmatpush.bf16.msra.mxu3 %v7177_v21  ;;  %4767 = vmatpush.bf16.msrb.mxu2 %v7201_v37  ;;  %v9146_v21 = vperm.slane %v9101_v48, 3 }
 0xa01   :  { %4730 = vmatpush.bf16.msrb.mxu0 %v7184_v40  ;;  %4749 = vmatpush.bf16.msrb.mxu1 %v7192_v4  ;;  %v7206_v40 = vld [vmem:[%s9512_s13 + $0x510] sm:$0xff] }
 0xa02   :  { %4711 = vmatpush.bf16.msra.mxu3 %v7176_v3  ;;  %4768 = vmatpush.bf16.msrb.mxu2 %v7200_v55  ;;  %v7230_v4 = vld [vmem:[%s9512_s13 + $0x5d0] sm:$0xff]  ;;  %v7212_v3 = vld [vmem:[%s9512_s13 + $0x540] sm:$0xff] }
 0xa03   :  { %6166 = vmatmul.msk.bf16.gmra.mxu3 %vm144_vm8, %v8818_v25  ;;  %6168 = vmatmul.msk.bf16.gmra.mxu0 %vm144_vm8, %v8818_v25  ;;  %v7220_v55 = vld [vmem:[%s9512_s13 + $0x580] sm:$0xff] }
 0xa04   :  { %6170 = vmatmul.msk.bf16.gmra.mxu1 %vm144_vm8, %v8818_v25  ;;  %6172 = vmatmul.msk.bf16.gmra.mxu2 %vm144_vm8, %v8818_v25 }
 0xa05   :  { %4731 = vmatpush.bf16.msrb.mxu0 %v7183_v53  ;;  %4750 = vmatpush.bf16.msrb.mxu1 %v7191_v11 }
 0xa06   :  { %4712 = vmatpush.bf16.msra.mxu3 %v7175_v39  ;;  %4769 = vmatpush.bf16.msrb.mxu2 %v7199_v18 }
 0xa09   :  { %4732 = vmatpush.bf16.msrb.mxu0 %v7182_v41  ;;  %4751 = vmatpush.bf16.msrb.mxu1 %v7190_v36 }
 0xa0a   :  { %4713 = vmatpush.bf16.msra.mxu3 %v7174_v42  ;;  %4770 = vmatpush.bf16.msrb.mxu2 %v7198_v22 }
 0xa0d   :  { %4733 = vmatpush.bf16.msrb.mxu0 %v7181_v33  ;;  %v7205_v33 = vld [vmem:[%s9512_s13 + $0x508] sm:$0xff] }
 0xa0e   :  { %4714 = vmatpush.bf16.msra.mxu3 %v7173_v28  ;;  %4771 = vmatpush.bf16.msrb.mxu2 %v7197_v19  ;;  %v7251_v19 = vld [vmem:[%s9512_s13 + $0x678] sm:$0xff] }
 0xa11   :  { %4734 = vmatpush.bf16.msrb.mxu0 %v7180_v7 }
 0xa12   :  { %4715 = vmatpush.bf16.msra.mxu3 %v7172_v29  ;;  %4772 = vmatpush.bf16.msrb.mxu2 %v7196_v38 }
 0xa13   :  { %6173 = vmatmul.msk.bf16.vlgmr.msrb.gmra.mxu3 %vm144_vm8, %v8773_v17  ;;  %6175 = vmatmul.msk.bf16.vlgmr.msra.gmra.mxu0 %vm144_vm8, %v8773_v17 }
 0xa14   :  { %6177 = vmatmul.msk.bf16.vlgmr.msra.gmra.mxu1 %vm144_vm8, %v8773_v17  ;;  %6179 = vmatmul.msk.bf16.vlgmr.msra.gmra.mxu2 %vm144_vm8, %v8773_v17  ;;  %v7189_v17 = vld [vmem:[%s9512_s13 + $0x488] sm:$0xff] }
 0xa15   :  { %4752 = vmatpush.bf16.msrb.mxu1 %v7189_v17  ;;  %4803 = vmatpush.bf16.msra.mxu0 %v7219_v30  ;;  %v7229_v17 = vld [vmem:[%s9512_s13 + $0x5c8] sm:$0xff]  ;;  %v7259_v30 = vld [vmem:[%s9512_s13 + $0x6b8] sm:$0xff] }
 0xa16   :  { %4784 = vmatpush.bf16.msrb.mxu3 %v7211_v49  ;;  %4841 = vmatpush.bf16.msra.mxu2 %v7235_v31  ;;  %v7204_v49 = vld [vmem:[%s9512_s13 + $0x500] sm:$0xff] }
 0xa17   :  { %v7228_v31 = vld [vmem:[%s9512_s13 + $0x5c0] sm:$0xff] }
 0xa19   :  { %4753 = vmatpush.bf16.msrb.mxu1 %v7188_v24  ;;  %4804 = vmatpush.bf16.msra.mxu0 %v7218_v23 }
 0xa1a   :  { %4785 = vmatpush.bf16.msrb.mxu3 %v7210_v46  ;;  %4842 = vmatpush.bf16.msra.mxu2 %v7234_v51  ;;  %v7250_v51 = vld [vmem:[%s9512_s13 + $0x670] sm:$0xff] }
 0xa1d   :  { %4822 = vmatpush.bf16.msra.mxu1 %v7227_v14  ;;  %4805 = vmatpush.bf16.msra.mxu0 %v7217_v47 }
 0xa1e   :  { %4786 = vmatpush.bf16.msrb.mxu3 %v7209_v44  ;;  %4843 = vmatpush.bf16.msra.mxu2 %v7233_v52  ;;  %v7243_v44 = vld [vmem:[%s9512_s13 + $0x638] sm:$0xff] }
 0xa1f   :  { %v7267_v52 = vld [vmem:[%s9512_s13 + $0x6f8] sm:$0xff] }
 0xa21   :  { %4823 = vmatpush.bf16.msra.mxu1 %v7226_v6  ;;  %4806 = vmatpush.bf16.msra.mxu0 %v7216_v26  ;;  %v7258_v26 = vld [vmem:[%s9512_s13 + $0x6b0] sm:$0xff] }
 0xa22   :  { %4787 = vmatpush.bf16.msrb.mxu3 %v7208_v61  ;;  %4844 = vmatpush.bf16.msra.mxu2 %v7232_v54  ;;  %v7257_v61 = vld [vmem:[%s9512_s13 + $0x6a8] sm:$0xff] }
 0xa23   :  { %6174 = vmatmul.msk.bf16.gmra.mxu3 %vm144_vm8, %v8818_v25  ;;  %6176 = vmatmul.msk.bf16.gmra.mxu0 %vm144_vm8, %v8818_v25 }
 0xa24   :  { %6178 = vmatmul.msk.bf16.gmra.mxu1 %vm144_vm8, %v8818_v25  ;;  %6180 = vmatmul.msk.bf16.gmra.mxu2 %vm144_vm8, %v8818_v25  ;;  %v7225_v25 = vld [vmem:[%s9512_s13 + $0x5a8] sm:$0xff] }
 0xa25   :  { %4824 = vmatpush.bf16.msra.mxu1 %v7225_v25  ;;  %4807 = vmatpush.bf16.msra.mxu0 %v7215_v57 }
 0xa26   :  { %4788 = vmatpush.bf16.msrb.mxu3 %v7207_v27  ;;  %4845 = vmatpush.bf16.msra.mxu2 %v7231_v62  ;;  %v7242_v62 = vld [vmem:[%s9512_s13 + $0x630] sm:$0xff] }
 0xa29   :  { %4825 = vmatpush.bf16.msra.mxu1 %v7224_v35  ;;  %4808 = vmatpush.bf16.msra.mxu0 %v7214_v20 }
 0xa2a   :  { %4789 = vmatpush.bf16.msrb.mxu3 %v7206_v40  ;;  %4846 = vmatpush.bf16.msra.mxu2 %v7230_v4  ;;  %v7265_v40 = vld [vmem:[%s9512_s13 + $0x6e8] sm:$0xff] }
 0xa2d   :  { %4826 = vmatpush.bf16.msra.mxu1 %v7223_v16  ;;  %4809 = vmatpush.bf16.msra.mxu0 %v7213_v9 }
 0xa2e   :  { %4790 = vmatpush.bf16.msrb.mxu3 %v7205_v33  ;;  %4847 = vmatpush.bf16.msra.mxu2 %v7229_v17 }
 0xa30   :  { %v3306_v58 = vpop.f32.mrf.mxu0 }
 0xa31   :  { %v3325_v60 = vpop.f32.mrf.mxu1  ;;  %4827 = vmatpush.bf16.msra.mxu1 %v7222_v45  ;;  %v3307_v5 = vadd.f32 %v3306_v58, %v9110_v63  ;;  %4810 = vmatpush.bf16.msra.mxu0 %v7212_v3 }
 0xa32   :  { %v3326_v43 = vadd.f32 %v3325_v60, %v9119_v1  ;;  %4791 = vmatpush.bf16.msrb.mxu3 %v7204_v49  ;;  %4848 = vmatpush.bf16.msra.mxu2 %v7228_v31  ;;  %v7249_v60 = vld [vmem:[%s9512_s13 + $0x668] sm:$0xff] }
 0xa33   :  { %v3583_v53 = vmax.f32 %v3307_v5, 0.0  ;;  %v7245_v31 = vld [vmem:[%s9512_s13 + $0x648] sm:$0xff] }
 0xa34   :  { %v3584_v41 = vmax.f32 %v3326_v43, 0.0 }
 0xa35   :  { %4828 = vmatpush.bf16.msra.mxu1 %v7221_v56  ;;  %v7256_v56 = vld [vmem:[%s9512_s13 + $0x6a0] sm:$0xff] }
 0xa36   :  { %v3287_v0 = vpop.f32.mrf.mxu3 }
 0xa37   :  { %v3344_v8 = vpop.f32.mrf.mxu2  ;;  %v3288_v39 = vadd.f32 %v3287_v0, %v9136_v12  ;;  %v7266_v0 = vld [vmem:[%s9512_s13 + $0x6f0] sm:$0xff] }
 0xa38   :  { %v3308_v10 = vpop.f32.mrf.mxu0  ;;  %v3345_v42 = vadd.f32 %v3344_v8, %v9146_v21 }
 0xa39   :  { %v3309_v2 = vadd.f32 %v3308_v10, %v9110_v63  ;;  %v3327_v13 = vpop.f32.mrf.mxu1  ;;  %4829 = vmatpush.bf16.msra.mxu1 %v7220_v55  ;;  %v3582_v38 = vmax.f32 %v3288_v39, 0.0  ;;  %v7247_v55 = vld [vmem:[%s9512_s13 + $0x658] sm:$0xff] }
 0xa3a   :  { %v3328_v37 = vadd.f32 %v3327_v13, %v9119_v1  ;;  %v3585_v47 = vmax.f32 %v3345_v42, 0.0  ;;  %v7264_v42 = vld [vmem:[%s9512_s13 + $0x6e0] sm:$0xff] }
 0xa3b   :  { %v3599_v11 = vmax.f32 %v3309_v2, 0.0  ;;  %v7241_v2 = vld [vmem:[%s9512_s13 + $0x628] sm:$0xff] }
 0xa3c   :  { %v3600_v36 = vmax.f32 %v3328_v37, 0.0 }
 0xa3d   :  { %v3647_v18 = vpack.c.bf16 %v3599_v11, %v3583_v53 }
 0xa3e   :  { %v3648_v22 = vpack.c.bf16 %v3600_v36, %v3584_v41  ;;  %v3289_v7 = vpop.f32.mrf.mxu3  ;;  %v7255_v41 = vld [vmem:[%s9512_s13 + $0x698] sm:$0xff] }
 0xa3f   :  { %v3290_v24 = vadd.f32 %v3289_v7, %v9136_v12  ;;  %v3346_v28 = vpop.f32.mrf.mxu2  ;;  %4735 = vmatmul.bf16.vlgmr.msrb.gmra.mxu0 %v3647_v18 }
 0xa40   :  { %v3347_v14 = vadd.f32 %v3346_v28, %v9146_v21  ;;  %4754 = vmatmul.bf16.vlgmr.msrb.gmra.mxu1 %v3648_v22  ;;  %v3311_v29 = vpop.f32.mrf.mxu0  ;;  %4879 = vmatpush.bf16.msrb.mxu0 %v7251_v19  ;;  %v7246_v28 = vld [vmem:[%s9512_s13 + $0x650] sm:$0xff] }
 0xa41   :  { %v3598_v23 = vmax.f32 %v3290_v24, 0.0  ;;  %v3330_v6 = vpop.f32.mrf.mxu1  ;;  %4898 = vmatpush.bf16.msrb.mxu1 %v7259_v30  ;;  %v3312_v16 = vadd.f32 %v3311_v29, %v9110_v63  ;;  %v7254_v19 = vld [vmem:[%s9512_s13 + $0x690] sm:$0xff]  ;;  %v9243_v30 = vperm.slane %v9101_v48, 6  ;;  %v7239_v29 = vld [vmem:[%s9512_s13 + $0x618] sm:$0xff] }
 0xa42   :  { %v3601_v25 = vmax.f32 %v3347_v14, 0.0  ;;  %v3331_v54 = vadd.f32 %v3330_v6, %v9119_v1 }
 0xa43   :  { %v3646_v46 = vpack.c.bf16 %v3598_v23, %v3582_v38  ;;  %v3615_v8 = vmax.f32 %v3312_v16, 0.0  ;;  %v7263_v38 = vld [vmem:[%s9512_s13 + $0x6d8] sm:$0xff] }
 0xa44   :  { %v3649_v35 = vpack.c.bf16 %v3601_v25, %v3585_v47  ;;  %4880 = vmatpush.bf16.msrb.mxu0 %v7250_v51  ;;  %v3616_v43 = vmax.f32 %v3331_v54, 0.0  ;;  %v7253_v47 = vld [vmem:[%s9512_s13 + $0x688] sm:$0xff]  ;;  %v9260_v51 = vperm.slane %v9101_v48, 4  ;;  %v7252_v54 = vld [vmem:[%s9512_s13 + $0x680] sm:$0xff] }
 0xa45   :  { %4716 = vmatmul.bf16.vlgmr.msra.gmra.mxu3 %v3646_v46  ;;  %4899 = vmatpush.bf16.msrb.mxu1 %v7258_v26 }
 0xa46   :  { %4773 = vmatmul.bf16.vlgmr.msrb.gmra.mxu2 %v3649_v35  ;;  %v3292_v57 = vpop.f32.mrf.mxu3  ;;  %4860 = vmatpush.bf16.msra.mxu3 %v7243_v44  ;;  %v7238_v44 = vld [vmem:[%s9512_s13 + $0x610] sm:$0xff] }
 0xa47   :  { %v3349_v58 = vpop.f32.mrf.mxu2  ;;  %4917 = vmatpush.bf16.msrb.mxu2 %v7267_v52  ;;  %v7262_v52 = vld [vmem:[%s9512_s13 + $0x6d0] sm:$0xff] }
 0xa48   :  { %v3313_v20 = vpop.f32.mrf.mxu0  ;;  %4881 = vmatpush.bf16.msrb.mxu0 %v7249_v60  ;;  %v3350_v4 = vadd.f32 %v3349_v58, %v9146_v21 }
 0xa49   :  { %v3314_v45 = vadd.f32 %v3313_v20, %v9110_v63  ;;  %v3332_v27 = vpop.f32.mrf.mxu1  ;;  %4900 = vmatpush.bf16.msrb.mxu1 %v7257_v61  ;;  %v7248_v63 = vld [vmem:[%s9512_s13 + $0x660] sm:$0xff] }
 0xa4a   :  { %v3333_v5 = vadd.f32 %v3332_v27, %v9119_v1  ;;  %4861 = vmatpush.bf16.msra.mxu3 %v7242_v62  ;;  %v3293_v1 = vadd.f32 %v3292_v57, %v9136_v12  ;;  %v3617_v22 = vmax.f32 %v3350_v4, 0.0  ;;  %v9270_v57 = vperm.slane %v9101_v48, 7  ;;  %v7244_v61 = vld [vmem:[%s9512_s13 + $0x640] sm:$0xff]  ;;  %v7237_v62 = vld [vmem:[%s9512_s13 + $0x608] sm:$0xff] }
 0xa4b   :  { %v3631_v9 = vmax.f32 %v3314_v45, 0.0  ;;  %4918 = vmatpush.bf16.msrb.mxu2 %v7266_v0  ;;  %v7261_v0 = vld [vmem:[%s9512_s13 + $0x6c8] sm:$0xff] }
 0xa4c   :  { %v3632_v10 = vmax.f32 %v3333_v5, 0.0  ;;  %4882 = vmatpush.bf16.msrb.mxu0 %v7248_v63  ;;  %v3614_v18 = vmax.f32 %v3293_v1, 0.0 }
 0xa4d   :  { %v3663_v13 = vpack.c.bf16 %v3631_v9, %v3615_v8  ;;  %4901 = vmatpush.bf16.msrb.mxu1 %v7256_v56 }
 0xa4e   :  { %v3294_v37 = vpop.f32.mrf.mxu3  ;;  %v3664_v53 = vpack.c.bf16 %v3632_v10, %v3616_v43  ;;  %4862 = vmatpush.bf16.msra.mxu3 %v7241_v2  ;;  %v7283_v43 = vld [vmem:[%s9512_s13 + $0x778] sm:$0xff] }
 0xa4f   :  { %v3295_v11 = vadd.f32 %v3294_v37, %v9136_v12  ;;  %v3351_v3 = vpop.f32.mrf.mxu2  ;;  %4740 = vmatmul.bf16.gmra.mxu0 %v3663_v13  ;;  %4919 = vmatpush.bf16.msrb.mxu2 %v7265_v40  ;;  %v7240_v12 = vld [vmem:[%s9512_s13 + $0x620] sm:$0xff]  ;;  %v7291_v10 = vld [vmem:[%s9512_s13 + $0x7b8] sm:$0xff] }
 0xa50   :  { %v3352_v36 = vadd.f32 %v3351_v3, %v9146_v21  ;;  %4759 = vmatmul.bf16.gmra.mxu1 %v3664_v53  ;;  %v3382_v39 = vpop.f32.mrf.mxu0  ;;  %4883 = vmatpush.bf16.msrb.mxu0 %v7247_v55  ;;  %v9234_v21 = vperm.slane %v9101_v48, 5  ;;  %v7236_v37 = vld [vmem:[%s9512_s13 + $0x600] sm:$0xff] }
 0xa51   :  { %v3630_v33 = vmax.f32 %v3295_v11, 0.0  ;;  %v3401_v17 = vpop.f32.mrf.mxu1  ;;  %4902 = vmatpush.bf16.msrb.mxu1 %v7255_v41  ;;  %v7260_v53 = vld [vmem:[%s9512_s13 + $0x6c0] sm:$0xff]  ;;  %v7282_v41 = vld [vmem:[%s9512_s13 + $0x770] sm:$0xff] }
 0xa52   :  { %v3633_v7 = vmax.f32 %v3352_v36, 0.0  ;;  %4863 = vmatpush.bf16.msra.mxu3 %v7240_v12  ;;  %v3383_v6 = vadd.f32 %v3382_v39, %v9234_v21  ;;  %v3402_v25 = vadd.f32 %v3401_v17, %v9243_v30  ;;  %v7290_v36 = vld [vmem:[%s9512_s13 + $0x7b0] sm:$0xff] }
 0xa53   :  { %v3662_v24 = vpack.c.bf16 %v3630_v33, %v3614_v18  ;;  %4920 = vmatpush.bf16.msrb.mxu2 %v7264_v42  ;;  %v7275_v18 = vld [vmem:[%s9512_s13 + $0x738] sm:$0xff] }
 0xa54   :  { %v3665_v14 = vpack.c.bf16 %v3633_v7, %v3617_v22  ;;  %4884 = vmatpush.bf16.msrb.mxu0 %v7246_v28  ;;  %v3587_v58 = vmax.f32 %v3383_v6, 0.0  ;;  %v3588_v20 = vmax.f32 %v3402_v25, 0.0  ;;  %v7299_v33 = vld [vmem:[%s9512_s13 + $0x7f8] sm:$0xff]  ;;  %v7281_v22 = vld [vmem:[%s9512_s13 + $0x768] sm:$0xff] }
 0xa55   :  { %4721 = vmatmul.bf16.gmra.mxu3 %v3662_v24  ;;  %4903 = vmatpush.bf16.msrb.mxu1 %v7254_v19  ;;  %v7289_v7 = vld [vmem:[%s9512_s13 + $0x7a8] sm:$0xff] }
 0xa56   :  { %4778 = vmatmul.bf16.gmra.mxu2 %v3665_v14  ;;  %v3363_v23 = vpop.f32.mrf.mxu3  ;;  %4864 = vmatpush.bf16.msra.mxu3 %v7239_v29  ;;  %v7274_v29 = vld [vmem:[%s9512_s13 + $0x730] sm:$0xff] }
 0xa57   :  { %v3420_v49 = vpop.f32.mrf.mxu2  ;;  %4921 = vmatpush.bf16.msrb.mxu2 %v7263_v38  ;;  %v3364_v48 = vadd.f32 %v3363_v23, %v9260_v51  ;;  %v7298_v38 = vld [vmem:[%s9512_s13 + $0x7f0] sm:$0xff] }
 0xa58   :  { %v3384_v46 = vpop.f32.mrf.mxu0  ;;  %4885 = vmatpush.bf16.msrb.mxu0 %v7245_v31  ;;  %v3421_v5 = vadd.f32 %v3420_v49, %v9270_v57  ;;  %v7288_v31 = vld [vmem:[%s9512_s13 + $0x7a0] sm:$0xff] }
 0xa59   :  { %v3385_v26 = vadd.f32 %v3384_v46, %v9234_v21  ;;  %v3403_v35 = vpop.f32.mrf.mxu1  ;;  %4904 = vmatpush.bf16.msrb.mxu1 %v7253_v47  ;;  %v3586_v13 = vmax.f32 %v3364_v48, 0.0 }
 0xa5a   :  { %v3404_v16 = vadd.f32 %v3403_v35, %v9243_v30  ;;  %4865 = vmatpush.bf16.msra.mxu3 %v7238_v44  ;;  %v3589_v11 = vmax.f32 %v3421_v5, 0.0  ;;  %v7297_v35 = vld [vmem:[%s9512_s13 + $0x7e8] sm:$0xff] }
 0xa5b   :  { %v3603_v60 = vmax.f32 %v3385_v26, 0.0  ;;  %4922 = vmatpush.bf16.msrb.mxu2 %v7262_v52 }
 0xa5c   :  { %v3604_v45 = vmax.f32 %v3404_v16, 0.0  ;;  %4886 = vmatpush.bf16.msrb.mxu0 %v7244_v61  ;;  %v7279_v61 = vld [vmem:[%s9512_s13 + $0x758] sm:$0xff] }
 0xa5d   :  { %v3651_v27 = vpack.c.bf16 %v3603_v60, %v3587_v58  ;;  %4905 = vmatpush.bf16.msrb.mxu1 %v7252_v54  ;;  %v7287_v54 = vld [vmem:[%s9512_s13 + $0x798] sm:$0xff] }
 0xa5e   :  { %v3652_v8 = vpack.c.bf16 %v3604_v45, %v3588_v20  ;;  %v3365_v9 = vpop.f32.mrf.mxu3  ;;  %4866 = vmatpush.bf16.msra.mxu3 %v7237_v62  ;;  %v9354_v45 = vld [vmem:[%s9511_s12 + $0x18] sm:$0xff]  ;;  %s7450_s12 = smov 8  }
 0xa5f   :  { %v3366_v63 = vadd.f32 %v3365_v9, %v9260_v51  ;;  %v3422_v56 = vpop.f32.mrf.mxu2  ;;  %4811 = vmatmul.bf16.vlgmr.msra.gmra.mxu0 %v3651_v27  ;;  %4923 = vmatpush.bf16.msrb.mxu2 %v7261_v0  ;;  %v7272_v0 = vld [vmem:[%s9512_s13 + $0x720] sm:$0xff]  ;;  %v9363_v9 = vperm.slane %v9354_v45, 1 }
 0xa60   :  { %v3423_v2 = vadd.f32 %v3422_v56, %v9270_v57  ;;  %4830 = vmatmul.bf16.vlgmr.msra.gmra.mxu1 %v3652_v8  ;;  %v3387_v1 = vpop.f32.mrf.mxu0  ;;  %4955 = vmatpush.bf16.msra.mxu0 %v7283_v43  ;;  %v7278_v56 = vld [vmem:[%s9512_s13 + $0x750] sm:$0xff] }
 0xa61   :  { %v3602_v40 = vmax.f32 %v3366_v63, 0.0  ;;  %v3406_v4 = vpop.f32.mrf.mxu1  ;;  %4974 = vmatpush.bf16.msra.mxu1 %v7291_v10  ;;  %v3388_v12 = vadd.f32 %v3387_v1, %v9234_v21  ;;  %v7286_v43 = vld [vmem:[%s9512_s13 + $0x790] sm:$0xff]  ;;  %v9372_v10 = vperm.slane %v9354_v45, 2  ;;  %v7271_v1 = vld [vmem:[%s9512_s13 + $0x718] sm:$0xff] }
 0xa62   :  { %v3605_v3 = vmax.f32 %v3423_v2, 0.0  ;;  %4867 = vmatpush.bf16.msra.mxu3 %v7236_v37  ;;  %v3407_v24 = vadd.f32 %v3406_v4, %v9243_v30 }
 0xa63   :  { %v3650_v55 = vpack.c.bf16 %v3602_v40, %v3586_v13  ;;  %4924 = vmatpush.bf16.msrb.mxu2 %v7260_v53  ;;  %v3619_v6 = vmax.f32 %v3388_v12, 0.0  ;;  %v7295_v13 = vld [vmem:[%s9512_s13 + $0x7d8] sm:$0xff]  ;;  %v7277_v53 = vld [vmem:[%s9512_s13 + $0x748] sm:$0xff] }
 0xa64   :  { %v3653_v39 = vpack.c.bf16 %v3605_v3, %v3589_v11  ;;  %4956 = vmatpush.bf16.msra.mxu0 %v7282_v41  ;;  %v3620_v47 = vmax.f32 %v3407_v24, 0.0  ;;  %v7285_v11 = vld [vmem:[%s9512_s13 + $0x788] sm:$0xff]  ;;  %v9389_v41 = vperm.slane %v9354_v45, 0  ;;  %v7284_v24 = vld [vmem:[%s9512_s13 + $0x780] sm:$0xff] }
 0xa65   :  { %4792 = vmatmul.bf16.vlgmr.msrb.gmra.mxu3 %v3650_v55  ;;  %4975 = vmatpush.bf16.msra.mxu1 %v7290_v36 }
 0xa66   :  { %4849 = vmatmul.bf16.vlgmr.msra.gmra.mxu2 %v3653_v39  ;;  %v3368_v17 = vpop.f32.mrf.mxu3  ;;  %4936 = vmatpush.bf16.msrb.mxu3 %v7275_v18  ;;  %v7270_v18 = vld [vmem:[%s9512_s13 + $0x710] sm:$0xff] }
 0xa67   :  { %v3425_v42 = vpop.f32.mrf.mxu2  ;;  %4993 = vmatpush.bf16.msra.mxu2 %v7299_v33  ;;  %v3369_v46 = vadd.f32 %v3368_v17, %v9260_v51  ;;  %v7294_v33 = vld [vmem:[%s9512_s13 + $0x7d0] sm:$0xff]  ;;  %v3091_v17 = vperm.slane %v9354_v45, 3 }
 0xa68   :  { %v3389_v28 = vpop.f32.mrf.mxu0  ;;  %4957 = vmatpush.bf16.msra.mxu0 %v7281_v22  ;;  %v3426_v44 = vadd.f32 %v3425_v42, %v9270_v57 }
 0xa69   :  { %v3390_v19 = vadd.f32 %v3389_v28, %v9234_v21  ;;  %v3408_v14 = vpop.f32.mrf.mxu1  ;;  %4976 = vmatpush.bf16.msra.mxu1 %v7289_v7  ;;  %v7280_v21 = vld [vmem:[%s9512_s13 + $0x760] sm:$0xff]  ;;  %v3618_v48 = vmax.f32 %v3369_v46, 0.0 }
 0xa6a   :  { %v3409_v23 = vadd.f32 %v3408_v14, %v9243_v30  ;;  %4937 = vmatpush.bf16.msrb.mxu3 %v7274_v29  ;;  %v7273_v30 = vld [vmem:[%s9512_s13 + $0x728] sm:$0xff]  ;;  %v3621_v5 = vmax.f32 %v3426_v44, 0.0  ;;  %v7276_v7 = vld [vmem:[%s9512_s13 + $0x740] sm:$0xff] }
 0xa6b   :  { %v3635_v49 = vmax.f32 %v3390_v19, 0.0  ;;  %4994 = vmatpush.bf16.msra.mxu2 %v7298_v38  ;;  %v7269_v38 = vld [vmem:[%s9512_s13 + $0x708] sm:$0xff]  ;;  %v7268_v44 = vld [vmem:[%s9512_s13 + $0x700] sm:$0xff] }
 0xa6c   :  { %v3636_v25 = vmax.f32 %v3409_v23, 0.0  ;;  %4958 = vmatpush.bf16.msra.mxu0 %v7280_v21  ;;  %v7293_v23 = vld [vmem:[%s9512_s13 + $0x7c8] sm:$0xff] }
 0xa6d   :  { %v3667_v26 = vpack.c.bf16 %v3635_v49, %v3619_v6  ;;  %4977 = vmatpush.bf16.msra.mxu1 %v7288_v31 }
 0xa6e   :  { %v3370_v52 = vpop.f32.mrf.mxu3  ;;  %v3668_v16 = vpack.c.bf16 %v3636_v25, %v3620_v47  ;;  %4938 = vmatpush.bf16.msrb.mxu3 %v7273_v30 }
 0xa6f   :  { %v3371_v58 = vadd.f32 %v3370_v52, %v9260_v51  ;;  %v3427_v60 = vpop.f32.mrf.mxu2  ;;  %4816 = vmatmul.bf16.gmra.mxu0 %v3667_v26  ;;  %4995 = vmatpush.bf16.msra.mxu2 %v7297_v35  ;;  %v7292_v52 = vld [vmem:[%s9512_s13 + $0x7c0] sm:$0xff] }
 0xa70   :  { %v3428_v20 = vadd.f32 %v3427_v60, %v9270_v57  ;;  %4835 = vmatmul.bf16.gmra.mxu1 %v3668_v16  ;;  %v3458_v51 = vpop.f32.mrf.mxu0  ;;  %4959 = vmatpush.bf16.msra.mxu0 %v7279_v61  ;;  %v7296_v57 = vld [vmem:[%s9512_s13 + $0x7e0] sm:$0xff] }
 0xa71   :  { %v3634_v27 = vmax.f32 %v3371_v58, 0.0  ;;  %v3477_v62 = vpop.f32.mrf.mxu1  ;;  %4978 = vmatpush.bf16.msra.mxu1 %v7287_v54  ;;  %v3459_v4 = vadd.f32 %v3458_v51, %v9363_v9 }
 0xa72   :  { %v3637_v8 = vmax.f32 %v3428_v20, 0.0  ;;  %4939 = vmatpush.bf16.msrb.mxu3 %v7272_v0  ;;  %v3478_v3 = vadd.f32 %v3477_v62, %v9372_v10 }
 0xa73   :  { %v3666_v63 = vpack.c.bf16 %v3634_v27, %v3618_v48  ;;  %4996 = vmatpush.bf16.msra.mxu2 %v7296_v57  ;;  %v3591_v42 = vmax.f32 %v3459_v4, 0.0 }
 0xa74   :  { %v3669_v2 = vpack.c.bf16 %v3637_v8, %v3621_v5  ;;  %4960 = vmatpush.bf16.msra.mxu0 %v7278_v56  ;;  %v3592_v28 = vmax.f32 %v3478_v3, 0.0 }
 0xa75   :  { %4797 = vmatmul.bf16.gmra.mxu3 %v3666_v63  ;;  %4979 = vmatpush.bf16.msra.mxu1 %v7286_v43 }
 0xa76   :  { %4854 = vmatmul.bf16.gmra.mxu2 %v3669_v2  ;;  %v3439_v40 = vpop.f32.mrf.mxu3  ;;  %4940 = vmatpush.bf16.msrb.mxu3 %v7271_v1 }
 0xa77   :  { %v3496_v37 = vpop.f32.mrf.mxu2  ;;  %4997 = vmatpush.bf16.msra.mxu2 %v7295_v13  ;;  %v3440_v14 = vadd.f32 %v3439_v40, %v9389_v41 }
 0xa78   :  { %v3460_v55 = vpop.f32.mrf.mxu0  ;;  %4961 = vmatpush.bf16.msra.mxu0 %v7277_v53  ;;  %v3497_v6 = vadd.f32 %v3496_v37, %v3091_v17 }
 0xa79   :  { %v3461_v36 = vadd.f32 %v3460_v55, %v9363_v9  ;;  %v3479_v39 = vpop.f32.mrf.mxu1  ;;  %4980 = vmatpush.bf16.msra.mxu1 %v7285_v11  ;;  %v3590_v26 = vmax.f32 %v3440_v14, 0.0  ;;  %v3095_v14 = vperm.slane %v9354_v45, 7 }
 0xa7a   :  { %v3480_v12 = vadd.f32 %v3479_v39, %v9372_v10  ;;  %4941 = vmatpush.bf16.msrb.mxu3 %v7270_v18  ;;  %v3593_v16 = vmax.f32 %v3497_v6, 0.0  ;;  %v3093_v39 = vperm.slane %v9354_v45, 5 }
 0xa7b   :  { %v3607_v22 = vmax.f32 %v3461_v36, 0.0  ;;  %4998 = vmatpush.bf16.msra.mxu2 %v7294_v33 }
 0xa7c   :  { %v3608_v19 = vmax.f32 %v3480_v12, 0.0  ;;  %4962 = vmatpush.bf16.msra.mxu0 %v7276_v7  ;;  %v3094_v12 = vperm.slane %v9354_v45, 6 }
 0xa7d   :  { %v3655_v29 = vpack.c.bf16 %v3607_v22, %v3591_v42  ;;  %4981 = vmatpush.bf16.msra.mxu1 %v7284_v24  ;;  %v3092_v24 = vperm.slane %v9354_v45, 4 }
 0xa7e   :  { %v3656_v49 = vpack.c.bf16 %v3608_v19, %v3592_v28  ;;  %v3441_v21 = vpop.f32.mrf.mxu3  ;;  %4942 = vmatpush.bf16.msrb.mxu3 %v7269_v38 }
 0xa7f   :  { %v3442_v31 = vadd.f32 %v3441_v21, %v9389_v41  ;;  %v3498_v47 = vpop.f32.mrf.mxu2  ;;  %4887 = vmatmul.bf16.vlgmr.msrb.gmra.mxu0 %v3655_v29  ;;  %4999 = vmatpush.bf16.msra.mxu2 %v7293_v23 }
 0xa80   :  { %v3499_v25 = vadd.f32 %v3498_v47, %v3091_v17  ;;  %4906 = vmatmul.bf16.vlgmr.msrb.gmra.mxu1 %v3656_v49  ;;  %v3463_v46 = vpop.f32.mrf.mxu0 }
 0xa81   :  { %v3606_v30 = vmax.f32 %v3442_v31, 0.0  ;;  %v3482_v35 = vpop.f32.mrf.mxu1  ;;  %v3464_v20 = vadd.f32 %v3463_v46, %v9363_v9 }
 0xa82   :  { %v3609_v58 = vmax.f32 %v3499_v25, 0.0  ;;  %4943 = vmatpush.bf16.msrb.mxu3 %v7268_v44  ;;  %v3483_v48 = vadd.f32 %v3482_v35, %v9372_v10 }
 0xa83   :  { %v3654_v60 = vpack.c.bf16 %v3606_v30, %v3590_v26  ;;  %5000 = vmatpush.bf16.msra.mxu2 %v7292_v52  ;;  %v3623_v5 = vmax.f32 %v3464_v20, 0.0 }
 0xa84   :  { %v3657_v61 = vpack.c.bf16 %v3609_v58, %v3593_v16  ;;  %v3624_v63 = vmax.f32 %v3483_v48, 0.0 }
 0xa85   :  { %4868 = vmatmul.bf16.vlgmr.msra.gmra.mxu3 %v3654_v60 }
 0xa86   :  { %4925 = vmatmul.bf16.vlgmr.msrb.gmra.mxu2 %v3657_v61  ;;  %v3444_v54 = vpop.f32.mrf.mxu3 }
 0xa87   :  { %v3501_v51 = vpop.f32.mrf.mxu2  ;;  %v3445_v43 = vadd.f32 %v3444_v54, %v9389_v41 }
 0xa88   :  { %v3465_v27 = vpop.f32.mrf.mxu0  ;;  %v3502_v1 = vadd.f32 %v3501_v51, %v3091_v17 }
 0xa89   :  { %v3466_v62 = vadd.f32 %v3465_v27, %v9363_v9  ;;  %v3484_v0 = vpop.f32.mrf.mxu1  ;;  %v3622_v11 = vmax.f32 %v3445_v43, 0.0 }
 0xa8a   :  { %v3485_v57 = vadd.f32 %v3484_v0, %v9372_v10  ;;  %v3625_v55 = vmax.f32 %v3502_v1, 0.0 }
 0xa8b   :  { %v3639_v8 = vmax.f32 %v3466_v62, 0.0 }
 0xa8c   :  { %v3640_v56 = vmax.f32 %v3485_v57, 0.0 }
 0xa8d   :  { %v3671_v2 = vpack.c.bf16 %v3639_v8, %v3623_v5 }
 0xa8e   :  { %v3672_v13 = vpack.c.bf16 %v3640_v56, %v3624_v63  ;;  %v3446_v40 = vpop.f32.mrf.mxu3 }
 0xa8f   :  { %v3447_v4 = vadd.f32 %v3446_v40, %v9389_v41  ;;  %v3503_v37 = vpop.f32.mrf.mxu2  ;;  %4892 = vmatmul.bf16.gmra.mxu0 %v3671_v2 }
 0xa90   :  { %v3504_v53 = vadd.f32 %v3503_v37, %v3091_v17  ;;  %4911 = vmatmul.bf16.gmra.mxu1 %v3672_v13  ;;  %v3534_v9 = vpop.f32.mrf.mxu0 }
 0xa91   :  { %v3638_v3 = vmax.f32 %v3447_v4, 0.0  ;;  %v3553_v10 = vpop.f32.mrf.mxu1  ;;  %v3535_v41 = vadd.f32 %v3534_v9, %v3093_v39 }
 0xa92   :  { %v3641_v36 = vmax.f32 %v3504_v53, 0.0  ;;  %v3554_v7 = vadd.f32 %v3553_v10, %v3094_v12 }
 0xa93   :  { %v3670_v18 = vpack.c.bf16 %v3638_v3, %v3622_v11  ;;  %v3595_v38 = vmax.f32 %v3535_v41, 0.0  ;;  %v7327_v41 = vld [vmem:[%s9513_s14 + $0x1] ss:$0 sm:$0xff] }
 0xa94   :  { %v3673_v33 = vpack.c.bf16 %v3641_v36, %v3625_v55  ;;  %v3596_v6 = vmax.f32 %v3554_v7, 0.0 }
 0xa95   :  { %4873 = vmatmul.bf16.gmra.mxu3 %v3670_v18 }
 0xa96   :  { %4930 = vmatmul.bf16.gmra.mxu2 %v3673_v33  ;;  %v3515_v42 = vpop.f32.mrf.mxu3 }
 0xa97   :  { %v3572_v22 = vpop.f32.mrf.mxu2  ;;  %v3516_v21 = vadd.f32 %v3515_v42, %v3092_v24 }
 0xa98   :  { %v3536_v17 = vpop.f32.mrf.mxu0  ;;  %v3573_v47 = vadd.f32 %v3572_v22, %v3095_v14 }
 0xa99   :  { %v3537_v28 = vadd.f32 %v3536_v17, %v3093_v39  ;;  %v3555_v19 = vpop.f32.mrf.mxu1  ;;  %v3594_v52 = vmax.f32 %v3516_v21, 0.0 }
 0xa9a   :  { %v3556_v29 = vadd.f32 %v3555_v19, %v3094_v12  ;;  %v3597_v45 = vmax.f32 %v3573_v47, 0.0 }
 0xa9b   :  { %v3611_v23 = vmax.f32 %v3537_v28, 0.0 }
 0xa9c   :  { %v3612_v49 = vmax.f32 %v3556_v29, 0.0 }
 0xa9d   :  { %v3659_v31 = vpack.c.bf16 %v3611_v23, %v3595_v38 }
 0xa9e   :  { %v3660_v25 = vpack.c.bf16 %v3612_v49, %v3596_v6  ;;  %v3517_v46 = vpop.f32.mrf.mxu3 }
 0xa9f   :  { %v3518_v26 = vadd.f32 %v3517_v46, %v3092_v24  ;;  %v3574_v30 = vpop.f32.mrf.mxu2  ;;  %4963 = vmatmul.bf16.vlgmr.msra.gmra.mxu0 %v3659_v31 }
 0xaa0   :  { %v3575_v35 = vadd.f32 %v3574_v30, %v3095_v14  ;;  %4982 = vmatmul.bf16.vlgmr.msra.gmra.mxu1 %v3660_v25  ;;  %v3539_v44 = vpop.f32.mrf.mxu0 }
 0xaa1   :  { %v3610_v16 = vmax.f32 %v3518_v26, 0.0  ;;  %v3558_v58 = vpop.f32.mrf.mxu1  ;;  %v3540_v51 = vadd.f32 %v3539_v44, %v3093_v39 }
 0xaa2   :  { %v3613_v60 = vmax.f32 %v3575_v35, 0.0  ;;  %v3559_v27 = vadd.f32 %v3558_v58, %v3094_v12 }
 0xaa3   :  { %v3658_v61 = vpack.c.bf16 %v3610_v16, %v3594_v52  ;;  %v3627_v8 = vmax.f32 %v3540_v51, 0.0 }
 0xaa4   :  { %v3661_v54 = vpack.c.bf16 %v3613_v60, %v3597_v45  ;;  %v3628_v56 = vmax.f32 %v3559_v27, 0.0 }
 0xaa5   :  { %4944 = vmatmul.bf16.vlgmr.msrb.gmra.mxu3 %v3658_v61 }
 0xaa6   :  { %5001 = vmatmul.bf16.vlgmr.msra.gmra.mxu2 %v3661_v54  ;;  %v3520_v20 = vpop.f32.mrf.mxu3 }
 0xaa7   :  { %v3577_v48 = vpop.f32.mrf.mxu2  ;;  %v3521_v2 = vadd.f32 %v3520_v20, %v3092_v24 }
 0xaa8   :  { %v3541_v62 = vpop.f32.mrf.mxu0  ;;  %v3578_v13 = vadd.f32 %v3577_v48, %v3095_v14 }
 0xaa9   :  { %v3542_v0 = vadd.f32 %v3541_v62, %v3093_v39  ;;  %v3560_v57 = vpop.f32.mrf.mxu1  ;;  %v3626_v11 = vmax.f32 %v3521_v2, 0.0 }
 0xaaa   :  { %v3561_v5 = vadd.f32 %v3560_v57, %v3094_v12  ;;  %v3629_v10 = vmax.f32 %v3578_v13, 0.0 }
 0xaab   :  { %v3643_v63 = vmax.f32 %v3542_v0, 0.0 }
 0xaac   :  { %v3644_v43 = vmax.f32 %v3561_v5, 0.0 }
 0xaad   :  { %v3675_v1 = vpack.c.bf16 %v3643_v63, %v3627_v8 }
 0xaae   :  { %v3676_v40 = vpack.c.bf16 %v3644_v43, %v3628_v56  ;;  %v3522_v4 = vpop.f32.mrf.mxu3 }
 0xaaf   :  { %v3523_v37 = vadd.f32 %v3522_v4, %v3092_v24  ;;  %v3579_v53 = vpop.f32.mrf.mxu2  ;;  %4968 = vmatmul.bf16.gmra.mxu0 %v3675_v1 }
 0xab0   :  { %v3580_v9 = vadd.f32 %v3579_v53, %v3095_v14  ;;  %4987 = vmatmul.bf16.gmra.mxu1 %v3676_v40 }
 0xab1   :  { %v3642_v3 = vmax.f32 %v3523_v37, 0.0 }
 0xab2   :  { %v3645_v55 = vmax.f32 %v3580_v9, 0.0 }
 0xab3   :  { %v3674_v36 = vpack.c.bf16 %v3642_v3, %v3626_v11 }
 0xab4   :  { %v3677_v39 = vpack.c.bf16 %v3645_v55, %v3629_v10 }
 0xab5   :  { %4949 = vmatmul.bf16.gmra.mxu3 %v3674_v36 }
 0xab6   :  { %5006 = vmatmul.bf16.gmra.mxu2 %v3677_v39 }
 0xabc   :  { %v4736_v18 = vpop.f32.mrf.mxu0 }
 0xabd   :  { %v4755_v33 = vpop.f32.mrf.mxu1 }
 0xac4   :  { %v4738_v12 = vpop.f32.mrf.mxu0 }
 0xac5   :  { %v4757_v42 = vpop.f32.mrf.mxu1 }
 0xac8   :  { %v4717_v22 = vpop.f32.mrf.mxu3 }
 0xac9   :  { %v4718_v7 = vadd.f32 %v7327_v41, %v4717_v22  ;;  %v4774_v17 = vpop.f32.mrf.mxu2 }
 0xacb   :  { %v4737_v24 = vadd.f32 %v4736_v18, %v4718_v7 }
 0xacc   :  { %v4741_v28 = vpop.f32.mrf.mxu0 }
 0xacd   :  { %v4756_v19 = vadd.f32 %v4755_v33, %v4737_v24  ;;  %v4760_v14 = vpop.f32.mrf.mxu1 }
 0xacf   :  { %v4775_v29 = vadd.f32 %v4774_v17, %v4756_v19 }
 0xad0   :  { %v4719_v38 = vpop.f32.mrf.mxu3 }
 0xad1   :  { %v4720_v23 = vadd.f32 %v7327_v41, %v4719_v38  ;;  %v4776_v6 = vpop.f32.mrf.mxu2 }
 0xad3   :  { %v4739_v49 = vadd.f32 %v4738_v12, %v4720_v23 }
 0xad4   :  { %v4743_v21 = vpop.f32.mrf.mxu0 }
 0xad5   :  { %v4758_v31 = vadd.f32 %v4757_v42, %v4739_v49  ;;  %v4762_v47 = vpop.f32.mrf.mxu1 }
 0xad7   :  { %v4777_v25 = vadd.f32 %v4776_v6, %v4758_v31 }
 0xad8   :  { %v4722_v46 = vpop.f32.mrf.mxu3 }
 0xad9   :  { %v4723_v26 = vadd.f32 %v7327_v41, %v4722_v46  ;;  %v4779_v30 = vpop.f32.mrf.mxu2 }
 0xadb   :  { %v4742_v35 = vadd.f32 %v4741_v28, %v4723_v26 }
 0xadc   :  { %v4812_v44 = vpop.f32.mrf.mxu0 }
 0xadd   :  { %v4761_v52 = vadd.f32 %v4760_v14, %v4742_v35  ;;  %v4831_v16 = vpop.f32.mrf.mxu1 }
 0xadf   :  { %v4780_v58 = vadd.f32 %v4779_v30, %v4761_v52 }
 0xae0   :  { %v4724_v45 = vpop.f32.mrf.mxu3 }
 0xae1   :  { %v4725_v60 = vadd.f32 %v7327_v41, %v4724_v45  ;;  %v4781_v61 = vpop.f32.mrf.mxu2 }
 0xae3   :  { %v4744_v54 = vadd.f32 %v4743_v21, %v4725_v60 }
 0xae4   :  { %v4814_v20 = vpop.f32.mrf.mxu0 }
 0xae5   :  { %v4763_v51 = vadd.f32 %v4762_v47, %v4744_v54  ;;  %v4833_v48 = vpop.f32.mrf.mxu1 }
 0xae7   :  { %v4782_v27 = vadd.f32 %v4781_v61, %v4763_v51 }
 0xae8   :  { %v4793_v62 = vpop.f32.mrf.mxu3 }
 0xae9   :  { %v4850_v0 = vpop.f32.mrf.mxu2  ;;  %v4794_v10 = vadd.f32 %v4793_v62, %v4775_v29 }
 0xaeb   :  { %v4813_v39 = vadd.f32 %v4812_v44, %v4794_v10 }
 0xaec   :  { %v4817_v57 = vpop.f32.mrf.mxu0 }
 0xaed   :  { %v4836_v5 = vpop.f32.mrf.mxu1  ;;  %v4832_v12 = vadd.f32 %v4831_v16, %v4813_v39 }
 0xaef   :  { %v4851_v22 = vadd.f32 %v4850_v0, %v4832_v12 }
 0xaf0   :  { %v4795_v8 = vpop.f32.mrf.mxu3 }
 0xaf1   :  { %v4852_v63 = vpop.f32.mrf.mxu2  ;;  %v4796_v42 = vadd.f32 %v4795_v8, %v4777_v25 }
 0xaf3   :  { %v4815_v7 = vadd.f32 %v4814_v20, %v4796_v42 }
 0xaf4   :  { %v4819_v56 = vpop.f32.mrf.mxu0 }
 0xaf5   :  { %v4838_v43 = vpop.f32.mrf.mxu1  ;;  %v4834_v14 = vadd.f32 %v4833_v48, %v4815_v7 }
 0xaf7   :  { %v4853_v49 = vadd.f32 %v4852_v63, %v4834_v14 }
 0xaf8   :  { %v4798_v2 = vpop.f32.mrf.mxu3 }
 0xaf9   :  { %v4855_v1 = vpop.f32.mrf.mxu2  ;;  %v4799_v38 = vadd.f32 %v4798_v2, %v4780_v58 }
 0xafb   :  { %v4818_v29 = vadd.f32 %v4817_v57, %v4799_v38 }
 0xafc   :  { %v4888_v13 = vpop.f32.mrf.mxu0 }
 0xafd   :  { %v4907_v40 = vpop.f32.mrf.mxu1  ;;  %v4837_v26 = vadd.f32 %v4836_v5, %v4818_v29 }
 0xaff   :  { %v4856_v16 = vadd.f32 %v4855_v1, %v4837_v26 }
 0xb00   :  { %v4800_v4 = vpop.f32.mrf.mxu3 }
 0xb01   :  { %v4857_v37 = vpop.f32.mrf.mxu2  ;;  %v4801_v30 = vadd.f32 %v4800_v4, %v4782_v27 }
 0xb03   :  { %v4820_v45 = vadd.f32 %v4819_v56, %v4801_v30 }
 0xb04   :  { %v4890_v53 = vpop.f32.mrf.mxu0 }
 0xb05   :  { %v4909_v9 = vpop.f32.mrf.mxu1  ;;  %v4839_v51 = vadd.f32 %v4838_v43, %v4820_v45 }
 0xb07   :  { %v4858_v27 = vadd.f32 %v4857_v37, %v4839_v51 }
 0xb08   :  { %v4869_v11 = vpop.f32.mrf.mxu3 }
 0xb09   :  { %v4926_v3 = vpop.f32.mrf.mxu2  ;;  %v4870_v28 = vadd.f32 %v4869_v11, %v4851_v22 }
 0xb0b   :  { %v4889_v23 = vadd.f32 %v4888_v13, %v4870_v28 }
 0xb0c   :  { %v4893_v55 = vpop.f32.mrf.mxu0 }
 0xb0d   :  { %v4912_v33 = vpop.f32.mrf.mxu1  ;;  %v4908_v31 = vadd.f32 %v4907_v40, %v4889_v23 }
 0xb0f   :  { %v4927_v35 = vadd.f32 %v4926_v3, %v4908_v31 }
 0xb10   :  { %v4871_v36 = vpop.f32.mrf.mxu3 }
 0xb11   :  { %v4928_v18 = vpop.f32.mrf.mxu2  ;;  %v4872_v47 = vadd.f32 %v4871_v36, %v4853_v49 }
 0xb13   :  { %v4891_v44 = vadd.f32 %v4890_v53, %v4872_v47 }
 0xb14   :  { %v4895_v24 = vpop.f32.mrf.mxu0 }
 0xb15   :  { %v4914_v19 = vpop.f32.mrf.mxu1  ;;  %v4910_v54 = vadd.f32 %v4909_v9, %v4891_v44 }
 0xb17   :  { %v4929_v0 = vadd.f32 %v4928_v18, %v4910_v54 }
 0xb18   :  { %v4874_v41 = vpop.f32.mrf.mxu3 }
 0xb19   :  { %v4931_v17 = vpop.f32.mrf.mxu2  ;;  %v4875_v58 = vadd.f32 %v4874_v41, %v4856_v16 }
 0xb1b   :  { %v4894_v57 = vadd.f32 %v4893_v55, %v4875_v58 }
 0xb1c   :  { %v4964_v46 = vpop.f32.mrf.mxu0 }
 0xb1d   :  { %v4983_v25 = vpop.f32.mrf.mxu1  ;;  %v4913_v1 = vadd.f32 %v4912_v33, %v4894_v57 }
 0xb1f   :  { %v4932_v43 = vadd.f32 %v4931_v17, %v4913_v1 }
 0xb20   :  { %v4876_v6 = vpop.f32.mrf.mxu3 }
 0xb21   :  { %v4933_v21 = vpop.f32.mrf.mxu2  ;;  %v4877_v56 = vadd.f32 %v4876_v6, %v4858_v27 }
 0xb23   :  { %v4896_v11 = vadd.f32 %v4895_v24, %v4877_v56 }
 0xb24   :  { %v4966_v62 = vpop.f32.mrf.mxu0 }
 0xb25   :  { %v4985_v63 = vpop.f32.mrf.mxu1  ;;  %v4915_v18 = vadd.f32 %v4914_v19, %v4896_v11 }
 0xb27   :  { %v4934_v41 = vadd.f32 %v4933_v21, %v4915_v18 }
 0xb28   :  { %v4945_v52 = vpop.f32.mrf.mxu3 }
 0xb29   :  { %v4946_v60 = vadd.f32 %v4945_v52, %v4927_v35  ;;  %v5002_v61 = vpop.f32.mrf.mxu2 }
 0xb2b   :  { %v4965_v20 = vadd.f32 %v4964_v46, %v4946_v60 }
 0xb2c   :  { %v4969_v10 = vpop.f32.mrf.mxu0 }
 0xb2d   :  { %v4984_v48 = vadd.f32 %v4983_v25, %v4965_v20  ;;  %v4988_v37 = vpop.f32.mrf.mxu1 }
 0xb2f   :  { %v5003_v8 = vadd.f32 %v5002_v61, %v4984_v48  ;;  %v7301_v48 = vld [vmem:[%s9516_s17 + $0x8] sm:$0xff] }
 0xb30   :  { %v4947_v5 = vpop.f32.mrf.mxu3  ;;  %5156 = vmatpush.bf16.msra.mxu3 %v7301_v48 }
 0xb31   :  { %v4948_v2 = vadd.f32 %v4947_v5, %v4929_v0  ;;  %v5012_v13 = vadd.f32 %v5003_v8, %v8767_v59  ;;  %v5004_v40 = vpop.f32.mrf.mxu2  ;;  %v7300_v8 = vld [vmem:[%s9516_s17] sm:$0xff] }
 0xb33   :  { %v4967_v4 = vadd.f32 %v4966_v62, %v4948_v2  ;;  %v5020_v53 = vsel %vm144_vm8, %v5012_v13, 0.0 }
 0xb34   :  { %5021 = vadd.xlane.f32.xlu1 %v5020_v53  ;;  %v4971_v24 = vpop.f32.mrf.mxu0  ;;  %5157 = vmatpush.bf16.msra.mxu3 %v7300_v8 }
 0xb35   :  { %v4986_v9 = vadd.f32 %v4985_v63, %v4967_v4  ;;  %v4990_v23 = vpop.f32.mrf.mxu1 }
 0xb37   :  { %v5005_v3 = vadd.f32 %v5004_v40, %v4986_v9 }
 0xb38   :  { %v4950_v55 = vpop.f32.mrf.mxu3 }
 0xb39   :  { %v4951_v36 = vadd.f32 %v4950_v55, %v4932_v43  ;;  %v5013_v39 = vadd.f32 %v5005_v3, %v8769_v50  ;;  %v5007_v33 = vpop.f32.mrf.mxu2  ;;  %v7303_v55 = vld [vmem:[%s9518_s19 + $0x8] sm:$0xff] }
 0xb3a   :  { %5207 = vmatpush.bf16.msrb.mxu0 %v7303_v55 }
 0xb3b   :  { %v4970_v12 = vadd.f32 %v4969_v10, %v4951_v36  ;;  %v5023_v59 = vsel %vm144_vm8, %v5013_v39, 0.0 }
 0xb3c   :  { %5024 = vadd.xlane.f32.xlu0 %v5023_v59 }
 0xb3d   :  { %v4989_v42 = vadd.f32 %v4988_v37, %v4970_v12  ;;  %v7302_v12 = vld [vmem:[%s9518_s19] sm:$0xff] }
 0xb3e   :  { %5208 = vmatpush.bf16.msrb.mxu0 %v7302_v12 }
 0xb3f   :  { %v5008_v22 = vadd.f32 %v5007_v33, %v4989_v42  ;;  %v7328_v42 = vld [vmem:[%s9514_s15 + $0x1] ss:$0 sm:$0xff] }
 0xb40   :  { %v4952_v7 = vpop.f32.mrf.mxu3 }
 0xb41   :  { %v4953_v28 = vadd.f32 %v4952_v7, %v4934_v41  ;;  %v5014_v17 = vadd.f32 %v5008_v22, %v8812_v32  ;;  %v5009_v19 = vpop.f32.mrf.mxu2 }
 0xb43   :  { %v4972_v14 = vadd.f32 %v4971_v24, %v4953_v28  ;;  %v5026_v38 = vsel %vm144_vm8, %v5014_v17, 0.0  ;;  %v7329_v24 = vld [vmem:[%s9515_s16 + $0x1] ss:$0 sm:$0xff] }
 0xb44   :  { %5027 = vadd.xlane.f32.xlu2 %v5026_v38 }
 0xb45   :  { %v4991_v50 = vadd.f32 %v4990_v23, %v4972_v14 }
 0xb47   :  { %v5010_v6 = vadd.f32 %v5009_v19, %v4991_v50 }
 0xb49   :  { %v5015_v49 = vadd.f32 %v5010_v6, %v8814_v15 }
 0xb4b   :  { %v5029_v29 = vsel %vm144_vm8, %v5015_v49, 0.0 }
 0xb4c   :  { %5030 = vadd.xlane.f32.xlu1 %v5029_v29 }
 0xba7   :  { %v5022_v21 = vpop.xlane.xlu1 %5021 }
 0xba8   :  { %v5032_v31 = vmul.f32 %v5022_v21, %v7664_v34 }
 0xbaa   :  { %v5036_v47 = vsub.f32 %v5012_v13, %v5032_v31 }
 0xbac   :  { %v5040_v46 = vmul.f32 %v5036_v47, %v5036_v47 }
 0xbae   :  { %v5044_v32 = vsel %vm144_vm8, %v5040_v46, 0.0 }
 0xbaf   :  { %v5025_v26 = vpop.xlane.xlu0 %5024  ;;  %5045 = vadd.xlane.f32.xlu0 %v5044_v32 }
 0xbb0   :  { %v5033_v30 = vmul.f32 %v5025_v26, %v7664_v34 }
 0xbb2   :  { %v9444_v25 = vsub.f32 %v5013_v39, %v5033_v30 }
 0xbb4   :  { %v5041_v35 = vmul.f32 %v9444_v25, %v9444_v25 }
 0xbb6   :  { %v5047_v15 = vsel %vm144_vm8, %v5041_v35, 0.0 }
 0xbb7   :  { %5048 = vadd.xlane.f32.xlu2 %v5047_v15  ;;  %v5028_v44 = vpop.xlane.xlu2 %5027 }
 0xbb8   :  { %v5034_v52 = vmul.f32 %v5028_v44, %v7664_v34 }
 0xbba   :  { %v9450_v16 = vsub.f32 %v5014_v17, %v5034_v52 }
 0xbbc   :  { %v5042_v45 = vmul.f32 %v9450_v16, %v9450_v16 }
 0xbbe   :  { %v5050_v60 = vsel %vm144_vm8, %v5042_v45, 0.0 }
 0xbbf   :  { %v5031_v61 = vpop.xlane.xlu1 %5030  ;;  %5051 = vadd.xlane.f32.xlu1 %v5050_v60 }
 0xbc0   :  { %v5035_v54 = vmul.f32 %v5031_v61, %v7664_v34 }
 0xbc2   :  { %v9456_v58 = vsub.f32 %v5015_v49, %v5035_v54 }
 0xbc4   :  { %v5043_v20 = vmul.f32 %v9456_v58, %v9456_v58 }
 0xbc6   :  { %v5053_v51 = vsel %vm144_vm8, %v5043_v20, 0.0 }
 0xbc7   :  { %5054 = vadd.xlane.f32.xlu0 %v5053_v51  ;;  %v7330_v51 = vld [vmem:[%s9517_s18] ss:$0 sm:$0xff]  ;;  %s7448_s18 = smov [#allocation2]  }
 0xbc8   :  { %s5229_s23 = sshll.u32 %s7448_s18, 4  ;;  %s5230_s23 = int_to_ptr.vmem [resolvable:$true] %s5229_s23 }
 0xc22   :  { %v5046_v62 = vpop.xlane.xlu0 %5045 }
 0xc23   :  { %v5056_v0 = vmul.f32 %v5046_v62, %v7664_v34 }
 0xc25   :  { %v5060_v57 = vadd.f32 1e-05, %v5056_v0 }
 0xc27   :  { %7406 = vrsqrt.f32 %v5060_v57  ;;  %vm5070_vm1 = vweird.f32 %v5060_v57 }
 0xc2a   :  { %v5049_v63 = vpop.xlane.xlu2 %5048 }
 0xc2b   :  { %v5057_v5 = vmul.f32 %v5049_v63, %v7664_v34 }
 0xc2d   :  { %v7407_v27 = vpop.eup %7406  ;;  %v5061_v2 = vadd.f32 1e-05, %v5057_v5 }
 0xc2e   :  { %v5065_v13 = vmul.f32 %v7407_v27, %v5060_v57  ;;  %vm5071_vm0 = vweird.f32 %v7407_v27 }
 0xc2f   :  { %7408 = vrsqrt.f32 %v5061_v2  ;;  %vm5072_vm2 = vmor %vm5070_vm1, %vm5071_vm0  ;;  %vm5080_vm4 = vweird.f32 %v5061_v2 }
 0xc30   :  { %v5066_v40 = vmul.f32 %v7407_v27, %v5065_v13 }
 0xc32   :  { %v5067_v1 = vmul.f32 0.5, %v5066_v40  ;;  %v5052_v56 = vpop.xlane.xlu1 %5051 }
 0xc33   :  { %v5058_v4 = vmul.f32 %v5052_v56, %v7664_v34 }
 0xc34   :  { %v5068_v53 = vsub.f32 1.5, %v5067_v1  ;;  %v7331_v1 = vld [vmem:[%s9519_s20] ss:$0 sm:$0xff]  ;;  %s7449_s20 = smov 128  }
 0xc35   :  { %v7409_v9 = vpop.eup %7408  ;;  %v5062_v43 = vadd.f32 1e-05, %v5058_v4 }
 0xc36   :  { %v5069_v11 = vmul.f32 %v7407_v27, %v5068_v53  ;;  %v5075_v3 = vmul.f32 %v7409_v9, %v5061_v2  ;;  %vm5081_vm3 = vweird.f32 %v7409_v9 }
 0xc37   :  { %7410 = vrsqrt.f32 %v5062_v43  ;;  %vm5082_vm5 = vmor %vm5080_vm4, %vm5081_vm3  ;;  %vm5090_vm7 = vweird.f32 %v5062_v43 }
 0xc38   :  { %v5076_v10 = vmul.f32 %v7409_v9, %v5075_v3  ;;  %v5073_v36 = vsel %vm5072_vm2, %v7407_v27, %v5069_v11 }
 0xc39   :  { %v5104_v41 = vmul.f32 %v5073_v36, %v5036_v47 }
 0xc3a   :  { %v5077_v39 = vmul.f32 0.5, %v5076_v10  ;;  %v5055_v37 = vpop.xlane.xlu0 %5054 }
 0xc3b   :  { %v5059_v18 = vmul.f32 %v5055_v37, %v7664_v34  ;;  %v5111_v14 = vmul.f32 %v7328_v42, %v5104_v41 }
 0xc3c   :  { %v5078_v59 = vsub.f32 1.5, %v5077_v39 }
 0xc3d   :  { %v7411_v33 = vpop.eup %7410  ;;  %v5063_v22 = vadd.f32 1e-05, %v5059_v18  ;;  %v5118_v49 = vadd.f32 %v7329_v24, %v5111_v14 }
 0xc3e   :  { %v5079_v7 = vmul.f32 %v7409_v9, %v5078_v59  ;;  %v5085_v28 = vmul.f32 %v7411_v33, %v5062_v43  ;;  %vm5091_vm6 = vweird.f32 %v7411_v33 }
 0xc3f   :  { %7412 = vrsqrt.f32 %v5063_v22  ;;  %vm5092_vm9 = vmor %vm5090_vm7, %vm5091_vm6  ;;  %vm5100_vm11 = vweird.f32 %v5063_v22 }
 0xc40   :  { %v5083_v34 = vsel %vm5082_vm5, %v7409_v9, %v5079_v7  ;;  %v5086_v17 = vmul.f32 %v7411_v33, %v5085_v28 }
 0xc41   :  { %v5105_v38 = vmul.f32 %v5083_v34, %v9444_v25 }
 0xc42   :  { %v5087_v23 = vmul.f32 0.5, %v5086_v17 }
 0xc43   :  { %v5112_v50 = vmul.f32 %v7328_v42, %v5105_v38 }
 0xc44   :  { %v5088_v19 = vsub.f32 1.5, %v5087_v23 }
 0xc45   :  { %v7413_v6 = vpop.eup %7412  ;;  %v5119_v29 = vadd.f32 %v7329_v24, %v5112_v50 }
 0xc46   :  { %v5089_v21 = vmul.f32 %v7411_v33, %v5088_v19  ;;  %v5095_v31 = vmul.f32 %v7413_v6, %v5063_v22  ;;  %vm5101_vm10 = vweird.f32 %v7413_v6 }
 0xc47   :  { %v5122_v47 = vpack.c.bf16 %v5119_v29, %v5118_v49  ;;  %vm5102_vm12 = vmor %vm5100_vm11, %vm5101_vm10 }
 0xc48   :  { %v5096_v46 = vmul.f32 %v7413_v6, %v5095_v31  ;;  %v5093_v32 = vsel %vm5092_vm9, %v7411_v33, %v5089_v21 }
 0xc49   :  { %6960 = vmatmul.msk.bf16.vlgmr.msra.gmra.mxu3 %vm144_vm8, %v5122_v47  ;;  %v5106_v25 = vmul.f32 %v5093_v32, %v9450_v16 }
 0xc4a   :  { %v5097_v26 = vmul.f32 0.5, %v5096_v46 }
 0xc4b   :  { %v5113_v52 = vmul.f32 %v7328_v42, %v5106_v25 }
 0xc4c   :  { %v5098_v30 = vsub.f32 1.5, %v5097_v26 }
 0xc4d   :  { %v5120_v60 = vadd.f32 %v7329_v24, %v5113_v52 }
 0xc4e   :  { %v5099_v35 = vmul.f32 %v7413_v6, %v5098_v30 }
 0xc50   :  { %v5103_v15 = vsel %vm5102_vm12, %v7413_v6, %v5099_v35 }
 0xc51   :  { %v5107_v44 = vmul.f32 %v5103_v15, %v9456_v58 }
 0xc53   :  { %v5114_v45 = vmul.f32 %v7328_v42, %v5107_v44 }
 0xc55   :  { %v5121_v61 = vadd.f32 %v7329_v24, %v5114_v45 }
 0xc57   :  { %v5123_v54 = vpack.c.bf16 %v5121_v61, %v5120_v60 }
 0xc59   :  { %6961 = vmatmul.msk.bf16.gmra.mxu3 %vm144_vm8, %v5123_v54 }
 0xccc   :  { %v5159_v20 = vpop.f32.mrf.mxu3 }
 0xccd   :  { %v5160_v48 = vadd.f32 %v7330_v51, %v5159_v20 }
 0xccf   :  { %v5169_v0 = vmax.f32 %v5160_v48, 0.0 }
 0xcd4   :  { %v5161_v16 = vpop.f32.mrf.mxu3 }
 0xcd5   :  { %v5162_v62 = vadd.f32 %v7330_v51, %v5161_v16 }
 0xcd7   :  { %v5170_v57 = vmax.f32 %v5162_v62, 0.0 }
 0xcd9   :  { %v5173_v8 = vpack.c.bf16 %v5170_v57, %v5169_v0 }
 0xcdb   :  { %6970 = vmatmul.msk.bf16.vlgmr.msrb.gmra.mxu0 %vm144_vm8, %v5173_v8 }
 0xcdc   :  { %v5164_v58 = vpop.f32.mrf.mxu3 }
 0xcdd   :  { %v5165_v63 = vadd.f32 %v7330_v51, %v5164_v58 }
 0xcdf   :  { %v5171_v2 = vmax.f32 %v5165_v63, 0.0 }
 0xce4   :  { %v5166_v5 = vpop.f32.mrf.mxu3 }
 0xce5   :  { %v5167_v27 = vadd.f32 %v7330_v51, %v5166_v5 }
 0xce7   :  { %v5172_v13 = vmax.f32 %v5167_v27, 0.0 }
 0xce9   :  { %v5174_v40 = vpack.c.bf16 %v5172_v13, %v5171_v2 }
 0xceb   :  { %6971 = vmatmul.msk.bf16.gmra.mxu0 %vm144_vm8, %v5174_v40 }
 0xd58   :  { %v5210_v56 = vpop.f32.mrf.mxu0 }
 0xd59   :  { %v5211_v4 = vadd.f32 %v7331_v1, %v5210_v56 }
 0xd5b   :  { %5220 = vst [vmem:[#allocation2] sm:$0xff] %v5211_v4 }
 0xd60   :  { %v5212_v53 = vpop.f32.mrf.mxu0 }
 0xd61   :  { %v5213_v9 = vadd.f32 %v7331_v1, %v5212_v53 }
 0xd63   :  { %5221 = vst [vmem:[#allocation2 + $0x8] sm:$0xff] %v5213_v9 }
 0xd68   :  { %v5215_v43 = vpop.f32.mrf.mxu0 }
 0xd69   :  { %v5216_v11 = vadd.f32 %v7331_v1, %v5215_v43 }
 0xd6b   :  { %5223 = vst [vmem:[#allocation2 + $0x10] sm:$0xff] %v5216_v11 }
 0xd70   :  { %v5217_v3 = vpop.f32.mrf.mxu0 }
 0xd71   :  { %v5218_v10 = vadd.f32 %v7331_v1, %v5217_v3 }
 0xd73   :  { %5224 = vst [vmem:[#allocation2 + $0x18] sm:$0xff] %v5218_v10 }
 0xd74   :  { %5237 = dma.vmem_to_hbm [thread:$0]  %s5230_s23, 512, %s5232_s7, [#allocation3], %s7449_s20, %s7449_s20, %s7450_s12  }
 0xd75   :  { %7442 = dma.done.wait [#allocation3], 512  }
 0xd76   :  { %7443 = vsyncadd [#allocation3], 4294966784 }
 0xd77   :  { %5242 = vsyncpa [#allocation3], 1 }

</bundles_post_ra>
